<compile_context>
chip_gen: v5e
topology: v5e:2x2
jax: 0.10.0
libtpu: 0.0.40
codegen_flags: <defaults>
</compile_context>

<pallas_src>
import jax
import jax.numpy as jnp
from jax.experimental import pallas as pl
from jax.experimental.pallas import tpu as pltpu

# ----------------------------- config (consistent with the module) -----------
IMG = (16, 16, 16)          # img_size
PATCH = (8, 8, 8)           # fixed by the module
IN_CH = 1                   # fixed by the module
GRID3 = tuple(i // p for i, p in zip(IMG, PATCH))     # (2, 2, 2)
NPATCH = GRID3[0] * GRID3[1] * GRID3[2]               # 8
PDIM = IN_CH * PATCH[0] * PATCH[1] * PATCH[2]         # 512
HID = 48                    # hidden_size (divisible by 6 for 3D sincos, by NH)
NH = 4                      # num_heads
DH = HID // NH              # 12
MLP = 96                    # mlp_dim
NLAYERS = 2
NCLS = 4                    # num_classes
SEQ = NPATCH + 1            # 9 real tokens (patches + cls)
SEQ_PAD = 16                # sublane-aligned per-batch token block
EPS = 1e-5                  # nn.LayerNorm default
SCALE = DH ** -0.5
NEG_INF = -1e30


# ----------------------------- helpers ---------------------------------------
def _layernorm(x, g, b):
    mu = jnp.mean(x, axis=-1, keepdims=True)
    var = jnp.mean((x - mu) ** 2, axis=-1, keepdims=True)
    return (x - mu) * jax.lax.rsqrt(var + EPS) * g + b


# ----------------------------- the fused Pallas kernel ------------------------
def vit_kernel(patch_ref, wp_ref, posb_ref, cls_ref,
               ln1g_ref, ln1b_ref, wq_ref, wk_ref, wv_ref, wo_ref, bo_ref,
               ln2g_ref, ln2b_ref, w1_ref, b1_ref, w2_ref, b2_ref,
               ng_ref, nb_ref, wc_ref, bc_ref, out_ref):
    BT = patch_ref.shape[0] // NPATCH          # batches in this grid step
    ROWS = BT * SEQ_PAD
    bf16 = jnp.bfloat16

    # ---- patch embedding: Conv3d(kernel == stride == patch) as one bf16 matmul
    emb = jnp.dot(patch_ref[...].astype(bf16), wp_ref[...],
                  preferred_element_type=jnp.float32)            # (BT*NPATCH, HID) f32
    posb = posb_ref[...]                                         # (NPATCH, HID) f32

    # per-batch 16-row token block: rows 0..7 = patches(+pos), row 8 = cls, 9..15 = 0
    cls_blk = jnp.concatenate(
        [cls_ref[...], jnp.zeros((SEQ_PAD - NPATCH - 1, HID), jnp.float32)], axis=0)
    parts = []
    for b in range(BT):
        parts.append(emb[b * NPATCH:(b + 1) * NPATCH, :] + posb)   # 8-row aligned slice
        parts.append(cls_blk)                                      # 8-row aligned block
    x = jnp.concatenate(parts, axis=0)                             # (ROWS, HID) f32

    # key mask: only the first SEQ rows of each 16-row block are real tokens
    key_valid = jax.lax.broadcasted_iota(jnp.int32, (1, 1, SEQ_PAD), 2) < SEQ

    for l in range(NLAYERS):                       # static unroll over layers
        # ---- multi-head self attention (pre-norm, lane-aligned Q/K/V) -------
        xn = _layernorm(x, ln1g_ref[l], ln1b_ref[l]).astype(bf16)
        q = jnp.dot(xn, wq_ref[l], preferred_element_type=jnp.float32)
        k = jnp.dot(xn, wk_ref[l], preferred_element_type=jnp.float32)
        v = jnp.dot(xn, wv_ref[l], preferred_element_type=jnp.float32)
        q3 = q.astype(bf16).reshape(BT, SEQ_PAD, HID)
        k3 = k.astype(bf16).reshape(BT, SEQ_PAD, HID)
        v3 = v.astype(bf16).reshape(BT, SEQ_PAD, HID)

        heads = []
        for h in range(NH):                        # 4 static iters, batched over BT
            sl = slice(h * DH, (h + 1) * DH)
            s = jnp.einsum("bqd,bkd->bqk", q3[..., sl], k3[..., sl],
                           preferred_element_type=jnp.float32) * SCALE
            s = jnp.where(key_valid, s, NEG_INF)   # hide padded key rows
            s = s - jnp.max(s, axis=-1, keepdims=True)
            e = jnp.exp(s)
            p = e * pl.reciprocal(jnp.sum(e, axis=-1, keepdims=True), approx=True)
            heads.append(jnp.einsum("bqk,bkd->bqd", p.astype(bf16), v3[..., sl],
                                    preferred_element_type=jnp.float32))
        attn = jnp.concatenate(heads, axis=-1).reshape(ROWS, HID)  # heads contiguous in lanes
        x = x + jnp.dot(attn.astype(bf16), wo_ref[l],
                        preferred_element_type=jnp.float32) + bo_ref[l]

        # ---- MLP: Linear -> GELU(tanh approx) -> Linear ----------------------
        xn2 = _layernorm(x, ln2g_ref[l], ln2b_ref[l]).astype(bf16)
        h1 = jnp.dot(xn2, w1_ref[l], preferred_element_type=jnp.float32) + b1_ref[l]
        # tanh-approx GELU runs on the (otherwise idle) EUP; <~1e-3 off exact erf GELU
        h1 = jax.nn.gelu(h1, approximate=True)
        x = x + jnp.dot(h1.astype(bf16), w2_ref[l],
                        preferred_element_type=jnp.float32) + b2_ref[l]

    # ---- final LayerNorm + classification head over ALL resident rows --------
    xf = _layernorm(x, ng_ref[...], nb_ref[...])
    logits = jnp.dot(xf.astype(bf16), wc_ref[...],
                     preferred_element_type=jnp.float32) + bc_ref[...]     # (ROWS, NCLS)
    cls_logits = logits.reshape(BT, SEQ_PAD, NCLS)[:, NPATCH, :]           # cls = row 8
    out_ref[...] = jnp.tanh(cls_logits).reshape(1, BT, NCLS)
    # TODO(synk): the underlying ViT also returns hidden_states_out; COMP_VIT
    # discards it, so it is intentionally not materialized here.


# ----------------------------- parameter construction -------------------------
def build_sincos_pos_embed(grid_size, embed_dim, temperature=10000.0):
    g0, g1, g2 = grid_size
    m0, m1, m2 = jnp.meshgrid(jnp.arange(g0, dtype=jnp.float32),
                              jnp.arange(g1, dtype=jnp.float32),
                              jnp.arange(g2, dtype=jnp.float32), indexing="ij")
    pos_dim = embed_dim // 6
    omega = jnp.arange(pos_dim, dtype=jnp.float32) / pos_dim
    omega = 1.0 / (temperature ** omega)
    o0 = m0.reshape(-1)[:, None] * omega[None, :]
    o1 = m1.reshape(-1)[:, None] * omega[None, :]
    o2 = m2.reshape(-1)[:, None] * omega[None, :]
    return jnp.concatenate([jnp.sin(o0), jnp.cos(o0),
                            jnp.sin(o1), jnp.cos(o1),
                            jnp.sin(o2), jnp.cos(o2)], axis=1)     # (NPATCH, HID)


def build_params(key):
    def nrm(k, shape, scale=0.02):
        return scale * jax.random.normal(k, shape, jnp.float32)

    keys = jax.random.split(key, 10)
    return {
        "w_patch": nrm(keys[0], (PDIM, HID)),
        "b_patch": jnp.zeros((1, HID), jnp.float32),
        "pos": build_sincos_pos_embed(GRID3, HID),
        "cls": nrm(keys[1], (1, HID)),
        # per-layer weights stacked on a leading NLAYERS axis
        "ln1g": jnp.ones((NLAYERS, 1, HID), jnp.float32),
        "ln1b": jnp.zeros((NLAYERS, 1, HID), jnp.float32),
        "wq": nrm(keys[2], (NLAYERS, HID, HID)),
        "wk": nrm(keys[3], (NLAYERS, HID, HID)),
        "wv": nrm(keys[4], (NLAYERS, HID, HID)),
        "wo": nrm(keys[5], (NLAYERS, HID, HID)),
        "bo": jnp.zeros((NLAYERS, 1, HID), jnp.float32),
        "ln2g": jnp.ones((NLAYERS, 1, HID), jnp.float32),
        "ln2b": jnp.zeros((NLAYERS, 1, HID), jnp.float32),
        "w1": nrm(keys[6], (NLAYERS, HID, MLP)),
        "b1": jnp.zeros((NLAYERS, 1, MLP), jnp.float32),
        "w2": nrm(keys[7], (NLAYERS, MLP, HID)),
        "b2": jnp.zeros((NLAYERS, 1, HID), jnp.float32),
        # final norm + classification head
        "ng": jnp.ones((1, HID), jnp.float32),
        "nb": jnp.zeros((1, HID), jnp.float32),
        "wc": nrm(keys[8], (HID, NCLS)),
        "bc": jnp.zeros((1, NCLS), jnp.float32),
    }


# ----------------------------- glue (plain JAX) --------------------------------
def extract_patches(img):
    # non-overlapping patches: Conv3d with kernel == stride == patch; per-patch
    # flatten order is (C, kd, kh, kw) exactly like the PyTorch conv weight.
    B = img.shape[0]
    d0, d1, d2 = GRID3
    p0, p1, p2 = PATCH
    x = img.reshape(B, IN_CH, d0, p0, d1, p1, d2, p2)
    x = x.transpose(0, 2, 4, 6, 1, 3, 5, 7)
    return x.reshape(B, NPATCH, PDIM)


def _const_spec(arr):
    n = arr.ndim
    return pl.BlockSpec(arr.shape, lambda b, _n=n: (0,) * _n)


def vit_forward_pallas(img, params, *, batch_tile=1):
    B = img.shape[0]
    assert B % batch_tile == 0
    nblk = B // batch_tile
    patches = extract_patches(img).reshape(B * NPATCH, PDIM)   # f32, cast to bf16 in-kernel

    bf = lambda w: w.astype(jnp.bfloat16)                       # MXU operands in bf16
    posb = params["pos"] + params["b_patch"]                    # fold conv bias into pos table

    args = (patches, bf(params["w_patch"]), posb, params["cls"],
            params["ln1g"], params["ln1b"],
            bf(params["wq"]), bf(params["wk"]), bf(params["wv"]),
            bf(params["wo"]), params["bo"],
            params["ln2g"], params["ln2b"],
            bf(params["w1"]), params["b1"], bf(params["w2"]), params["b2"],
            params["ng"], params["nb"], bf(params["wc"]), params["bc"])

    in_specs = ([pl.BlockSpec((batch_tile * NPATCH, PDIM), lambda b: (b, 0))]
                + [_const_spec(a) for a in args[1:]])

    out = pl.pallas_call(
        vit_kernel,
        out_shape=jax.ShapeDtypeStruct((nblk, batch_tile, NCLS), jnp.float32),
        grid=(nblk,),
        in_specs=in_specs,
        out_specs=pl.BlockSpec((1, batch_tile, NCLS), lambda b: (b, 0, 0)),
        compiler_params=pltpu.CompilerParams(dimension_semantics=("parallel",)),
    )(*args)
    return out.reshape(B, NCLS)


# ----------------------------- pure-JAX reference ------------------------------
def reference_forward(img, params):
    B = img.shape[0]
    x = extract_patches(img) @ params["w_patch"] + params["b_patch"] + params["pos"]
    cls = jnp.broadcast_to(params["cls"][None], (B, 1, HID))
    x = jnp.concatenate([cls, x], axis=1)                          # (B, SEQ, HID)
    for l in range(NLAYERS):
        xn = _layernorm(x, params["ln1g"][l], params["ln1b"][l])
        q = xn @ params["wq"][l]
        k = xn @ params["wk"][l]
        v = xn @ params["wv"][l]
        heads = []
        for h in range(NH):
            sl = slice(h * DH, (h + 1) * DH)
            s = jnp.einsum("bqd,bkd->bqk", q[..., sl], k[..., sl]) * SCALE
            p = jax.nn.softmax(s, axis=-1)
            heads.append(jnp.einsum("bqk,bkd->bqd", p, v[..., sl]))
        x = x + jnp.concatenate(heads, axis=-1) @ params["wo"][l] + params["bo"][l]
        xn2 = _layernorm(x, params["ln2g"][l], params["ln2b"][l])
        h1 = jax.nn.gelu(xn2 @ params["w1"][l] + params["b1"][l], approximate=False)
        x = x + h1 @ params["w2"][l] + params["b2"][l]
    n = _layernorm(x[:, 0, :], params["ng"], params["nb"])
    return jnp.tanh(n @ params["wc"] + params["bc"])


# ----------------------------- main ---------------------------------------------
if __name__ == "__main__":
    key = jax.random.PRNGKey(0)
    kimg, kpar = jax.random.split(key)
    img = jax.random.normal(kimg, (2, IN_CH) + IMG, jnp.float32)   # (2, 1, 16, 16, 16)
    params = build_params(kpar)

    out = jax.jit(vit_forward_pallas)(img, params)
    out = jax.block_until_ready(out)
    assert out.shape == (2, NCLS), out.shape

    ref = reference_forward(img, params)
    if not jnp.allclose(out, ref, atol=2e-2, rtol=2e-2):
        raise ValueError("Pallas output does not match pure-JAX reference:\n"
                         f"pallas={out}\nref={ref}")

    print("KERNEL_OK")
</pallas_src>

<mosaic_0001>
module attributes {stable_mosaic.version = 11 : i64} {
  func.func @vit_kernel(%arg0: i32, %arg1: memref<8x512xf32, #tpu.memory_space<vmem>>, %arg2: memref<512x48xbf16, #tpu.memory_space<vmem>>, %arg3: memref<8x48xf32, #tpu.memory_space<vmem>>, %arg4: memref<1x48xf32, #tpu.memory_space<vmem>>, %arg5: memref<2x1x48xf32, #tpu.memory_space<vmem>>, %arg6: memref<2x1x48xf32, #tpu.memory_space<vmem>>, %arg7: memref<2x48x48xbf16, #tpu.memory_space<vmem>>, %arg8: memref<2x48x48xbf16, #tpu.memory_space<vmem>>, %arg9: memref<2x48x48xbf16, #tpu.memory_space<vmem>>, %arg10: memref<2x48x48xbf16, #tpu.memory_space<vmem>>, %arg11: memref<2x1x48xf32, #tpu.memory_space<vmem>>, %arg12: memref<2x1x48xf32, #tpu.memory_space<vmem>>, %arg13: memref<2x1x48xf32, #tpu.memory_space<vmem>>, %arg14: memref<2x48x96xbf16, #tpu.memory_space<vmem>>, %arg15: memref<2x1x96xf32, #tpu.memory_space<vmem>>, %arg16: memref<2x96x48xbf16, #tpu.memory_space<vmem>>, %arg17: memref<2x1x48xf32, #tpu.memory_space<vmem>>, %arg18: memref<1x48xf32, #tpu.memory_space<vmem>>, %arg19: memref<1x48xf32, #tpu.memory_space<vmem>>, %arg20: memref<48x4xbf16, #tpu.memory_space<vmem>>, %arg21: memref<1x4xf32, #tpu.memory_space<vmem>>, %arg22: memref<1x1x4xf32, #tpu.memory_space<vmem>>) attributes {dimension_semantics = [#tpu.dimension_semantics<parallel>], iteration_bounds = array<i64: 2>, scalar_prefetch = 0 : i64, scratch_operands = 0 : i64, tpu.core_type = #tpu.core_type<tc>, window_params = [{transform_indices = @transform_0, window_bounds = array<i64: 8, 512>}, {pipeline_mode = #tpu.pipeline_mode<synchronous>, transform_indices = @transform_1, window_bounds = array<i64: 512, 48>}, {pipeline_mode = #tpu.pipeline_mode<synchronous>, transform_indices = @transform_2, window_bounds = array<i64: 8, 48>}, {pipeline_mode = #tpu.pipeline_mode<synchronous>, transform_indices = @transform_3, window_bounds = array<i64: 1, 48>}, {pipeline_mode = #tpu.pipeline_mode<synchronous>, transform_indices = @transform_4, window_bounds = array<i64: 2, 1, 48>}, {pipeline_mode = #tpu.pipeline_mode<synchronous>, transform_indices = @transform_5, window_bounds = array<i64: 2, 1, 48>}, {pipeline_mode = #tpu.pipeline_mode<synchronous>, transform_indices = @transform_6, window_bounds = array<i64: 2, 48, 48>}, {pipeline_mode = #tpu.pipeline_mode<synchronous>, transform_indices = @transform_7, window_bounds = array<i64: 2, 48, 48>}, {pipeline_mode = #tpu.pipeline_mode<synchronous>, transform_indices = @transform_8, window_bounds = array<i64: 2, 48, 48>}, {pipeline_mode = #tpu.pipeline_mode<synchronous>, transform_indices = @transform_9, window_bounds = array<i64: 2, 48, 48>}, {pipeline_mode = #tpu.pipeline_mode<synchronous>, transform_indices = @transform_10, window_bounds = array<i64: 2, 1, 48>}, {pipeline_mode = #tpu.pipeline_mode<synchronous>, transform_indices = @transform_11, window_bounds = array<i64: 2, 1, 48>}, {pipeline_mode = #tpu.pipeline_mode<synchronous>, transform_indices = @transform_12, window_bounds = array<i64: 2, 1, 48>}, {pipeline_mode = #tpu.pipeline_mode<synchronous>, transform_indices = @transform_13, window_bounds = array<i64: 2, 48, 96>}, {pipeline_mode = #tpu.pipeline_mode<synchronous>, transform_indices = @transform_14, window_bounds = array<i64: 2, 1, 96>}, {pipeline_mode = #tpu.pipeline_mode<synchronous>, transform_indices = @transform_15, window_bounds = array<i64: 2, 96, 48>}, {pipeline_mode = #tpu.pipeline_mode<synchronous>, transform_indices = @transform_16, window_bounds = array<i64: 2, 1, 48>}, {pipeline_mode = #tpu.pipeline_mode<synchronous>, transform_indices = @transform_17, window_bounds = array<i64: 1, 48>}, {pipeline_mode = #tpu.pipeline_mode<synchronous>, transform_indices = @transform_18, window_bounds = array<i64: 1, 48>}, {pipeline_mode = #tpu.pipeline_mode<synchronous>, transform_indices = @transform_19, window_bounds = array<i64: 48, 4>}, {pipeline_mode = #tpu.pipeline_mode<synchronous>, transform_indices = @transform_20, window_bounds = array<i64: 1, 4>}, {transform_indices = @transform_21, window_bounds = array<i64: 1, 1, 4>}]} {
    %c0 = arith.constant 0 : index
    %c0_0 = arith.constant 0 : index
    %0 = vector.load %arg1[%c0, %c0_0] : memref<8x512xf32, #tpu.memory_space<vmem>>, vector<8x512xf32>
    %1 = arith.truncf %0 : vector<8x512xf32> to vector<8x512xbf16>
    %c0_1 = arith.constant 0 : index
    %c0_2 = arith.constant 0 : index
    %2 = vector.load %arg2[%c0_1, %c0_2] : memref<512x48xbf16, #tpu.memory_space<vmem>>, vector<512x48xbf16>
    %cst = arith.constant dense<0.000000e+00> : vector<8x48xf32>
    %3 = tpu.matmul %1, %2, %cst {dimension_numbers = #tpu.dot_dimension_numbers<[1], [0], [0], [1], [0, 0, 1, 1], [], []>} : vector<8x512xbf16>, vector<512x48xbf16>, vector<8x48xf32> -> vector<8x48xf32>
    %c0_3 = arith.constant 0 : index
    %c0_4 = arith.constant 0 : index
    %4 = vector.load %arg3[%c0_3, %c0_4] : memref<8x48xf32, #tpu.memory_space<vmem>>, vector<8x48xf32>
    %c0_5 = arith.constant 0 : index
    %c0_6 = arith.constant 0 : index
    %5 = vector.load %arg4[%c0_5, %c0_6] : memref<1x48xf32, #tpu.memory_space<vmem>>, vector<1x48xf32>
    %cst_7 = arith.constant 0.000000e+00 : f32
    %6 = vector.broadcast %cst_7 : f32 to vector<7x48xf32>
    %7 = tpu.concatenate %5, %6 in 0 : vector<1x48xf32>, vector<7x48xf32> -> vector<8x48xf32>
    %8 = arith.addf %3, %4 : vector<8x48xf32>
    %9 = tpu.concatenate %8, %7 in 0 : vector<8x48xf32>, vector<8x48xf32> -> vector<16x48xf32>
    %10 = tpu.iota {dimensions = array<i32: 2>} : vector<1x1x16xi32>
    %c9_i32 = arith.constant 9 : i32
    %11 = vector.broadcast %c9_i32 : i32 to vector<1x1x16xi32>
    %12 = arith.cmpi slt, %10, %11 : vector<1x1x16xi32>
    %c0_8 = arith.constant 0 : index
    %c0_9 = arith.constant 0 : index
    %c0_10 = arith.constant 0 : index
    %13 = vector.load %arg5[%c0_8, %c0_9, %c0_10] : memref<2x1x48xf32, #tpu.memory_space<vmem>>, vector<1x1x48xf32>
    %14 = vector.shape_cast %13 : vector<1x1x48xf32> to vector<1x48xf32>
    %c0_11 = arith.constant 0 : index
    %c0_12 = arith.constant 0 : index
    %c0_13 = arith.constant 0 : index
    %15 = vector.load %arg6[%c0_11, %c0_12, %c0_13] : memref<2x1x48xf32, #tpu.memory_space<vmem>>, vector<1x1x48xf32>
    %16 = vector.shape_cast %15 : vector<1x1x48xf32> to vector<1x48xf32>
    %cst_14 = arith.constant dense<0.000000e+00> : vector<16xf32>
    %17 = vector.multi_reduction <add>, %9, %cst_14 [1] : vector<16x48xf32> to vector<16xf32>
    %18 = vector.shape_cast %17 : vector<16xf32> to vector<16x1xf32>
    %cst_15 = arith.constant 4.800000e+01 : f32
    %19 = vector.broadcast %cst_15 : f32 to vector<16x1xf32>
    %20 = arith.divf %18, %19 : vector<16x1xf32>
    %21 = vector.broadcast %20 : vector<16x1xf32> to vector<16x48xf32>
    %22 = arith.subf %9, %21 : vector<16x48xf32>
    %23 = arith.mulf %22, %22 : vector<16x48xf32>
    %cst_16 = arith.constant dense<0.000000e+00> : vector<16xf32>
    %24 = vector.multi_reduction <add>, %23, %cst_16 [1] : vector<16x48xf32> to vector<16xf32>
    %25 = vector.shape_cast %24 : vector<16xf32> to vector<16x1xf32>
    %cst_17 = arith.constant 4.800000e+01 : f32
    %26 = vector.broadcast %cst_17 : f32 to vector<16x1xf32>
    %27 = arith.divf %25, %26 : vector<16x1xf32>
    %28 = vector.broadcast %20 : vector<16x1xf32> to vector<16x48xf32>
    %29 = arith.subf %9, %28 : vector<16x48xf32>
    %cst_18 = arith.constant 9.99999974E-6 : f32
    %30 = vector.broadcast %cst_18 : f32 to vector<16x1xf32>
    %31 = arith.addf %27, %30 : vector<16x1xf32>
    %32 = math.rsqrt %31 : vector<16x1xf32>
    %33 = vector.broadcast %32 : vector<16x1xf32> to vector<16x48xf32>
    %34 = arith.mulf %29, %33 : vector<16x48xf32>
    %35 = vector.broadcast %14 : vector<1x48xf32> to vector<16x48xf32>
    %36 = arith.mulf %34, %35 : vector<16x48xf32>
    %37 = vector.broadcast %16 : vector<1x48xf32> to vector<16x48xf32>
    %38 = arith.addf %36, %37 : vector<16x48xf32>
    %39 = arith.truncf %38 : vector<16x48xf32> to vector<16x48xbf16>
    %c0_19 = arith.constant 0 : index
    %c0_20 = arith.constant 0 : index
    %c0_21 = arith.constant 0 : index
    %40 = vector.load %arg7[%c0_19, %c0_20, %c0_21] : memref<2x48x48xbf16, #tpu.memory_space<vmem>>, vector<1x48x48xbf16>
    %41 = vector.shape_cast %40 : vector<1x48x48xbf16> to vector<48x48xbf16>
    %cst_22 = arith.constant dense<0.000000e+00> : vector<16x48xf32>
    %42 = tpu.matmul %39, %41, %cst_22 {dimension_numbers = #tpu.dot_dimension_numbers<[1], [0], [0], [1], [0, 0, 1, 1], [], []>} : vector<16x48xbf16>, vector<48x48xbf16>, vector<16x48xf32> -> vector<16x48xf32>
    %c0_23 = arith.constant 0 : index
    %c0_24 = arith.constant 0 : index
    %c0_25 = arith.constant 0 : index
    %43 = vector.load %arg8[%c0_23, %c0_24, %c0_25] : memref<2x48x48xbf16, #tpu.memory_space<vmem>>, vector<1x48x48xbf16>
    %44 = vector.shape_cast %43 : vector<1x48x48xbf16> to vector<48x48xbf16>
    %cst_26 = arith.constant dense<0.000000e+00> : vector<16x48xf32>
    %45 = tpu.matmul %39, %44, %cst_26 {dimension_numbers = #tpu.dot_dimension_numbers<[1], [0], [0], [1], [0, 0, 1, 1], [], []>} : vector<16x48xbf16>, vector<48x48xbf16>, vector<16x48xf32> -> vector<16x48xf32>
    %c0_27 = arith.constant 0 : index
    %c0_28 = arith.constant 0 : index
    %c0_29 = arith.constant 0 : index
    %46 = vector.load %arg9[%c0_27, %c0_28, %c0_29] : memref<2x48x48xbf16, #tpu.memory_space<vmem>>, vector<1x48x48xbf16>
    %47 = vector.shape_cast %46 : vector<1x48x48xbf16> to vector<48x48xbf16>
    %cst_30 = arith.constant dense<0.000000e+00> : vector<16x48xf32>
    %48 = tpu.matmul %39, %47, %cst_30 {dimension_numbers = #tpu.dot_dimension_numbers<[1], [0], [0], [1], [0, 0, 1, 1], [], []>} : vector<16x48xbf16>, vector<48x48xbf16>, vector<16x48xf32> -> vector<16x48xf32>
    %49 = arith.truncf %42 : vector<16x48xf32> to vector<16x48xbf16>
    %50 = vector.shape_cast %49 : vector<16x48xbf16> to vector<1x16x48xbf16>
    %51 = arith.truncf %45 : vector<16x48xf32> to vector<16x48xbf16>
    %52 = vector.shape_cast %51 : vector<16x48xbf16> to vector<1x16x48xbf16>
    %53 = arith.truncf %48 : vector<16x48xf32> to vector<16x48xbf16>
    %54 = vector.shape_cast %53 : vector<16x48xbf16> to vector<1x16x48xbf16>
    %55 = vector.extract_strided_slice %50 {offsets = [0, 0, 0], sizes = [1, 16, 12], strides = [1, 1, 1]} : vector<1x16x48xbf16> to vector<1x16x12xbf16>
    %56 = vector.extract_strided_slice %52 {offsets = [0, 0, 0], sizes = [1, 16, 12], strides = [1, 1, 1]} : vector<1x16x48xbf16> to vector<1x16x12xbf16>
    "tpu.trace_start"() <{level = 10 : i32, message = "bqd,bkd->bqk"}> : () -> ()
    %cst_31 = arith.constant dense<0.000000e+00> : vector<1x16x16xf32>
    %57 = tpu.matmul %55, %56, %cst_31 {dimension_numbers = #tpu.dot_dimension_numbers<[2], [2], [1], [1], [0, 0, 0, 1, 1, 1], [0], [0]>} : vector<1x16x12xbf16>, vector<1x16x12xbf16>, vector<1x16x16xf32> -> vector<1x16x16xf32>
    "tpu.trace_stop"() : () -> ()
    %cst_32 = arith.constant 0.288675129 : f32
    %58 = vector.broadcast %cst_32 : f32 to vector<1x16x16xf32>
    %59 = arith.mulf %57, %58 : vector<1x16x16xf32>
    %cst_33 = arith.constant -1.000000e+30 : f32
    %60 = vector.shape_cast %12 : vector<1x1x16xi1> to vector<1x1x16xi1>
    %61 = vector.broadcast %60 : vector<1x1x16xi1> to vector<1x16x16xi1>
    %62 = vector.broadcast %cst_33 : f32 to vector<1x16x16xf32>
    %63 = arith.select %61, %59, %62 : vector<1x16x16xi1>, vector<1x16x16xf32>
    %cst_34 = arith.constant dense<0xFF800000> : vector<1x16xf32>
    %64 = vector.multi_reduction <maximumf>, %63, %cst_34 [2] : vector<1x16x16xf32> to vector<1x16xf32>
    %65 = vector.shape_cast %64 : vector<1x16xf32> to vector<1x16x1xf32>
    %66 = vector.broadcast %65 : vector<1x16x1xf32> to vector<1x16x16xf32>
    %67 = arith.subf %63, %66 : vector<1x16x16xf32>
    %68 = math.exp %67 : vector<1x16x16xf32>
    %cst_35 = arith.constant dense<0.000000e+00> : vector<1x16xf32>
    %69 = vector.multi_reduction <add>, %68, %cst_35 [2] : vector<1x16x16xf32> to vector<1x16xf32>
    %70 = vector.shape_cast %69 : vector<1x16xf32> to vector<1x16x1xf32>
    %71 = tpu.reciprocal %70 {approx = true} : vector<1x16x1xf32> -> vector<1x16x1xf32>
    %72 = vector.broadcast %71 : vector<1x16x1xf32> to vector<1x16x16xf32>
    %73 = arith.mulf %68, %72 : vector<1x16x16xf32>
    %74 = arith.truncf %73 : vector<1x16x16xf32> to vector<1x16x16xbf16>
    %75 = vector.extract_strided_slice %54 {offsets = [0, 0, 0], sizes = [1, 16, 12], strides = [1, 1, 1]} : vector<1x16x48xbf16> to vector<1x16x12xbf16>
    "tpu.trace_start"() <{level = 10 : i32, message = "bqk,bkd->bqd"}> : () -> ()
    %cst_36 = arith.constant dense<0.000000e+00> : vector<1x16x12xf32>
    %76 = tpu.matmul %74, %75, %cst_36 {dimension_numbers = #tpu.dot_dimension_numbers<[2], [1], [1], [2], [0, 0, 0, 1, 1, 2], [0], [0]>} : vector<1x16x16xbf16>, vector<1x16x12xbf16>, vector<1x16x12xf32> -> vector<1x16x12xf32>
    "tpu.trace_stop"() : () -> ()
    %77 = vector.extract_strided_slice %50 {offsets = [0, 0, 12], sizes = [1, 16, 12], strides = [1, 1, 1]} : vector<1x16x48xbf16> to vector<1x16x12xbf16>
    %78 = vector.extract_strided_slice %52 {offsets = [0, 0, 12], sizes = [1, 16, 12], strides = [1, 1, 1]} : vector<1x16x48xbf16> to vector<1x16x12xbf16>
    "tpu.trace_start"() <{level = 10 : i32, message = "bqd,bkd->bqk"}> : () -> ()
    %cst_37 = arith.constant dense<0.000000e+00> : vector<1x16x16xf32>
    %79 = tpu.matmul %77, %78, %cst_37 {dimension_numbers = #tpu.dot_dimension_numbers<[2], [2], [1], [1], [0, 0, 0, 1, 1, 1], [0], [0]>} : vector<1x16x12xbf16>, vector<1x16x12xbf16>, vector<1x16x16xf32> -> vector<1x16x16xf32>
    "tpu.trace_stop"() : () -> ()
    %cst_38 = arith.constant 0.288675129 : f32
    %80 = vector.broadcast %cst_38 : f32 to vector<1x16x16xf32>
    %81 = arith.mulf %79, %80 : vector<1x16x16xf32>
    %cst_39 = arith.constant -1.000000e+30 : f32
    %82 = vector.shape_cast %12 : vector<1x1x16xi1> to vector<1x1x16xi1>
    %83 = vector.broadcast %82 : vector<1x1x16xi1> to vector<1x16x16xi1>
    %84 = vector.broadcast %cst_39 : f32 to vector<1x16x16xf32>
    %85 = arith.select %83, %81, %84 : vector<1x16x16xi1>, vector<1x16x16xf32>
    %cst_40 = arith.constant dense<0xFF800000> : vector<1x16xf32>
    %86 = vector.multi_reduction <maximumf>, %85, %cst_40 [2] : vector<1x16x16xf32> to vector<1x16xf32>
    %87 = vector.shape_cast %86 : vector<1x16xf32> to vector<1x16x1xf32>
    %88 = vector.broadcast %87 : vector<1x16x1xf32> to vector<1x16x16xf32>
    %89 = arith.subf %85, %88 : vector<1x16x16xf32>
    %90 = math.exp %89 : vector<1x16x16xf32>
    %cst_41 = arith.constant dense<0.000000e+00> : vector<1x16xf32>
    %91 = vector.multi_reduction <add>, %90, %cst_41 [2] : vector<1x16x16xf32> to vector<1x16xf32>
    %92 = vector.shape_cast %91 : vector<1x16xf32> to vector<1x16x1xf32>
    %93 = tpu.reciprocal %92 {approx = true} : vector<1x16x1xf32> -> vector<1x16x1xf32>
    %94 = vector.broadcast %93 : vector<1x16x1xf32> to vector<1x16x16xf32>
    %95 = arith.mulf %90, %94 : vector<1x16x16xf32>
    %96 = arith.truncf %95 : vector<1x16x16xf32> to vector<1x16x16xbf16>
    %97 = vector.extract_strided_slice %54 {offsets = [0, 0, 12], sizes = [1, 16, 12], strides = [1, 1, 1]} : vector<1x16x48xbf16> to vector<1x16x12xbf16>
    "tpu.trace_start"() <{level = 10 : i32, message = "bqk,bkd->bqd"}> : () -> ()
    %cst_42 = arith.constant dense<0.000000e+00> : vector<1x16x12xf32>
    %98 = tpu.matmul %96, %97, %cst_42 {dimension_numbers = #tpu.dot_dimension_numbers<[2], [1], [1], [2], [0, 0, 0, 1, 1, 2], [0], [0]>} : vector<1x16x16xbf16>, vector<1x16x12xbf16>, vector<1x16x12xf32> -> vector<1x16x12xf32>
    "tpu.trace_stop"() : () -> ()
    %99 = vector.extract_strided_slice %50 {offsets = [0, 0, 24], sizes = [1, 16, 12], strides = [1, 1, 1]} : vector<1x16x48xbf16> to vector<1x16x12xbf16>
    %100 = vector.extract_strided_slice %52 {offsets = [0, 0, 24], sizes = [1, 16, 12], strides = [1, 1, 1]} : vector<1x16x48xbf16> to vector<1x16x12xbf16>
    "tpu.trace_start"() <{level = 10 : i32, message = "bqd,bkd->bqk"}> : () -> ()
    %cst_43 = arith.constant dense<0.000000e+00> : vector<1x16x16xf32>
    %101 = tpu.matmul %99, %100, %cst_43 {dimension_numbers = #tpu.dot_dimension_numbers<[2], [2], [1], [1], [0, 0, 0, 1, 1, 1], [0], [0]>} : vector<1x16x12xbf16>, vector<1x16x12xbf16>, vector<1x16x16xf32> -> vector<1x16x16xf32>
    "tpu.trace_stop"() : () -> ()
    %cst_44 = arith.constant 0.288675129 : f32
    %102 = vector.broadcast %cst_44 : f32 to vector<1x16x16xf32>
    %103 = arith.mulf %101, %102 : vector<1x16x16xf32>
    %cst_45 = arith.constant -1.000000e+30 : f32
    %104 = vector.shape_cast %12 : vector<1x1x16xi1> to vector<1x1x16xi1>
    %105 = vector.broadcast %104 : vector<1x1x16xi1> to vector<1x16x16xi1>
    %106 = vector.broadcast %cst_45 : f32 to vector<1x16x16xf32>
    %107 = arith.select %105, %103, %106 : vector<1x16x16xi1>, vector<1x16x16xf32>
    %cst_46 = arith.constant dense<0xFF800000> : vector<1x16xf32>
    %108 = vector.multi_reduction <maximumf>, %107, %cst_46 [2] : vector<1x16x16xf32> to vector<1x16xf32>
    %109 = vector.shape_cast %108 : vector<1x16xf32> to vector<1x16x1xf32>
    %110 = vector.broadcast %109 : vector<1x16x1xf32> to vector<1x16x16xf32>
    %111 = arith.subf %107, %110 : vector<1x16x16xf32>
    %112 = math.exp %111 : vector<1x16x16xf32>
    %cst_47 = arith.constant dense<0.000000e+00> : vector<1x16xf32>
    %113 = vector.multi_reduction <add>, %112, %cst_47 [2] : vector<1x16x16xf32> to vector<1x16xf32>
    %114 = vector.shape_cast %113 : vector<1x16xf32> to vector<1x16x1xf32>
    %115 = tpu.reciprocal %114 {approx = true} : vector<1x16x1xf32> -> vector<1x16x1xf32>
    %116 = vector.broadcast %115 : vector<1x16x1xf32> to vector<1x16x16xf32>
    %117 = arith.mulf %112, %116 : vector<1x16x16xf32>
    %118 = arith.truncf %117 : vector<1x16x16xf32> to vector<1x16x16xbf16>
    %119 = vector.extract_strided_slice %54 {offsets = [0, 0, 24], sizes = [1, 16, 12], strides = [1, 1, 1]} : vector<1x16x48xbf16> to vector<1x16x12xbf16>
    "tpu.trace_start"() <{level = 10 : i32, message = "bqk,bkd->bqd"}> : () -> ()
    %cst_48 = arith.constant dense<0.000000e+00> : vector<1x16x12xf32>
    %120 = tpu.matmul %118, %119, %cst_48 {dimension_numbers = #tpu.dot_dimension_numbers<[2], [1], [1], [2], [0, 0, 0, 1, 1, 2], [0], [0]>} : vector<1x16x16xbf16>, vector<1x16x12xbf16>, vector<1x16x12xf32> -> vector<1x16x12xf32>
    "tpu.trace_stop"() : () -> ()
    %121 = vector.extract_strided_slice %50 {offsets = [0, 0, 36], sizes = [1, 16, 12], strides = [1, 1, 1]} : vector<1x16x48xbf16> to vector<1x16x12xbf16>
    %122 = vector.extract_strided_slice %52 {offsets = [0, 0, 36], sizes = [1, 16, 12], strides = [1, 1, 1]} : vector<1x16x48xbf16> to vector<1x16x12xbf16>
    "tpu.trace_start"() <{level = 10 : i32, message = "bqd,bkd->bqk"}> : () -> ()
    %cst_49 = arith.constant dense<0.000000e+00> : vector<1x16x16xf32>
    %123 = tpu.matmul %121, %122, %cst_49 {dimension_numbers = #tpu.dot_dimension_numbers<[2], [2], [1], [1], [0, 0, 0, 1, 1, 1], [0], [0]>} : vector<1x16x12xbf16>, vector<1x16x12xbf16>, vector<1x16x16xf32> -> vector<1x16x16xf32>
    "tpu.trace_stop"() : () -> ()
    %cst_50 = arith.constant 0.288675129 : f32
    %124 = vector.broadcast %cst_50 : f32 to vector<1x16x16xf32>
    %125 = arith.mulf %123, %124 : vector<1x16x16xf32>
    %cst_51 = arith.constant -1.000000e+30 : f32
    %126 = vector.shape_cast %12 : vector<1x1x16xi1> to vector<1x1x16xi1>
    %127 = vector.broadcast %126 : vector<1x1x16xi1> to vector<1x16x16xi1>
    %128 = vector.broadcast %cst_51 : f32 to vector<1x16x16xf32>
    %129 = arith.select %127, %125, %128 : vector<1x16x16xi1>, vector<1x16x16xf32>
    %cst_52 = arith.constant dense<0xFF800000> : vector<1x16xf32>
    %130 = vector.multi_reduction <maximumf>, %129, %cst_52 [2] : vector<1x16x16xf32> to vector<1x16xf32>
    %131 = vector.shape_cast %130 : vector<1x16xf32> to vector<1x16x1xf32>
    %132 = vector.broadcast %131 : vector<1x16x1xf32> to vector<1x16x16xf32>
    %133 = arith.subf %129, %132 : vector<1x16x16xf32>
    %134 = math.exp %133 : vector<1x16x16xf32>
    %cst_53 = arith.constant dense<0.000000e+00> : vector<1x16xf32>
    %135 = vector.multi_reduction <add>, %134, %cst_53 [2] : vector<1x16x16xf32> to vector<1x16xf32>
    %136 = vector.shape_cast %135 : vector<1x16xf32> to vector<1x16x1xf32>
    %137 = tpu.reciprocal %136 {approx = true} : vector<1x16x1xf32> -> vector<1x16x1xf32>
    %138 = vector.broadcast %137 : vector<1x16x1xf32> to vector<1x16x16xf32>
    %139 = arith.mulf %134, %138 : vector<1x16x16xf32>
    %140 = arith.truncf %139 : vector<1x16x16xf32> to vector<1x16x16xbf16>
    %141 = vector.extract_strided_slice %54 {offsets = [0, 0, 36], sizes = [1, 16, 12], strides = [1, 1, 1]} : vector<1x16x48xbf16> to vector<1x16x12xbf16>
    "tpu.trace_start"() <{level = 10 : i32, message = "bqk,bkd->bqd"}> : () -> ()
    %cst_54 = arith.constant dense<0.000000e+00> : vector<1x16x12xf32>
    %142 = tpu.matmul %140, %141, %cst_54 {dimension_numbers = #tpu.dot_dimension_numbers<[2], [1], [1], [2], [0, 0, 0, 1, 1, 2], [0], [0]>} : vector<1x16x16xbf16>, vector<1x16x12xbf16>, vector<1x16x12xf32> -> vector<1x16x12xf32>
    "tpu.trace_stop"() : () -> ()
    %143 = tpu.concatenate %76, %98, %120, %142 in 2 : vector<1x16x12xf32>, vector<1x16x12xf32>, vector<1x16x12xf32>, vector<1x16x12xf32> -> vector<1x16x48xf32>
    %144 = vector.shape_cast %143 : vector<1x16x48xf32> to vector<16x48xf32>
    %145 = arith.truncf %144 : vector<16x48xf32> to vector<16x48xbf16>
    %c0_55 = arith.constant 0 : index
    %c0_56 = arith.constant 0 : index
    %c0_57 = arith.constant 0 : index
    %146 = vector.load %arg10[%c0_55, %c0_56, %c0_57] : memref<2x48x48xbf16, #tpu.memory_space<vmem>>, vector<1x48x48xbf16>
    %147 = vector.shape_cast %146 : vector<1x48x48xbf16> to vector<48x48xbf16>
    %cst_58 = arith.constant dense<0.000000e+00> : vector<16x48xf32>
    %148 = tpu.matmul %145, %147, %cst_58 {dimension_numbers = #tpu.dot_dimension_numbers<[1], [0], [0], [1], [0, 0, 1, 1], [], []>} : vector<16x48xbf16>, vector<48x48xbf16>, vector<16x48xf32> -> vector<16x48xf32>
    %149 = arith.addf %9, %148 : vector<16x48xf32>
    %c0_59 = arith.constant 0 : index
    %c0_60 = arith.constant 0 : index
    %c0_61 = arith.constant 0 : index
    %150 = vector.load %arg11[%c0_59, %c0_60, %c0_61] : memref<2x1x48xf32, #tpu.memory_space<vmem>>, vector<1x1x48xf32>
    %151 = vector.shape_cast %150 : vector<1x1x48xf32> to vector<1x48xf32>
    %152 = vector.broadcast %151 : vector<1x48xf32> to vector<16x48xf32>
    %153 = arith.addf %149, %152 : vector<16x48xf32>
    %c0_62 = arith.constant 0 : index
    %c0_63 = arith.constant 0 : index
    %c0_64 = arith.constant 0 : index
    %154 = vector.load %arg12[%c0_62, %c0_63, %c0_64] : memref<2x1x48xf32, #tpu.memory_space<vmem>>, vector<1x1x48xf32>
    %155 = vector.shape_cast %154 : vector<1x1x48xf32> to vector<1x48xf32>
    %c0_65 = arith.constant 0 : index
    %c0_66 = arith.constant 0 : index
    %c0_67 = arith.constant 0 : index
    %156 = vector.load %arg13[%c0_65, %c0_66, %c0_67] : memref<2x1x48xf32, #tpu.memory_space<vmem>>, vector<1x1x48xf32>
    %157 = vector.shape_cast %156 : vector<1x1x48xf32> to vector<1x48xf32>
    %cst_68 = arith.constant dense<0.000000e+00> : vector<16xf32>
    %158 = vector.multi_reduction <add>, %153, %cst_68 [1] : vector<16x48xf32> to vector<16xf32>
    %159 = vector.shape_cast %158 : vector<16xf32> to vector<16x1xf32>
    %cst_69 = arith.constant 4.800000e+01 : f32
    %160 = vector.broadcast %cst_69 : f32 to vector<16x1xf32>
    %161 = arith.divf %159, %160 : vector<16x1xf32>
    %162 = vector.broadcast %161 : vector<16x1xf32> to vector<16x48xf32>
    %163 = arith.subf %153, %162 : vector<16x48xf32>
    %164 = arith.mulf %163, %163 : vector<16x48xf32>
    %cst_70 = arith.constant dense<0.000000e+00> : vector<16xf32>
    %165 = vector.multi_reduction <add>, %164, %cst_70 [1] : vector<16x48xf32> to vector<16xf32>
    %166 = vector.shape_cast %165 : vector<16xf32> to vector<16x1xf32>
    %cst_71 = arith.constant 4.800000e+01 : f32
    %167 = vector.broadcast %cst_71 : f32 to vector<16x1xf32>
    %168 = arith.divf %166, %167 : vector<16x1xf32>
    %169 = vector.broadcast %161 : vector<16x1xf32> to vector<16x48xf32>
    %170 = arith.subf %153, %169 : vector<16x48xf32>
    %cst_72 = arith.constant 9.99999974E-6 : f32
    %171 = vector.broadcast %cst_72 : f32 to vector<16x1xf32>
    %172 = arith.addf %168, %171 : vector<16x1xf32>
    %173 = math.rsqrt %172 : vector<16x1xf32>
    %174 = vector.broadcast %173 : vector<16x1xf32> to vector<16x48xf32>
    %175 = arith.mulf %170, %174 : vector<16x48xf32>
    %176 = vector.broadcast %155 : vector<1x48xf32> to vector<16x48xf32>
    %177 = arith.mulf %175, %176 : vector<16x48xf32>
    %178 = vector.broadcast %157 : vector<1x48xf32> to vector<16x48xf32>
    %179 = arith.addf %177, %178 : vector<16x48xf32>
    %180 = arith.truncf %179 : vector<16x48xf32> to vector<16x48xbf16>
    %c0_73 = arith.constant 0 : index
    %c0_74 = arith.constant 0 : index
    %c0_75 = arith.constant 0 : index
    %181 = vector.load %arg14[%c0_73, %c0_74, %c0_75] : memref<2x48x96xbf16, #tpu.memory_space<vmem>>, vector<1x48x96xbf16>
    %182 = vector.shape_cast %181 : vector<1x48x96xbf16> to vector<48x96xbf16>
    %cst_76 = arith.constant dense<0.000000e+00> : vector<16x96xf32>
    %183 = tpu.matmul %180, %182, %cst_76 {dimension_numbers = #tpu.dot_dimension_numbers<[1], [0], [0], [1], [0, 0, 1, 1], [], []>} : vector<16x48xbf16>, vector<48x96xbf16>, vector<16x96xf32> -> vector<16x96xf32>
    %c0_77 = arith.constant 0 : index
    %c0_78 = arith.constant 0 : index
    %c0_79 = arith.constant 0 : index
    %184 = vector.load %arg15[%c0_77, %c0_78, %c0_79] : memref<2x1x96xf32, #tpu.memory_space<vmem>>, vector<1x1x96xf32>
    %185 = vector.shape_cast %184 : vector<1x1x96xf32> to vector<1x96xf32>
    %186 = vector.broadcast %185 : vector<1x96xf32> to vector<16x96xf32>
    %187 = arith.addf %183, %186 : vector<16x96xf32>
    %188 = arith.mulf %187, %187 : vector<16x96xf32>
    %189 = arith.mulf %187, %188 : vector<16x96xf32>
    %cst_80 = arith.constant 4.471500e-02 : f32
    %190 = vector.broadcast %cst_80 : f32 to vector<16x96xf32>
    %191 = arith.mulf %190, %189 : vector<16x96xf32>
    %192 = arith.addf %187, %191 : vector<16x96xf32>
    %cst_81 = arith.constant 0.797884583 : f32
    %193 = vector.broadcast %cst_81 : f32 to vector<16x96xf32>
    %194 = arith.mulf %193, %192 : vector<16x96xf32>
    %195 = math.tanh %194 : vector<16x96xf32>
    %cst_82 = arith.constant 1.000000e+00 : f32
    %196 = vector.broadcast %cst_82 : f32 to vector<16x96xf32>
    %197 = arith.addf %196, %195 : vector<16x96xf32>
    %cst_83 = arith.constant 5.000000e-01 : f32
    %198 = vector.broadcast %cst_83 : f32 to vector<16x96xf32>
    %199 = arith.mulf %198, %197 : vector<16x96xf32>
    %200 = arith.mulf %187, %199 : vector<16x96xf32>
    %201 = arith.truncf %200 : vector<16x96xf32> to vector<16x96xbf16>
    %c0_84 = arith.constant 0 : index
    %c0_85 = arith.constant 0 : index
    %c0_86 = arith.constant 0 : index
    %202 = vector.load %arg16[%c0_84, %c0_85, %c0_86] : memref<2x96x48xbf16, #tpu.memory_space<vmem>>, vector<1x96x48xbf16>
    %203 = vector.shape_cast %202 : vector<1x96x48xbf16> to vector<96x48xbf16>
    %cst_87 = arith.constant dense<0.000000e+00> : vector<16x48xf32>
    %204 = tpu.matmul %201, %203, %cst_87 {dimension_numbers = #tpu.dot_dimension_numbers<[1], [0], [0], [1], [0, 0, 1, 1], [], []>} : vector<16x96xbf16>, vector<96x48xbf16>, vector<16x48xf32> -> vector<16x48xf32>
    %205 = arith.addf %153, %204 : vector<16x48xf32>
    %c0_88 = arith.constant 0 : index
    %c0_89 = arith.constant 0 : index
    %c0_90 = arith.constant 0 : index
    %206 = vector.load %arg17[%c0_88, %c0_89, %c0_90] : memref<2x1x48xf32, #tpu.memory_space<vmem>>, vector<1x1x48xf32>
    %207 = vector.shape_cast %206 : vector<1x1x48xf32> to vector<1x48xf32>
    %208 = vector.broadcast %207 : vector<1x48xf32> to vector<16x48xf32>
    %209 = arith.addf %205, %208 : vector<16x48xf32>
    %c1 = arith.constant 1 : index
    %c0_91 = arith.constant 0 : index
    %c0_92 = arith.constant 0 : index
    %210 = vector.load %arg5[%c1, %c0_91, %c0_92] : memref<2x1x48xf32, #tpu.memory_space<vmem>>, vector<1x1x48xf32>
    %211 = vector.shape_cast %210 : vector<1x1x48xf32> to vector<1x48xf32>
    %c1_93 = arith.constant 1 : index
    %c0_94 = arith.constant 0 : index
    %c0_95 = arith.constant 0 : index
    %212 = vector.load %arg6[%c1_93, %c0_94, %c0_95] : memref<2x1x48xf32, #tpu.memory_space<vmem>>, vector<1x1x48xf32>
    %213 = vector.shape_cast %212 : vector<1x1x48xf32> to vector<1x48xf32>
    %cst_96 = arith.constant dense<0.000000e+00> : vector<16xf32>
    %214 = vector.multi_reduction <add>, %209, %cst_96 [1] : vector<16x48xf32> to vector<16xf32>
    %215 = vector.shape_cast %214 : vector<16xf32> to vector<16x1xf32>
    %cst_97 = arith.constant 4.800000e+01 : f32
    %216 = vector.broadcast %cst_97 : f32 to vector<16x1xf32>
    %217 = arith.divf %215, %216 : vector<16x1xf32>
    %218 = vector.broadcast %217 : vector<16x1xf32> to vector<16x48xf32>
    %219 = arith.subf %209, %218 : vector<16x48xf32>
    %220 = arith.mulf %219, %219 : vector<16x48xf32>
    %cst_98 = arith.constant dense<0.000000e+00> : vector<16xf32>
    %221 = vector.multi_reduction <add>, %220, %cst_98 [1] : vector<16x48xf32> to vector<16xf32>
    %222 = vector.shape_cast %221 : vector<16xf32> to vector<16x1xf32>
    %cst_99 = arith.constant 4.800000e+01 : f32
    %223 = vector.broadcast %cst_99 : f32 to vector<16x1xf32>
    %224 = arith.divf %222, %223 : vector<16x1xf32>
    %225 = vector.broadcast %217 : vector<16x1xf32> to vector<16x48xf32>
    %226 = arith.subf %209, %225 : vector<16x48xf32>
    %cst_100 = arith.constant 9.99999974E-6 : f32
    %227 = vector.broadcast %cst_100 : f32 to vector<16x1xf32>
    %228 = arith.addf %224, %227 : vector<16x1xf32>
    %229 = math.rsqrt %228 : vector<16x1xf32>
    %230 = vector.broadcast %229 : vector<16x1xf32> to vector<16x48xf32>
    %231 = arith.mulf %226, %230 : vector<16x48xf32>
    %232 = vector.broadcast %211 : vector<1x48xf32> to vector<16x48xf32>
    %233 = arith.mulf %231, %232 : vector<16x48xf32>
    %234 = vector.broadcast %213 : vector<1x48xf32> to vector<16x48xf32>
    %235 = arith.addf %233, %234 : vector<16x48xf32>
    %236 = arith.truncf %235 : vector<16x48xf32> to vector<16x48xbf16>
    %c1_101 = arith.constant 1 : index
    %c0_102 = arith.constant 0 : index
    %c0_103 = arith.constant 0 : index
    %237 = vector.load %arg7[%c1_101, %c0_102, %c0_103] : memref<2x48x48xbf16, #tpu.memory_space<vmem>>, vector<1x48x48xbf16>
    %238 = vector.shape_cast %237 : vector<1x48x48xbf16> to vector<48x48xbf16>
    %cst_104 = arith.constant dense<0.000000e+00> : vector<16x48xf32>
    %239 = tpu.matmul %236, %238, %cst_104 {dimension_numbers = #tpu.dot_dimension_numbers<[1], [0], [0], [1], [0, 0, 1, 1], [], []>} : vector<16x48xbf16>, vector<48x48xbf16>, vector<16x48xf32> -> vector<16x48xf32>
    %c1_105 = arith.constant 1 : index
    %c0_106 = arith.constant 0 : index
    %c0_107 = arith.constant 0 : index
    %240 = vector.load %arg8[%c1_105, %c0_106, %c0_107] : memref<2x48x48xbf16, #tpu.memory_space<vmem>>, vector<1x48x48xbf16>
    %241 = vector.shape_cast %240 : vector<1x48x48xbf16> to vector<48x48xbf16>
    %cst_108 = arith.constant dense<0.000000e+00> : vector<16x48xf32>
    %242 = tpu.matmul %236, %241, %cst_108 {dimension_numbers = #tpu.dot_dimension_numbers<[1], [0], [0], [1], [0, 0, 1, 1], [], []>} : vector<16x48xbf16>, vector<48x48xbf16>, vector<16x48xf32> -> vector<16x48xf32>
    %c1_109 = arith.constant 1 : index
    %c0_110 = arith.constant 0 : index
    %c0_111 = arith.constant 0 : index
    %243 = vector.load %arg9[%c1_109, %c0_110, %c0_111] : memref<2x48x48xbf16, #tpu.memory_space<vmem>>, vector<1x48x48xbf16>
    %244 = vector.shape_cast %243 : vector<1x48x48xbf16> to vector<48x48xbf16>
    %cst_112 = arith.constant dense<0.000000e+00> : vector<16x48xf32>
    %245 = tpu.matmul %236, %244, %cst_112 {dimension_numbers = #tpu.dot_dimension_numbers<[1], [0], [0], [1], [0, 0, 1, 1], [], []>} : vector<16x48xbf16>, vector<48x48xbf16>, vector<16x48xf32> -> vector<16x48xf32>
    %246 = arith.truncf %239 : vector<16x48xf32> to vector<16x48xbf16>
    %247 = vector.shape_cast %246 : vector<16x48xbf16> to vector<1x16x48xbf16>
    %248 = arith.truncf %242 : vector<16x48xf32> to vector<16x48xbf16>
    %249 = vector.shape_cast %248 : vector<16x48xbf16> to vector<1x16x48xbf16>
    %250 = arith.truncf %245 : vector<16x48xf32> to vector<16x48xbf16>
    %251 = vector.shape_cast %250 : vector<16x48xbf16> to vector<1x16x48xbf16>
    %252 = vector.extract_strided_slice %247 {offsets = [0, 0, 0], sizes = [1, 16, 12], strides = [1, 1, 1]} : vector<1x16x48xbf16> to vector<1x16x12xbf16>
    %253 = vector.extract_strided_slice %249 {offsets = [0, 0, 0], sizes = [1, 16, 12], strides = [1, 1, 1]} : vector<1x16x48xbf16> to vector<1x16x12xbf16>
    "tpu.trace_start"() <{level = 10 : i32, message = "bqd,bkd->bqk"}> : () -> ()
    %cst_113 = arith.constant dense<0.000000e+00> : vector<1x16x16xf32>
    %254 = tpu.matmul %252, %253, %cst_113 {dimension_numbers = #tpu.dot_dimension_numbers<[2], [2], [1], [1], [0, 0, 0, 1, 1, 1], [0], [0]>} : vector<1x16x12xbf16>, vector<1x16x12xbf16>, vector<1x16x16xf32> -> vector<1x16x16xf32>
    "tpu.trace_stop"() : () -> ()
    %cst_114 = arith.constant 0.288675129 : f32
    %255 = vector.broadcast %cst_114 : f32 to vector<1x16x16xf32>
    %256 = arith.mulf %254, %255 : vector<1x16x16xf32>
    %cst_115 = arith.constant -1.000000e+30 : f32
    %257 = vector.shape_cast %12 : vector<1x1x16xi1> to vector<1x1x16xi1>
    %258 = vector.broadcast %257 : vector<1x1x16xi1> to vector<1x16x16xi1>
    %259 = vector.broadcast %cst_115 : f32 to vector<1x16x16xf32>
    %260 = arith.select %258, %256, %259 : vector<1x16x16xi1>, vector<1x16x16xf32>
    %cst_116 = arith.constant dense<0xFF800000> : vector<1x16xf32>
    %261 = vector.multi_reduction <maximumf>, %260, %cst_116 [2] : vector<1x16x16xf32> to vector<1x16xf32>
    %262 = vector.shape_cast %261 : vector<1x16xf32> to vector<1x16x1xf32>
    %263 = vector.broadcast %262 : vector<1x16x1xf32> to vector<1x16x16xf32>
    %264 = arith.subf %260, %263 : vector<1x16x16xf32>
    %265 = math.exp %264 : vector<1x16x16xf32>
    %cst_117 = arith.constant dense<0.000000e+00> : vector<1x16xf32>
    %266 = vector.multi_reduction <add>, %265, %cst_117 [2] : vector<1x16x16xf32> to vector<1x16xf32>
    %267 = vector.shape_cast %266 : vector<1x16xf32> to vector<1x16x1xf32>
    %268 = tpu.reciprocal %267 {approx = true} : vector<1x16x1xf32> -> vector<1x16x1xf32>
    %269 = vector.broadcast %268 : vector<1x16x1xf32> to vector<1x16x16xf32>
    %270 = arith.mulf %265, %269 : vector<1x16x16xf32>
    %271 = arith.truncf %270 : vector<1x16x16xf32> to vector<1x16x16xbf16>
    %272 = vector.extract_strided_slice %251 {offsets = [0, 0, 0], sizes = [1, 16, 12], strides = [1, 1, 1]} : vector<1x16x48xbf16> to vector<1x16x12xbf16>
    "tpu.trace_start"() <{level = 10 : i32, message = "bqk,bkd->bqd"}> : () -> ()
    %cst_118 = arith.constant dense<0.000000e+00> : vector<1x16x12xf32>
    %273 = tpu.matmul %271, %272, %cst_118 {dimension_numbers = #tpu.dot_dimension_numbers<[2], [1], [1], [2], [0, 0, 0, 1, 1, 2], [0], [0]>} : vector<1x16x16xbf16>, vector<1x16x12xbf16>, vector<1x16x12xf32> -> vector<1x16x12xf32>
    "tpu.trace_stop"() : () -> ()
    %274 = vector.extract_strided_slice %247 {offsets = [0, 0, 12], sizes = [1, 16, 12], strides = [1, 1, 1]} : vector<1x16x48xbf16> to vector<1x16x12xbf16>
    %275 = vector.extract_strided_slice %249 {offsets = [0, 0, 12], sizes = [1, 16, 12], strides = [1, 1, 1]} : vector<1x16x48xbf16> to vector<1x16x12xbf16>
    "tpu.trace_start"() <{level = 10 : i32, message = "bqd,bkd->bqk"}> : () -> ()
    %cst_119 = arith.constant dense<0.000000e+00> : vector<1x16x16xf32>
    %276 = tpu.matmul %274, %275, %cst_119 {dimension_numbers = #tpu.dot_dimension_numbers<[2], [2], [1], [1], [0, 0, 0, 1, 1, 1], [0], [0]>} : vector<1x16x12xbf16>, vector<1x16x12xbf16>, vector<1x16x16xf32> -> vector<1x16x16xf32>
    "tpu.trace_stop"() : () -> ()
    %cst_120 = arith.constant 0.288675129 : f32
    %277 = vector.broadcast %cst_120 : f32 to vector<1x16x16xf32>
    %278 = arith.mulf %276, %277 : vector<1x16x16xf32>
    %cst_121 = arith.constant -1.000000e+30 : f32
    %279 = vector.shape_cast %12 : vector<1x1x16xi1> to vector<1x1x16xi1>
    %280 = vector.broadcast %279 : vector<1x1x16xi1> to vector<1x16x16xi1>
    %281 = vector.broadcast %cst_121 : f32 to vector<1x16x16xf32>
    %282 = arith.select %280, %278, %281 : vector<1x16x16xi1>, vector<1x16x16xf32>
    %cst_122 = arith.constant dense<0xFF800000> : vector<1x16xf32>
    %283 = vector.multi_reduction <maximumf>, %282, %cst_122 [2] : vector<1x16x16xf32> to vector<1x16xf32>
    %284 = vector.shape_cast %283 : vector<1x16xf32> to vector<1x16x1xf32>
    %285 = vector.broadcast %284 : vector<1x16x1xf32> to vector<1x16x16xf32>
    %286 = arith.subf %282, %285 : vector<1x16x16xf32>
    %287 = math.exp %286 : vector<1x16x16xf32>
    %cst_123 = arith.constant dense<0.000000e+00> : vector<1x16xf32>
    %288 = vector.multi_reduction <add>, %287, %cst_123 [2] : vector<1x16x16xf32> to vector<1x16xf32>
    %289 = vector.shape_cast %288 : vector<1x16xf32> to vector<1x16x1xf32>
    %290 = tpu.reciprocal %289 {approx = true} : vector<1x16x1xf32> -> vector<1x16x1xf32>
    %291 = vector.broadcast %290 : vector<1x16x1xf32> to vector<1x16x16xf32>
    %292 = arith.mulf %287, %291 : vector<1x16x16xf32>
    %293 = arith.truncf %292 : vector<1x16x16xf32> to vector<1x16x16xbf16>
    %294 = vector.extract_strided_slice %251 {offsets = [0, 0, 12], sizes = [1, 16, 12], strides = [1, 1, 1]} : vector<1x16x48xbf16> to vector<1x16x12xbf16>
    "tpu.trace_start"() <{level = 10 : i32, message = "bqk,bkd->bqd"}> : () -> ()
    %cst_124 = arith.constant dense<0.000000e+00> : vector<1x16x12xf32>
    %295 = tpu.matmul %293, %294, %cst_124 {dimension_numbers = #tpu.dot_dimension_numbers<[2], [1], [1], [2], [0, 0, 0, 1, 1, 2], [0], [0]>} : vector<1x16x16xbf16>, vector<1x16x12xbf16>, vector<1x16x12xf32> -> vector<1x16x12xf32>
    "tpu.trace_stop"() : () -> ()
    %296 = vector.extract_strided_slice %247 {offsets = [0, 0, 24], sizes = [1, 16, 12], strides = [1, 1, 1]} : vector<1x16x48xbf16> to vector<1x16x12xbf16>
    %297 = vector.extract_strided_slice %249 {offsets = [0, 0, 24], sizes = [1, 16, 12], strides = [1, 1, 1]} : vector<1x16x48xbf16> to vector<1x16x12xbf16>
    "tpu.trace_start"() <{level = 10 : i32, message = "bqd,bkd->bqk"}> : () -> ()
    %cst_125 = arith.constant dense<0.000000e+00> : vector<1x16x16xf32>
    %298 = tpu.matmul %296, %297, %cst_125 {dimension_numbers = #tpu.dot_dimension_numbers<[2], [2], [1], [1], [0, 0, 0, 1, 1, 1], [0], [0]>} : vector<1x16x12xbf16>, vector<1x16x12xbf16>, vector<1x16x16xf32> -> vector<1x16x16xf32>
    "tpu.trace_stop"() : () -> ()
    %cst_126 = arith.constant 0.288675129 : f32
    %299 = vector.broadcast %cst_126 : f32 to vector<1x16x16xf32>
    %300 = arith.mulf %298, %299 : vector<1x16x16xf32>
    %cst_127 = arith.constant -1.000000e+30 : f32
    %301 = vector.shape_cast %12 : vector<1x1x16xi1> to vector<1x1x16xi1>
    %302 = vector.broadcast %301 : vector<1x1x16xi1> to vector<1x16x16xi1>
    %303 = vector.broadcast %cst_127 : f32 to vector<1x16x16xf32>
    %304 = arith.select %302, %300, %303 : vector<1x16x16xi1>, vector<1x16x16xf32>
    %cst_128 = arith.constant dense<0xFF800000> : vector<1x16xf32>
    %305 = vector.multi_reduction <maximumf>, %304, %cst_128 [2] : vector<1x16x16xf32> to vector<1x16xf32>
    %306 = vector.shape_cast %305 : vector<1x16xf32> to vector<1x16x1xf32>
    %307 = vector.broadcast %306 : vector<1x16x1xf32> to vector<1x16x16xf32>
    %308 = arith.subf %304, %307 : vector<1x16x16xf32>
    %309 = math.exp %308 : vector<1x16x16xf32>
    %cst_129 = arith.constant dense<0.000000e+00> : vector<1x16xf32>
    %310 = vector.multi_reduction <add>, %309, %cst_129 [2] : vector<1x16x16xf32> to vector<1x16xf32>
    %311 = vector.shape_cast %310 : vector<1x16xf32> to vector<1x16x1xf32>
    %312 = tpu.reciprocal %311 {approx = true} : vector<1x16x1xf32> -> vector<1x16x1xf32>
    %313 = vector.broadcast %312 : vector<1x16x1xf32> to vector<1x16x16xf32>
    %314 = arith.mulf %309, %313 : vector<1x16x16xf32>
    %315 = arith.truncf %314 : vector<1x16x16xf32> to vector<1x16x16xbf16>
    %316 = vector.extract_strided_slice %251 {offsets = [0, 0, 24], sizes = [1, 16, 12], strides = [1, 1, 1]} : vector<1x16x48xbf16> to vector<1x16x12xbf16>
    "tpu.trace_start"() <{level = 10 : i32, message = "bqk,bkd->bqd"}> : () -> ()
    %cst_130 = arith.constant dense<0.000000e+00> : vector<1x16x12xf32>
    %317 = tpu.matmul %315, %316, %cst_130 {dimension_numbers = #tpu.dot_dimension_numbers<[2], [1], [1], [2], [0, 0, 0, 1, 1, 2], [0], [0]>} : vector<1x16x16xbf16>, vector<1x16x12xbf16>, vector<1x16x12xf32> -> vector<1x16x12xf32>
    "tpu.trace_stop"() : () -> ()
    %318 = vector.extract_strided_slice %247 {offsets = [0, 0, 36], sizes = [1, 16, 12], strides = [1, 1, 1]} : vector<1x16x48xbf16> to vector<1x16x12xbf16>
    %319 = vector.extract_strided_slice %249 {offsets = [0, 0, 36], sizes = [1, 16, 12], strides = [1, 1, 1]} : vector<1x16x48xbf16> to vector<1x16x12xbf16>
    "tpu.trace_start"() <{level = 10 : i32, message = "bqd,bkd->bqk"}> : () -> ()
    %cst_131 = arith.constant dense<0.000000e+00> : vector<1x16x16xf32>
    %320 = tpu.matmul %318, %319, %cst_131 {dimension_numbers = #tpu.dot_dimension_numbers<[2], [2], [1], [1], [0, 0, 0, 1, 1, 1], [0], [0]>} : vector<1x16x12xbf16>, vector<1x16x12xbf16>, vector<1x16x16xf32> -> vector<1x16x16xf32>
    "tpu.trace_stop"() : () -> ()
    %cst_132 = arith.constant 0.288675129 : f32
    %321 = vector.broadcast %cst_132 : f32 to vector<1x16x16xf32>
    %322 = arith.mulf %320, %321 : vector<1x16x16xf32>
    %cst_133 = arith.constant -1.000000e+30 : f32
    %323 = vector.shape_cast %12 : vector<1x1x16xi1> to vector<1x1x16xi1>
    %324 = vector.broadcast %323 : vector<1x1x16xi1> to vector<1x16x16xi1>
    %325 = vector.broadcast %cst_133 : f32 to vector<1x16x16xf32>
    %326 = arith.select %324, %322, %325 : vector<1x16x16xi1>, vector<1x16x16xf32>
    %cst_134 = arith.constant dense<0xFF800000> : vector<1x16xf32>
    %327 = vector.multi_reduction <maximumf>, %326, %cst_134 [2] : vector<1x16x16xf32> to vector<1x16xf32>
    %328 = vector.shape_cast %327 : vector<1x16xf32> to vector<1x16x1xf32>
    %329 = vector.broadcast %328 : vector<1x16x1xf32> to vector<1x16x16xf32>
    %330 = arith.subf %326, %329 : vector<1x16x16xf32>
    %331 = math.exp %330 : vector<1x16x16xf32>
    %cst_135 = arith.constant dense<0.000000e+00> : vector<1x16xf32>
    %332 = vector.multi_reduction <add>, %331, %cst_135 [2] : vector<1x16x16xf32> to vector<1x16xf32>
    %333 = vector.shape_cast %332 : vector<1x16xf32> to vector<1x16x1xf32>
    %334 = tpu.reciprocal %333 {approx = true} : vector<1x16x1xf32> -> vector<1x16x1xf32>
    %335 = vector.broadcast %334 : vector<1x16x1xf32> to vector<1x16x16xf32>
    %336 = arith.mulf %331, %335 : vector<1x16x16xf32>
    %337 = arith.truncf %336 : vector<1x16x16xf32> to vector<1x16x16xbf16>
    %338 = vector.extract_strided_slice %251 {offsets = [0, 0, 36], sizes = [1, 16, 12], strides = [1, 1, 1]} : vector<1x16x48xbf16> to vector<1x16x12xbf16>
    "tpu.trace_start"() <{level = 10 : i32, message = "bqk,bkd->bqd"}> : () -> ()
    %cst_136 = arith.constant dense<0.000000e+00> : vector<1x16x12xf32>
    %339 = tpu.matmul %337, %338, %cst_136 {dimension_numbers = #tpu.dot_dimension_numbers<[2], [1], [1], [2], [0, 0, 0, 1, 1, 2], [0], [0]>} : vector<1x16x16xbf16>, vector<1x16x12xbf16>, vector<1x16x12xf32> -> vector<1x16x12xf32>
    "tpu.trace_stop"() : () -> ()
    %340 = tpu.concatenate %273, %295, %317, %339 in 2 : vector<1x16x12xf32>, vector<1x16x12xf32>, vector<1x16x12xf32>, vector<1x16x12xf32> -> vector<1x16x48xf32>
    %341 = vector.shape_cast %340 : vector<1x16x48xf32> to vector<16x48xf32>
    %342 = arith.truncf %341 : vector<16x48xf32> to vector<16x48xbf16>
    %c1_137 = arith.constant 1 : index
    %c0_138 = arith.constant 0 : index
    %c0_139 = arith.constant 0 : index
    %343 = vector.load %arg10[%c1_137, %c0_138, %c0_139] : memref<2x48x48xbf16, #tpu.memory_space<vmem>>, vector<1x48x48xbf16>
    %344 = vector.shape_cast %343 : vector<1x48x48xbf16> to vector<48x48xbf16>
    %cst_140 = arith.constant dense<0.000000e+00> : vector<16x48xf32>
    %345 = tpu.matmul %342, %344, %cst_140 {dimension_numbers = #tpu.dot_dimension_numbers<[1], [0], [0], [1], [0, 0, 1, 1], [], []>} : vector<16x48xbf16>, vector<48x48xbf16>, vector<16x48xf32> -> vector<16x48xf32>
    %346 = arith.addf %209, %345 : vector<16x48xf32>
    %c1_141 = arith.constant 1 : index
    %c0_142 = arith.constant 0 : index
    %c0_143 = arith.constant 0 : index
    %347 = vector.load %arg11[%c1_141, %c0_142, %c0_143] : memref<2x1x48xf32, #tpu.memory_space<vmem>>, vector<1x1x48xf32>
    %348 = vector.shape_cast %347 : vector<1x1x48xf32> to vector<1x48xf32>
    %349 = vector.broadcast %348 : vector<1x48xf32> to vector<16x48xf32>
    %350 = arith.addf %346, %349 : vector<16x48xf32>
    %c1_144 = arith.constant 1 : index
    %c0_145 = arith.constant 0 : index
    %c0_146 = arith.constant 0 : index
    %351 = vector.load %arg12[%c1_144, %c0_145, %c0_146] : memref<2x1x48xf32, #tpu.memory_space<vmem>>, vector<1x1x48xf32>
    %352 = vector.shape_cast %351 : vector<1x1x48xf32> to vector<1x48xf32>
    %c1_147 = arith.constant 1 : index
    %c0_148 = arith.constant 0 : index
    %c0_149 = arith.constant 0 : index
    %353 = vector.load %arg13[%c1_147, %c0_148, %c0_149] : memref<2x1x48xf32, #tpu.memory_space<vmem>>, vector<1x1x48xf32>
    %354 = vector.shape_cast %353 : vector<1x1x48xf32> to vector<1x48xf32>
    %cst_150 = arith.constant dense<0.000000e+00> : vector<16xf32>
    %355 = vector.multi_reduction <add>, %350, %cst_150 [1] : vector<16x48xf32> to vector<16xf32>
    %356 = vector.shape_cast %355 : vector<16xf32> to vector<16x1xf32>
    %cst_151 = arith.constant 4.800000e+01 : f32
    %357 = vector.broadcast %cst_151 : f32 to vector<16x1xf32>
    %358 = arith.divf %356, %357 : vector<16x1xf32>
    %359 = vector.broadcast %358 : vector<16x1xf32> to vector<16x48xf32>
    %360 = arith.subf %350, %359 : vector<16x48xf32>
    %361 = arith.mulf %360, %360 : vector<16x48xf32>
    %cst_152 = arith.constant dense<0.000000e+00> : vector<16xf32>
    %362 = vector.multi_reduction <add>, %361, %cst_152 [1] : vector<16x48xf32> to vector<16xf32>
    %363 = vector.shape_cast %362 : vector<16xf32> to vector<16x1xf32>
    %cst_153 = arith.constant 4.800000e+01 : f32
    %364 = vector.broadcast %cst_153 : f32 to vector<16x1xf32>
    %365 = arith.divf %363, %364 : vector<16x1xf32>
    %366 = vector.broadcast %358 : vector<16x1xf32> to vector<16x48xf32>
    %367 = arith.subf %350, %366 : vector<16x48xf32>
    %cst_154 = arith.constant 9.99999974E-6 : f32
    %368 = vector.broadcast %cst_154 : f32 to vector<16x1xf32>
    %369 = arith.addf %365, %368 : vector<16x1xf32>
    %370 = math.rsqrt %369 : vector<16x1xf32>
    %371 = vector.broadcast %370 : vector<16x1xf32> to vector<16x48xf32>
    %372 = arith.mulf %367, %371 : vector<16x48xf32>
    %373 = vector.broadcast %352 : vector<1x48xf32> to vector<16x48xf32>
    %374 = arith.mulf %372, %373 : vector<16x48xf32>
    %375 = vector.broadcast %354 : vector<1x48xf32> to vector<16x48xf32>
    %376 = arith.addf %374, %375 : vector<16x48xf32>
    %377 = arith.truncf %376 : vector<16x48xf32> to vector<16x48xbf16>
    %c1_155 = arith.constant 1 : index
    %c0_156 = arith.constant 0 : index
    %c0_157 = arith.constant 0 : index
    %378 = vector.load %arg14[%c1_155, %c0_156, %c0_157] : memref<2x48x96xbf16, #tpu.memory_space<vmem>>, vector<1x48x96xbf16>
    %379 = vector.shape_cast %378 : vector<1x48x96xbf16> to vector<48x96xbf16>
    %cst_158 = arith.constant dense<0.000000e+00> : vector<16x96xf32>
    %380 = tpu.matmul %377, %379, %cst_158 {dimension_numbers = #tpu.dot_dimension_numbers<[1], [0], [0], [1], [0, 0, 1, 1], [], []>} : vector<16x48xbf16>, vector<48x96xbf16>, vector<16x96xf32> -> vector<16x96xf32>
    %c1_159 = arith.constant 1 : index
    %c0_160 = arith.constant 0 : index
    %c0_161 = arith.constant 0 : index
    %381 = vector.load %arg15[%c1_159, %c0_160, %c0_161] : memref<2x1x96xf32, #tpu.memory_space<vmem>>, vector<1x1x96xf32>
    %382 = vector.shape_cast %381 : vector<1x1x96xf32> to vector<1x96xf32>
    %383 = vector.broadcast %382 : vector<1x96xf32> to vector<16x96xf32>
    %384 = arith.addf %380, %383 : vector<16x96xf32>
    %385 = arith.mulf %384, %384 : vector<16x96xf32>
    %386 = arith.mulf %384, %385 : vector<16x96xf32>
    %cst_162 = arith.constant 4.471500e-02 : f32
    %387 = vector.broadcast %cst_162 : f32 to vector<16x96xf32>
    %388 = arith.mulf %387, %386 : vector<16x96xf32>
    %389 = arith.addf %384, %388 : vector<16x96xf32>
    %cst_163 = arith.constant 0.797884583 : f32
    %390 = vector.broadcast %cst_163 : f32 to vector<16x96xf32>
    %391 = arith.mulf %390, %389 : vector<16x96xf32>
    %392 = math.tanh %391 : vector<16x96xf32>
    %cst_164 = arith.constant 1.000000e+00 : f32
    %393 = vector.broadcast %cst_164 : f32 to vector<16x96xf32>
    %394 = arith.addf %393, %392 : vector<16x96xf32>
    %cst_165 = arith.constant 5.000000e-01 : f32
    %395 = vector.broadcast %cst_165 : f32 to vector<16x96xf32>
    %396 = arith.mulf %395, %394 : vector<16x96xf32>
    %397 = arith.mulf %384, %396 : vector<16x96xf32>
    %398 = arith.truncf %397 : vector<16x96xf32> to vector<16x96xbf16>
    %c1_166 = arith.constant 1 : index
    %c0_167 = arith.constant 0 : index
    %c0_168 = arith.constant 0 : index
    %399 = vector.load %arg16[%c1_166, %c0_167, %c0_168] : memref<2x96x48xbf16, #tpu.memory_space<vmem>>, vector<1x96x48xbf16>
    %400 = vector.shape_cast %399 : vector<1x96x48xbf16> to vector<96x48xbf16>
    %cst_169 = arith.constant dense<0.000000e+00> : vector<16x48xf32>
    %401 = tpu.matmul %398, %400, %cst_169 {dimension_numbers = #tpu.dot_dimension_numbers<[1], [0], [0], [1], [0, 0, 1, 1], [], []>} : vector<16x96xbf16>, vector<96x48xbf16>, vector<16x48xf32> -> vector<16x48xf32>
    %402 = arith.addf %350, %401 : vector<16x48xf32>
    %c1_170 = arith.constant 1 : index
    %c0_171 = arith.constant 0 : index
    %c0_172 = arith.constant 0 : index
    %403 = vector.load %arg17[%c1_170, %c0_171, %c0_172] : memref<2x1x48xf32, #tpu.memory_space<vmem>>, vector<1x1x48xf32>
    %404 = vector.shape_cast %403 : vector<1x1x48xf32> to vector<1x48xf32>
    %405 = vector.broadcast %404 : vector<1x48xf32> to vector<16x48xf32>
    %406 = arith.addf %402, %405 : vector<16x48xf32>
    %c0_173 = arith.constant 0 : index
    %c0_174 = arith.constant 0 : index
    %407 = vector.load %arg18[%c0_173, %c0_174] : memref<1x48xf32, #tpu.memory_space<vmem>>, vector<1x48xf32>
    %c0_175 = arith.constant 0 : index
    %c0_176 = arith.constant 0 : index
    %408 = vector.load %arg19[%c0_175, %c0_176] : memref<1x48xf32, #tpu.memory_space<vmem>>, vector<1x48xf32>
    %cst_177 = arith.constant dense<0.000000e+00> : vector<16xf32>
    %409 = vector.multi_reduction <add>, %406, %cst_177 [1] : vector<16x48xf32> to vector<16xf32>
    %410 = vector.shape_cast %409 : vector<16xf32> to vector<16x1xf32>
    %cst_178 = arith.constant 4.800000e+01 : f32
    %411 = vector.broadcast %cst_178 : f32 to vector<16x1xf32>
    %412 = arith.divf %410, %411 : vector<16x1xf32>
    %413 = vector.broadcast %412 : vector<16x1xf32> to vector<16x48xf32>
    %414 = arith.subf %406, %413 : vector<16x48xf32>
    %415 = arith.mulf %414, %414 : vector<16x48xf32>
    %cst_179 = arith.constant dense<0.000000e+00> : vector<16xf32>
    %416 = vector.multi_reduction <add>, %415, %cst_179 [1] : vector<16x48xf32> to vector<16xf32>
    %417 = vector.shape_cast %416 : vector<16xf32> to vector<16x1xf32>
    %cst_180 = arith.constant 4.800000e+01 : f32
    %418 = vector.broadcast %cst_180 : f32 to vector<16x1xf32>
    %419 = arith.divf %417, %418 : vector<16x1xf32>
    %420 = vector.broadcast %412 : vector<16x1xf32> to vector<16x48xf32>
    %421 = arith.subf %406, %420 : vector<16x48xf32>
    %cst_181 = arith.constant 9.99999974E-6 : f32
    %422 = vector.broadcast %cst_181 : f32 to vector<16x1xf32>
    %423 = arith.addf %419, %422 : vector<16x1xf32>
    %424 = math.rsqrt %423 : vector<16x1xf32>
    %425 = vector.broadcast %424 : vector<16x1xf32> to vector<16x48xf32>
    %426 = arith.mulf %421, %425 : vector<16x48xf32>
    %427 = vector.broadcast %407 : vector<1x48xf32> to vector<16x48xf32>
    %428 = arith.mulf %426, %427 : vector<16x48xf32>
    %429 = vector.broadcast %408 : vector<1x48xf32> to vector<16x48xf32>
    %430 = arith.addf %428, %429 : vector<16x48xf32>
    %431 = arith.truncf %430 : vector<16x48xf32> to vector<16x48xbf16>
    %c0_182 = arith.constant 0 : index
    %c0_183 = arith.constant 0 : index
    %432 = vector.load %arg20[%c0_182, %c0_183] : memref<48x4xbf16, #tpu.memory_space<vmem>>, vector<48x4xbf16>
    %cst_184 = arith.constant dense<0.000000e+00> : vector<16x4xf32>
    %433 = tpu.matmul %431, %432, %cst_184 {dimension_numbers = #tpu.dot_dimension_numbers<[1], [0], [0], [1], [0, 0, 1, 1], [], []>} : vector<16x48xbf16>, vector<48x4xbf16>, vector<16x4xf32> -> vector<16x4xf32>
    %c0_185 = arith.constant 0 : index
    %c0_186 = arith.constant 0 : index
    %434 = vector.load %arg21[%c0_185, %c0_186] : memref<1x4xf32, #tpu.memory_space<vmem>>, vector<1x4xf32>
    %435 = vector.broadcast %434 : vector<1x4xf32> to vector<16x4xf32>
    %436 = arith.addf %433, %435 : vector<16x4xf32>
    %437 = vector.shape_cast %436 : vector<16x4xf32> to vector<1x16x4xf32>
    %438 = vector.extract_strided_slice %437 {offsets = [0, 8, 0], sizes = [1, 1, 4], strides = [1, 1, 1]} : vector<1x16x4xf32> to vector<1x1x4xf32>
    %439 = vector.shape_cast %438 : vector<1x1x4xf32> to vector<1x4xf32>
    %440 = math.tanh %439 : vector<1x4xf32>
    %441 = vector.shape_cast %440 : vector<1x4xf32> to vector<1x1x4xf32>
    %c0_187 = arith.constant 0 : index
    %c0_188 = arith.constant 0 : index
    %c0_189 = arith.constant 0 : index
    %442 = vector.load %arg22[%c0_187, %c0_188, %c0_189] : memref<1x1x4xf32, #tpu.memory_space<vmem>>, vector<1x1x4xf32>
    tpu.vector_store %arg22[%c0_187, %c0_188, %c0_189], %441 {strides = array<i32>} : memref<1x1x4xf32, #tpu.memory_space<vmem>>, vector<1x1x4xf32>,
    return
  }
  func.func @transform_0(%arg0: i32) -> (i32, i32) {
    %c0_i32 = arith.constant 0 : i32
    %c0_i32_0 = arith.constant 0 : i32
    return %arg0, %c0_i32 : i32, i32
  }
  func.func @transform_1(%arg0: i32) -> (i32, i32) {
    %c0_i32 = arith.constant 0 : i32
    %c0_i32_0 = arith.constant 0 : i32
    %c0_i32_1 = arith.constant 0 : i32
    return %c0_i32, %c0_i32_0 : i32, i32
  }
  func.func @transform_2(%arg0: i32) -> (i32, i32) {
    %c0_i32 = arith.constant 0 : i32
    %c0_i32_0 = arith.constant 0 : i32
    %c0_i32_1 = arith.constant 0 : i32
    return %c0_i32, %c0_i32_0 : i32, i32
  }
  func.func @transform_3(%arg0: i32) -> (i32, i32) {
    %c0_i32 = arith.constant 0 : i32
    %c0_i32_0 = arith.constant 0 : i32
    %c0_i32_1 = arith.constant 0 : i32
    return %c0_i32, %c0_i32_0 : i32, i32
  }
  func.func @transform_4(%arg0: i32) -> (i32, i32, i32) {
    %c0_i32 = arith.constant 0 : i32
    %c0_i32_0 = arith.constant 0 : i32
    %c0_i32_1 = arith.constant 0 : i32
    %c0_i32_2 = arith.constant 0 : i32
    return %c0_i32, %c0_i32_0, %c0_i32_1 : i32, i32, i32
  }
  func.func @transform_5(%arg0: i32) -> (i32, i32, i32) {
    %c0_i32 = arith.constant 0 : i32
    %c0_i32_0 = arith.constant 0 : i32
    %c0_i32_1 = arith.constant 0 : i32
    %c0_i32_2 = arith.constant 0 : i32
    return %c0_i32, %c0_i32_0, %c0_i32_1 : i32, i32, i32
  }
  func.func @transform_6(%arg0: i32) -> (i32, i32, i32) {
    %c0_i32 = arith.constant 0 : i32
    %c0_i32_0 = arith.constant 0 : i32
    %c0_i32_1 = arith.constant 0 : i32
    %c0_i32_2 = arith.constant 0 : i32
    return %c0_i32, %c0_i32_0, %c0_i32_1 : i32, i32, i32
  }
  func.func @transform_7(%arg0: i32) -> (i32, i32, i32) {
    %c0_i32 = arith.constant 0 : i32
    %c0_i32_0 = arith.constant 0 : i32
    %c0_i32_1 = arith.constant 0 : i32
    %c0_i32_2 = arith.constant 0 : i32
    return %c0_i32, %c0_i32_0, %c0_i32_1 : i32, i32, i32
  }
  func.func @transform_8(%arg0: i32) -> (i32, i32, i32) {
    %c0_i32 = arith.constant 0 : i32
    %c0_i32_0 = arith.constant 0 : i32
    %c0_i32_1 = arith.constant 0 : i32
    %c0_i32_2 = arith.constant 0 : i32
    return %c0_i32, %c0_i32_0, %c0_i32_1 : i32, i32, i32
  }
  func.func @transform_9(%arg0: i32) -> (i32, i32, i32) {
    %c0_i32 = arith.constant 0 : i32
    %c0_i32_0 = arith.constant 0 : i32
    %c0_i32_1 = arith.constant 0 : i32
    %c0_i32_2 = arith.constant 0 : i32
    return %c0_i32, %c0_i32_0, %c0_i32_1 : i32, i32, i32
  }
  func.func @transform_10(%arg0: i32) -> (i32, i32, i32) {
    %c0_i32 = arith.constant 0 : i32
    %c0_i32_0 = arith.constant 0 : i32
    %c0_i32_1 = arith.constant 0 : i32
    %c0_i32_2 = arith.constant 0 : i32
    return %c0_i32, %c0_i32_0, %c0_i32_1 : i32, i32, i32
  }
  func.func @transform_11(%arg0: i32) -> (i32, i32, i32) {
    %c0_i32 = arith.constant 0 : i32
    %c0_i32_0 = arith.constant 0 : i32
    %c0_i32_1 = arith.constant 0 : i32
    %c0_i32_2 = arith.constant 0 : i32
    return %c0_i32, %c0_i32_0, %c0_i32_1 : i32, i32, i32
  }
  func.func @transform_12(%arg0: i32) -> (i32, i32, i32) {
    %c0_i32 = arith.constant 0 : i32
    %c0_i32_0 = arith.constant 0 : i32
    %c0_i32_1 = arith.constant 0 : i32
    %c0_i32_2 = arith.constant 0 : i32
    return %c0_i32, %c0_i32_0, %c0_i32_1 : i32, i32, i32
  }
  func.func @transform_13(%arg0: i32) -> (i32, i32, i32) {
    %c0_i32 = arith.constant 0 : i32
    %c0_i32_0 = arith.constant 0 : i32
    %c0_i32_1 = arith.constant 0 : i32
    %c0_i32_2 = arith.constant 0 : i32
    return %c0_i32, %c0_i32_0, %c0_i32_1 : i32, i32, i32
  }
  func.func @transform_14(%arg0: i32) -> (i32, i32, i32) {
    %c0_i32 = arith.constant 0 : i32
    %c0_i32_0 = arith.constant 0 : i32
    %c0_i32_1 = arith.constant 0 : i32
    %c0_i32_2 = arith.constant 0 : i32
    return %c0_i32, %c0_i32_0, %c0_i32_1 : i32, i32, i32
  }
  func.func @transform_15(%arg0: i32) -> (i32, i32, i32) {
    %c0_i32 = arith.constant 0 : i32
    %c0_i32_0 = arith.constant 0 : i32
    %c0_i32_1 = arith.constant 0 : i32
    %c0_i32_2 = arith.constant 0 : i32
    return %c0_i32, %c0_i32_0, %c0_i32_1 : i32, i32, i32
  }
  func.func @transform_16(%arg0: i32) -> (i32, i32, i32) {
    %c0_i32 = arith.constant 0 : i32
    %c0_i32_0 = arith.constant 0 : i32
    %c0_i32_1 = arith.constant 0 : i32
    %c0_i32_2 = arith.constant 0 : i32
    return %c0_i32, %c0_i32_0, %c0_i32_1 : i32, i32, i32
  }
  func.func @transform_17(%arg0: i32) -> (i32, i32) {
    %c0_i32 = arith.constant 0 : i32
    %c0_i32_0 = arith.constant 0 : i32
    %c0_i32_1 = arith.constant 0 : i32
    return %c0_i32, %c0_i32_0 : i32, i32
  }
  func.func @transform_18(%arg0: i32) -> (i32, i32) {
    %c0_i32 = arith.constant 0 : i32
    %c0_i32_0 = arith.constant 0 : i32
    %c0_i32_1 = arith.constant 0 : i32
    return %c0_i32, %c0_i32_0 : i32, i32
  }
  func.func @transform_19(%arg0: i32) -> (i32, i32) {
    %c0_i32 = arith.constant 0 : i32
    %c0_i32_0 = arith.constant 0 : i32
    %c0_i32_1 = arith.constant 0 : i32
    return %c0_i32, %c0_i32_0 : i32, i32
  }
  func.func @transform_20(%arg0: i32) -> (i32, i32) {
    %c0_i32 = arith.constant 0 : i32
    %c0_i32_0 = arith.constant 0 : i32
    %c0_i32_1 = arith.constant 0 : i32
    return %c0_i32, %c0_i32_0 : i32, i32
  }
  func.func @transform_21(%arg0: i32) -> (i32, i32, i32) {
    %c0_i32 = arith.constant 0 : i32
    %c0_i32_0 = arith.constant 0 : i32
    %c0_i32_1 = arith.constant 0 : i32
    return %arg0, %c0_i32, %c0_i32_0 : i32, i32, i32
  }
}

</mosaic_0001>

<bundles_post_ra>
// kernel: vit_forward_pallas.1
= control target key start
LH: loop header
LB: loop body
LE: loop exit
PB: predicated region body
PF: predicated region fallthrough
CT: control target
= control target key end

     0   :  { %s4177_s0 = inlined_call_operand.vmem [shape: f32[16,512], index: 0, kind: input, shape index: {}]   ;;  %s4178_s1 = inlined_call_operand.vmem [shape: bf16[512,48], index: 1, kind: input, shape index: {}]   ;;  %s4179_s2 = inlined_call_operand.vmem [shape: f32[8,48], index: 2, kind: input, shape index: {}]   ;;  %s4180_s3 = inlined_call_operand.vmem [shape: f32[1,48], index: 3, kind: input, shape index: {}]   ;;  %s4181_s4 = inlined_call_operand.vmem [shape: f32[2,1,48], index: 4, kind: input, shape index: {}]   ;;  %s4182_s5 = inlined_call_operand.vmem [shape: f32[2,1,48], index: 5, kind: input, shape index: {}]   ;;  %s4183_s6 = inlined_call_operand.vmem [shape: bf16[2,48,48], index: 6, kind: input, shape index: {}]   ;;  %s4184_s7 = inlined_call_operand.vmem [shape: bf16[2,48,48], index: 7, kind: input, shape index: {}]   ;;  %s4185_s8 = inlined_call_operand.vmem [shape: bf16[2,48,48], index: 8, kind: input, shape index: {}]   ;;  %s4186_s9 = inlined_call_operand.vmem [shape: bf16[2,48,48], index: 9, kind: input, shape index: {}]   ;;  %s4187_s10 = inlined_call_operand.vmem [shape: f32[2,1,48], index: 10, kind: input, shape index: {}]   ;;  %s4188_s11 = inlined_call_operand.vmem [shape: f32[2,1,48], index: 11, kind: input, shape index: {}]   ;;  %s4189_s12 = inlined_call_operand.vmem [shape: f32[2,1,48], index: 12, kind: input, shape index: {}]   ;;  %s4190_s13 = inlined_call_operand.vmem [shape: bf16[2,48,96], index: 13, kind: input, shape index: {}]   ;;  %s4191_s14 = inlined_call_operand.vmem [shape: f32[2,1,96], index: 14, kind: input, shape index: {}]   ;;  %s4192_s15 = inlined_call_operand.vmem [shape: bf16[2,96,48], index: 15, kind: input, shape index: {}]   ;;  %s4193_s16 = inlined_call_operand.vmem [shape: f32[2,1,48], index: 16, kind: input, shape index: {}]   ;;  %s4194_s17 = inlined_call_operand.vmem [shape: f32[1,48], index: 17, kind: input, shape index: {}]   ;;  %s4195_s18 = inlined_call_operand.vmem [shape: f32[1,48], index: 18, kind: input, shape index: {}]   ;;  %s4196_s19 = inlined_call_operand.vmem [shape: bf16[48,4], index: 19, kind: input, shape index: {}]   ;;  %s4197_s20 = inlined_call_operand.vmem [shape: f32[1,4], index: 20, kind: input, shape index: {}]   ;;  %s4198_s21 = inlined_call_operand.hbm [shape: f32[2,1,4], index: 21, kind: output, shape index: {}]  }
   0x1   :  { %4218 = sst [smem:[#allocation12_spill]] %s4177_s0 }
   0x2   :  { %4219 = sst [smem:[#allocation13_spill]] %s4178_s1 }
   0x3   :  { %4220 = sst [smem:[#allocation14_spill]] %s4179_s2 }
   0x4   :  { %4221 = sst [smem:[#allocation15_spill]] %s4180_s3 }
   0x5   :  { %4222 = sst [smem:[#allocation16_spill]] %s4181_s4 }
   0x6   :  { %4223 = sst [smem:[#allocation17_spill]] %s4182_s5 }
   0x7   :  { %4224 = sst [smem:[#allocation18_spill]] %s4183_s6 }
   0x8   :  { %4225 = sst [smem:[#allocation19_spill]] %s4184_s7 }
   0x9   :  { %4226 = sst [smem:[#allocation20_spill]] %s4185_s8 }
   0xa   :  { %4227 = sst [smem:[#allocation21_spill]] %s4186_s9 }
   0xb   :  { %4228 = sst [smem:[#allocation22_spill]] %s4198_s21 }
   0xc   :  { %26 = vsyncpa [#allocation3], 0 }
   0xd   :  { %28 = vsyncpa [#allocation3 + $0x1], 0  ;;  %s3562_s2 = smov 0   ;;  %s3564_s25 = smov 0  }
   0xe   :  { %s3566_s26 = smov 0   ;;  %s3568_s27 = smov 0  }
   0xf LB: > { %4229 = sst [smem:[#allocation5_spill]] %s3431_s2  ;;  %s3583_s3 = sadd.s32 4294967295, %s3443_s27   ;;  %s3443_s27 = sphi %s3568_s27, %s4258_s27   ;;  %s3439_s26 = sphi %s3566_s26, %s4260_s26   ;;  %s3435_s25 = sphi %s3564_s25, %s4262_s25   ;;  %s3431_s2 = sphi %s3562_s2, %s4261_s2  }
  0x10   : > { %4230 = sst [smem:[#allocation6_spill]] %s3439_s26  ;;  %s2720_s28 = sadd.s32 4294967294, %s3443_s27  }
  0x11   : > { %4231 = sst [smem:[#allocation7_spill]] %s3443_s27  ;;  %s3587_s29 = sadd.s32 1, %s3443_s27  }
  0x12   : > { %4232 = sst [smem:[#allocation8_spill]] %s3587_s29  ;;  %s487_s0 = sadd.s32 1, %s3439_s26 }
  0x13   : > { %s484_s4 = ssub.s32 %s3443_s27, %s3587_s29  ;;  %p497_p0 = scmp.ne.s32.totalorder %s3439_s26, %s3435_s25 }
  0x14   : > { %p485_p1 = scmp.eq.s32.totalorder %s484_s4, 0  ;;  %p498_p2 = scmp.eq.s32.totalorder %s3583_s3, 1 }
  0x15   : > { %p503_p3 = scmp.ne.s32.totalorder %s3435_s25, %s3431_s2  ;;  %p504_p4 = scmp.eq.s32.totalorder %s2720_s28, 1 }
  0x16   : > { %s3598_s30 = scalar_select %p485_p1, %s3439_s26, %s487_s0  }
  0x17   : > { %p3600_p5 = por %p498_p2, %p497_p0  ;;  %p3604_p6 = por %p504_p4, %p503_p3 }
  0x18   : > { %4233 = sst [smem:[#allocation9_spill]] %s3598_s30  ;;  %p2723_p7 = scmp.ge.s32.totalorder %s3443_s27, 1 }
  0x19   : > { %s4234_s5 = scalar_select %p3600_p5, 1, 0 }
  0x1a   : > { %s4236_s22 = scalar_select %p3604_p6, 1, 0 }
  0x1b   : > { %4235 = sst [smem:[#allocation10_spill]] %s4234_s5  ;;  %p590_p8 = scmp.lt.s32.totalorder %s3443_s27, 3 }
  0x1c   : > { %4237 = sst [smem:[#allocation11_spill]] %s4236_s22 }
  0x1d   : > { %p591_p9 = pnand %p2723_p7, %p590_p8 }
  0x1e   : > { %s4238_s24 = sld [smem:[#allocation13_spill]] (!%p591_p9)  ;;  %p649_p10 = scmp.lt.s32.totalorder (!%p591_p9), %s3583_s3, 1 }
  0x1f   : > { %594 = sbr.rel (%p591_p9) target bundleno = 4483 (0x1183), region = 104  ;;  %s4239_s28 = sld [smem:[#allocation12_spill]] (!%p591_p9) }
  0x20   : > { %s4240_s5 = sld [smem:[#allocation14_spill]] (!%p591_p9)  ;;  %s4216_s2 = smov (!%p591_p9), 116  }
  0x21   : > { %s4241_s0 = sld [smem:[#allocation15_spill]] (!%p591_p9)  ;;  %s4211_s22 = smov (!%p591_p9), 12  }
  0x22   : > { %s4242_s6 = sld [smem:[#allocation18_spill]] (!%p591_p9)  ;;  %s4213_s23 = smov (!%p591_p9), 24  }
  0x23   : > { %s4243_s7 = sld [smem:[#allocation19_spill]] (!%p591_p9)  ;;  %s4212_s1 = smov (!%p591_p9), 36  }
  0x24   : > { %v3122_v0 = vld [vmem:[%s4238_s24 + $0x38] sm:$0xff]  ;;  %v3121_v4 = vld [vmem:[%s4238_s24 + $0x30] sm:$0xff]  ;;  %v3120_v8 = vld [vmem:[%s4238_s24 + $0x28] sm:$0xff]  ;;  %s650_s29 = scalar_select %p649_p10, %s3583_s3, 1  ;;  %vm980_vm0 = vcmask 392192   ;;  %vm729_vm1 = vcmask 1040384  }
  0x25   : > { %v3130_v1 = vld [vmem:[%s4238_s24 + $0x78] sm:$0xff]  ;;  %923 = vmatpush.bf16.msra.mxu0 %v3122_v0  ;;  %v3129_v5 = vld [vmem:[%s4238_s24 + $0x70] sm:$0xff]  ;;  %v3128_v9 = vld [vmem:[%s4238_s24 + $0x68] sm:$0xff]  ;;  %v3445_v57 = vmov 48.0   ;;  %s4244_s8 = sld [smem:[#allocation20_spill]]  ;;  %vm1176_vm9 = vcmask 97280  }
  0x26   : > { %v3138_v2 = vld [vmem:[%s4238_s24 + $0xb8] sm:$0xff]  ;;  %936 = vmatpush.bf16.msra.mxu1 %v3130_v1  ;;  %v3137_v6 = vld [vmem:[%s4238_s24 + $0xb0] sm:$0xff]  ;;  %v3136_v10 = vld [vmem:[%s4238_s24 + $0xa8] sm:$0xff]  ;;  %s3114_s26 = sshll.u32 %s650_s29, 5  ;;  %3285 = vrcp.f32 %v3445_v57  ;;  %s4245_s30 = sld [smem:[#allocation16_spill]]  ;;  %vm1203_vm11 = vcmask 130048  }
  0x27   : > { %v3146_v3 = vld [vmem:[%s4238_s24 + $0xf8] sm:$0xff]  ;;  %949 = vmatpush.bf16.msra.mxu2 %v3138_v2  ;;  %v3145_v7 = vld [vmem:[%s4238_s24 + $0xf0] sm:$0xff]  ;;  %v3144_v11 = vld [vmem:[%s4238_s24 + $0xe8] sm:$0xff]  ;;  %s653_s21 = scalar_lea.vmem %s4239_s28, %s3114_s26  ;;  %s4214_s28 = smov 92   ;;  %vm1513_vm12 = vcmask 195584   ;;  %vm1516_vm13 = vcmask 293888  }
  0x28   : > { %962 = vmatpush.bf16.msra.mxu3 %v3146_v3  ;;  %v3119_v12 = vld [vmem:[%s4238_s24 + $0x20] sm:$0xff]  ;;  %v3118_v16 = vld [vmem:[%s4238_s24 + $0x18] sm:$0xff]  ;;  %v3117_v20 = vld [vmem:[%s4238_s24 + $0x10] sm:$0xff]  ;;  %s4247_s9 = sld [smem:[#allocation21_spill]]  ;;  %s4248_s29 = smov 116  }
  0x29   : > { %924 = vmatpush.bf16.msra.mxu0 %v3121_v4  ;;  %v3127_v13 = vld [vmem:[%s4238_s24 + $0x60] sm:$0xff]  ;;  %v3126_v17 = vld [vmem:[%s4238_s24 + $0x58] sm:$0xff]  ;;  %v3125_v21 = vld [vmem:[%s4238_s24 + $0x50] sm:$0xff]  ;;  %s4252_s4 = smov 36  }
  0x2a   : > { %937 = vmatpush.bf16.msra.mxu1 %v3129_v5  ;;  %v3135_v14 = vld [vmem:[%s4238_s24 + $0xa0] sm:$0xff]  ;;  %v3134_v18 = vld [vmem:[%s4238_s24 + $0x98] sm:$0xff]  ;;  %v3133_v22 = vld [vmem:[%s4238_s24 + $0x90] sm:$0xff] }
  0x2b   : > { %950 = vmatpush.bf16.msra.mxu2 %v3137_v6  ;;  %v3143_v15 = vld [vmem:[%s4238_s24 + $0xe0] sm:$0xff]  ;;  %v3142_v19 = vld [vmem:[%s4238_s24 + $0xd8] sm:$0xff]  ;;  %v3141_v23 = vld [vmem:[%s4238_s24 + $0xd0] sm:$0xff] }
  0x2c   : > { %963 = vmatpush.bf16.msra.mxu3 %v3145_v7  ;;  %v3116_v24 = vld [vmem:[%s4238_s24 + $0x8] sm:$0xff]  ;;  %v3115_v28 = vld [vmem:[%s4238_s24] sm:$0xff]  ;;  %v657_v34 = vld [vmem:[%s653_s21 + $0x10] sm:$0xff]  ;;  %v3286_v58 = vpop.eup %3285 }
  0x2d   : > { %925 = vmatpush.bf16.msra.mxu0 %v3120_v8  ;;  %v3124_v25 = vld [vmem:[%s4238_s24 + $0x48] sm:$0xff]  ;;  %v3123_v29 = vld [vmem:[%s4238_s24 + $0x40] sm:$0xff]  ;;  %v658_v35 = vld [vmem:[%s653_s21 + $0x18] sm:$0xff]  ;;  %v661_v38 = vpack.c.bf16 %v657_v34, %v657_v34  ;;  %v988_v59 = vmul.f32 48.0, %v3286_v58  ;;  %vm992_vm2 = vweird.f32 %v3286_v58 }
  0x2e   : > { %938 = vmatpush.bf16.msra.mxu1 %v3128_v9  ;;  %v3132_v26 = vld [vmem:[%s4238_s24 + $0x88] sm:$0xff]  ;;  %v3131_v30 = vld [vmem:[%s4238_s24 + $0x80] sm:$0xff]  ;;  %v662_v39 = vpack.c.bf16 %v658_v35, %v658_v35 }
  0x2f   : > { %951 = vmatpush.bf16.msra.mxu2 %v3136_v10  ;;  %v3140_v27 = vld [vmem:[%s4238_s24 + $0xc8] sm:$0xff]  ;;  %v655_v31 = vld [vmem:[%s653_s21] sm:$0xff]  ;;  %v989_v60 = vsub.f32 1.0, %v988_v59  ;;  %v3149_v10 = vld [vmem:[%s4242_s6 + $0x10] sm:$0xff] }
  0x30   : > { %964 = vmatpush.bf16.msra.mxu3 %v3144_v11  ;;  %v656_v32 = vld [vmem:[%s653_s21 + $0x8] sm:$0xff]  ;;  %v3139_v33 = vld [vmem:[%s4238_s24 + $0xc0] sm:$0xff]  ;;  %v659_v36 = vpack.c.bf16 %v655_v31, %v655_v31  ;;  %v3152_v11 = vld [vmem:[%s4243_s7 + $0x10] sm:$0xff]  ;;  %s4246_s21 = sld [smem:[#allocation17_spill]] }
  0x31   : > { %926 = vmatpush.bf16.msra.mxu0 %v3119_v12  ;;  %v660_v37 = vpack.c.bf16 %v656_v32, %v656_v32  ;;  %v727_v40 = vld [vmem:[%s4240_s5] sm:$0xff]  ;;  %v990_v61 = vmul.f32 %v3286_v58, %v989_v60  ;;  %v3155_v12 = vld [vmem:[%s4244_s8 + $0x10] sm:$0xff]  ;;  %s4249_s5 = smov 92  }
  0x32   : > { %939 = vmatpush.bf16.msra.mxu1 %v3127_v13  ;;  %v728_v52 = vld [vmem:[%s4241_s0] sm:$0x1]  ;;  %v3148_v13 = vld [vmem:[%s4242_s6 + $0x8] sm:$0xff]  ;;  %s3447_s0 = smov 104  }
  0x33   : > { %952 = vmatpush.bf16.msra.mxu2 %v3135_v14  ;;  %v3721_v55 = vsel %vm729_vm1, %v728_v52, 0.0  ;;  %v991_v62 = vadd.f32 %v3286_v58, %v990_v61  ;;  %v3151_v14 = vld [vmem:[%s4243_s7 + $0x8] sm:$0xff] }
  0x34   : > { %965 = vmatpush.bf16.msra.mxu3 %v3143_v15  ;;  %v984_v56 = vsel %vm980_vm0, %v3721_v55, 0.0  ;;  %v3154_v15 = vld [vmem:[%s4244_s8 + $0x8] sm:$0xff] }
  0x35   : > { %927 = vmatpush.bf16.msra.mxu0 %v3118_v16  ;;  %v3725_v63 = vsel %vm992_vm2, %v3286_v58, %v991_v62 }
  0x36   : > { %940 = vmatpush.bf16.msra.mxu1 %v3126_v17  ;;  %v3147_v17 = vld [vmem:[%s4242_s6] sm:$0xff] }
  0x37   : > { %953 = vmatpush.bf16.msra.mxu2 %v3134_v18  ;;  %v3150_v18 = vld [vmem:[%s4243_s7] sm:$0xff] }
  0x38   : > { %966 = vmatpush.bf16.msra.mxu3 %v3142_v19 }
  0x39   : > { %928 = vmatpush.bf16.msra.mxu0 %v3117_v20  ;;  %v3153_v20 = vld [vmem:[%s4244_s8] sm:$0xff] }
  0x3a   : > { %941 = vmatpush.bf16.msra.mxu1 %v3125_v21 }
  0x3b   : > { %954 = vmatpush.bf16.msra.mxu2 %v3133_v22 }
  0x3c   : > { %967 = vmatpush.bf16.msra.mxu3 %v3141_v23 }
  0x3d   : > { %929 = vmatpush.bf16.msra.mxu0 %v3116_v24 }
  0x3e   : > { %942 = vmatpush.bf16.msra.mxu1 %v3124_v25 }
  0x3f   : > { %955 = vmatpush.bf16.msra.mxu2 %v3132_v26 }
  0x40   : > { %968 = vmatpush.bf16.msra.mxu3 %v3140_v27 }
  0x41   : > { %930 = vmatpush.bf16.msra.mxu0 %v3115_v28 }
  0x42   : > { %943 = vmatpush.bf16.msra.mxu1 %v3123_v29 }
  0x43   : > { %956 = vmatpush.bf16.msra.mxu2 %v3131_v30 }
  0x44   : > { %969 = vmatpush.bf16.msra.mxu3 %v3139_v33  ;;  %931 = vmatmul.bf16.vlgmr.msra.gmra.mxu0 %v659_v36 }
  0x45   : > { %944 = vmatmul.bf16.vlgmr.msra.gmra.mxu1 %v660_v37  ;;  %1075 = vmatpush.bf16.msrb.mxu0 %v3149_v10 }
  0x46   : > { %957 = vmatmul.bf16.vlgmr.msra.gmra.mxu2 %v661_v38  ;;  %1113 = vmatpush.bf16.msrb.mxu1 %v3152_v11  ;;  %v3268_v38 = vld [vmem:[%s4245_s30] ss:$0 sm:$0xff] }
  0x47   : > { %970 = vmatmul.bf16.vlgmr.msra.gmra.mxu3 %v662_v39  ;;  %1151 = vmatpush.bf16.msrb.mxu2 %v3155_v12 }
  0x49   : > { %1076 = vmatpush.bf16.msrb.mxu0 %v3148_v13 }
  0x4a   : > { %1114 = vmatpush.bf16.msrb.mxu1 %v3151_v14 }
  0x4b   : > { %1152 = vmatpush.bf16.msrb.mxu2 %v3154_v15 }
  0x4d   : > { %1077 = vmatpush.bf16.msrb.mxu0 %v3147_v17 }
  0x4e   : > { %1115 = vmatpush.bf16.msrb.mxu1 %v3150_v18  ;;  %v975_v18 = vlaneseq }
  0x4f   : > { %1153 = vmatpush.bf16.msrb.mxu2 %v3153_v20 }
  0xc1   : > { %v932_v41 = vpop.f32.mrf.mxu0 }
  0xc2   : > { %v945_v42 = vpop.f32.mrf.mxu1  ;;  %v933_v43 = vadd.f32 %v932_v41, %v727_v40 }
  0xc4   : > { %v946_v44 = vadd.f32 %v945_v42, %v933_v43  ;;  %v3269_v43 = vld [vmem:[%s4246_s21] ss:$0 sm:$0xff] }
  0xc9   : > { %v958_v45 = vpop.f32.mrf.mxu2  ;;  %v934_v48 = vpop.f32.mrf.mxu0 }
  0xca   : > { %v971_v46 = vpop.f32.mrf.mxu3  ;;  %v959_v47 = vadd.f32 %v958_v45, %v946_v44  ;;  %v947_v49 = vpop.f32.mrf.mxu1 }
  0xcc   : > { %v3714_v50 = vadd.f32 %v971_v46, %v959_v47 }
  0xce   : > { %v981_v51 = vsel %vm980_vm0, %v3714_v50, 0.0 }
  0xcf   : > { %982 = vadd.xlane.f32.xlu0 %v981_v51 }
  0xd1   : > { %v960_v53 = vpop.f32.mrf.mxu2 }
  0xd2   : > { %v973_v54 = vpop.f32.mrf.mxu3 }
  0xd7   : > { %985 = vadd.xlane.f32.xlu0 %v984_v56 }
 0x142   : > { %v983_v0 = vpop.xlane.xlu0 %982 }
 0x143   : > { %v994_v1 = vmul.f32 %v3725_v63, %v983_v0 }
 0x145   : > { %v996_v2 = vsub.f32 %v3714_v50, %v994_v1 }
 0x147   : > { %v998_v3 = vmul.f32 %v996_v2, %v996_v2 }
 0x149   : > { %v1000_v4 = vsel %vm980_vm0, %v998_v3, 0.0 }
 0x14a   : > { %1001 = vadd.xlane.f32.xlu1 %v1000_v4  ;;  %v986_v5 = vpop.xlane.xlu0 %985 }
 0x14b   : > { %v995_v6 = vmul.f32 %v3725_v63, %v986_v5 }
 0x14d   : > { %v997_v7 = vsub.f32 %v3721_v55, %v995_v6 }
 0x14f   : > { %v999_v8 = vmul.f32 %v997_v7, %v997_v7 }
 0x151   : > { %v1003_v9 = vsel %vm980_vm0, %v999_v8, 0.0 }
 0x152   : > { %1004 = vadd.xlane.f32.xlu1 %v1003_v9 }
 0x1bd   : > { %v1002_v16 = vpop.xlane.xlu1 %1001 }
 0x1be   : > { %v1006_v19 = vmul.f32 %v1002_v16, %v3725_v63 }
 0x1c0   : > { %v1008_v21 = vadd.f32 1e-05, %v1006_v19  ;;  %v3788_v19 = vand.u32 127, %v975_v18 }
 0x1c2   : > { %3287 = vrsqrt.f32 %v1008_v21  ;;  %vm1016_vm4 = vweird.f32 %v1008_v21  ;;  %vm977_vm10 = vcmp.lt.s32.totalorder %v3788_v19, 9 }
 0x1c5   : > { %v1005_v22 = vpop.xlane.xlu1 %1004 }
 0x1c6   : > { %v1007_v23 = vmul.f32 %v1005_v22, %v3725_v63 }
 0x1c8   : > { %v3288_v24 = vpop.eup %3287  ;;  %v1009_v25 = vadd.f32 1e-05, %v1007_v23 }
 0x1c9   : > { %v1011_v26 = vmul.f32 %v3288_v24, %v1008_v21  ;;  %vm1017_vm3 = vweird.f32 %v3288_v24 }
 0x1ca   : > { %3289 = vrsqrt.f32 %v1009_v25  ;;  %vm1018_vm5 = vmor %vm1016_vm4, %vm1017_vm3  ;;  %vm1026_vm7 = vweird.f32 %v1009_v25 }
 0x1cb   : > { %v1012_v27 = vmul.f32 %v3288_v24, %v1011_v26 }
 0x1cd   : > { %v1013_v28 = vmul.f32 0.5, %v1012_v27 }
 0x1cf   : > { %v1014_v29 = vsub.f32 1.5, %v1013_v28 }
 0x1d0   : > { %v3290_v30 = vpop.eup %3289 }
 0x1d1   : > { %v1015_v31 = vmul.f32 %v3288_v24, %v1014_v29  ;;  %v1021_v32 = vmul.f32 %v3290_v30, %v1009_v25  ;;  %vm1027_vm6 = vweird.f32 %v3290_v30 }
 0x1d2   : > { %vm1028_vm8 = vmor %vm1026_vm7, %vm1027_vm6 }
 0x1d3   : > { %v1022_v33 = vmul.f32 %v3290_v30, %v1021_v32  ;;  %v1019_v34 = vsel %vm1018_vm5, %v3288_v24, %v1015_v31  ;;  %vm1738_vm5 = vcmask 785408  }
 0x1d4   : > { %v1030_v37 = vmul.f32 %v1019_v34, %v996_v2 }
 0x1d5   : > { %v1023_v35 = vmul.f32 0.5, %v1022_v33 }
 0x1d6   : > { %v1035_v42 = vmul.f32 %v3268_v38, %v1030_v37 }
 0x1d7   : > { %v1024_v36 = vsub.f32 1.5, %v1023_v35 }
 0x1d8   : > { %v1040_v45 = vadd.f32 %v3269_v43, %v1035_v42 }
 0x1d9   : > { %v1025_v39 = vmul.f32 %v3290_v30, %v1024_v36 }
 0x1db   : > { %v1029_v40 = vsel %vm1028_vm8, %v3290_v30, %v1025_v39 }
 0x1dc   : > { %v1031_v41 = vmul.f32 %v1029_v40, %v997_v7 }
 0x1de   : > { %v1036_v44 = vmul.f32 %v3268_v38, %v1031_v41 }
 0x1e0   : > { %v1041_v46 = vadd.f32 %v3269_v43, %v1036_v44 }
 0x1e2   : > { %v1042_v47 = vpack.c.bf16 %v1041_v46, %v1040_v45 }
 0x1e4   : > { %2866 = vmatmul.msk.bf16.vlgmr.msrb.gmra.mxu0 %vm980_vm0, %v1042_v47  ;;  %2879 = vmatmul.msk.bf16.vlgmr.msrb.gmra.mxu1 %vm980_vm0, %v1042_v47 }
 0x1e5   : > { %2892 = vmatmul.msk.bf16.vlgmr.msrb.gmra.mxu2 %vm980_vm0, %v1042_v47 }
 0x261   : > { %v1079_v48 = vpop.f32.mrf.mxu0  ;;  %v1117_v49 = vpop.f32.mrf.mxu1 }
 0x262   : > { %v1162_v51 = vpack.c.bf16 %v1117_v49, %v1117_v49  ;;  %v1160_v62 = vpack.c.bf16 %v1079_v48, %v1079_v48 }
 0x264   : > { %v1173_v57 = vunpack.c.l.b16 %v1162_v51  ;;  %v1168_v6 = vunpack.c.l.b16 %v1160_v62 }
 0x268   : > { %v1155_v52 = vpop.f32.mrf.mxu2 }
 0x269   : > { %v1119_v53 = vpop.f32.mrf.mxu1  ;;  %v1081_v56 = vpop.f32.mrf.mxu0  ;;  %v1164_v61 = vpack.c.bf16 %v1155_v52, %v1155_v52 }
 0x26a   : > { %v1163_v54 = vpack.c.bf16 %v1119_v53, %v1119_v53  ;;  %v1161_v59 = vpack.c.bf16 %v1081_v56, %v1081_v56 }
 0x26b   : > { %v1235_v4 = vunpack.c.l.b16 %v1164_v61 }
 0x26c   : > { %v1174_v58 = vunpack.c.l.b16 %v1163_v54  ;;  %v1169_v3 = vunpack.c.l.b16 %v1161_v59 }
 0x26e   : > { %v1175_v60 = vpack.c.b16 %v1174_v58, %v1173_v57  ;;  %v1170_v8 = vpack.c.b16 %v1169_v3, %v1168_v6 }
 0x270   : > { %v1157_v0 = vpop.f32.mrf.mxu2  ;;  %1412 = vrot.lane.b32.xlu1 %v1175_v60, %s4214_s28  ;;  %1335 = vrot.lane.b32.xlu0 %v1175_v60, %s3447_s0  ;;  %v1181_v1 = vsel %vm1176_vm9, %v1175_v60, 0 }
 0x271   : > { %v1165_v2 = vpack.c.bf16 %v1157_v0, %v1157_v0  ;;  %1258 = vrot.lane.b32.xlu2 %v1175_v60, %s4216_s2  ;;  %1190 = vmatpush.bf16.xpose.msrb.mxu3 %v1181_v1 }
 0x273   : > { %v1236_v5 = vunpack.c.l.b16 %v1165_v2 }
 0x275   : > { %v3775_v7 = vpack.c.b16 %v1236_v5, %v1235_v4 }
 0x277   : > { %1249 = vmatpush.bf16.msra.mxu0 %v3775_v7 }
 0x278   : > { %2893 = vmatmul.msk.bf16.vlgmr.msrb.gmra.mxu3 %vm1176_vm9, %v1170_v8 }
 0x279   : > { %1256 = vrot.lane.b32.xlu2 %v1170_v8, %s4216_s2 }
 0x281   : > { %1333 = vrot.lane.b32.xlu2 %v1170_v8, %s3447_s0 }
 0x289   : > { %1410 = vrot.lane.b32.xlu2 %v1170_v8, %s4214_s28 }
 0x2cb   : > { %v1259_v9 = vpop.permute.xlu2 %1258 }
 0x2cc   : > { %v1264_v10 = vsel %vm1176_vm9, %v1259_v9, 0 }
 0x2cd   : > { %1273 = vmatpush.bf16.xpose.msra.mxu1 %v1264_v10 }
 0x2d3   : > { %v1257_v11 = vpop.permute.xlu2 %1256 }
 0x2d4   : > { %2895 = vmatmul.msk.bf16.vlgmr.msra.gmra.mxu1 %vm1176_vm9, %v1257_v11 }
 0x2db   : > { %v1334_v12 = vpop.permute.xlu2 %1333 }
 0x2e2   : > { %v1413_v13 = vpop.permute.xlu1 %1412  ;;  %v1336_v14 = vpop.permute.xlu0 %1335 }
 0x2e3   : > { %v1418_v15 = vsel %vm1176_vm9, %v1413_v13, 0  ;;  %v1341_v16 = vsel %vm1176_vm9, %v1336_v14, 0  ;;  %v1411_v17 = vpop.permute.xlu2 %1410 }
 0x2e4   : > { %1350 = vmatpush.bf16.xpose.msra.mxu3 %v1341_v16  ;;  %1427 = vmatpush.bf16.xpose.msrb.mxu1 %v1418_v15 }
 0x2eb   : > { %2897 = vmatmul.msk.bf16.vlgmr.msra.gmra.mxu3 %vm1176_vm9, %v1334_v12  ;;  %2899 = vmatmul.msk.bf16.vlgmr.msrb.gmra.mxu1 %vm1176_vm9, %v1411_v17 }
 0x2fb   : > { %v1192_v20 = vpop.f32.mrf.mxu3 }
 0x2fc   : > { %v1197_v21 = vmul.f32 0.28867513, %v1192_v20 }
 0x2fe   : > { %v1201_v22 = vsel %vm977_vm10, %v1197_v21, -1e+30 }
 0x2ff   : > { %v1204_v23 = vsel %vm1203_vm11, %v1201_v22, -inf }
 0x300   : > { %1205 = vmax.xlane.f32.xlu1 %v1204_v23 }
 0x303   : > { %v1194_v26 = vpop.f32.mrf.mxu3 }
 0x304   : > { %v1198_v29 = vmul.f32 0.28867513, %v1194_v26 }
 0x306   : > { %v1202_v32 = vsel %vm977_vm10, %v1198_v29, -1e+30 }
 0x307   : > { %v1207_v35 = vsel %vm1203_vm11, %v1202_v32, -inf }
 0x351   : > { %v1275_v24 = vpop.f32.mrf.mxu1 }
 0x352   : > { %v1280_v25 = vmul.f32 0.28867513, %v1275_v24 }
 0x354   : > { %v1282_v27 = vsel %vm977_vm10, %v1280_v25, -1e+30 }
 0x355   : > { %v1284_v28 = vsel %vm1203_vm11, %v1282_v27, -inf }
 0x356   : > { %1285 = vmax.xlane.f32.xlu2 %v1284_v28 }
 0x359   : > { %v1277_v30 = vpop.f32.mrf.mxu1 }
 0x35a   : > { %v1281_v31 = vmul.f32 0.28867513, %v1277_v30 }
 0x35c   : > { %v1283_v33 = vsel %vm977_vm10, %v1281_v31, -1e+30 }
 0x35d   : > { %v1287_v34 = vsel %vm1203_vm11, %v1283_v33, -inf }
 0x35e   : > { %1288 = vmax.xlane.f32.xlu0 %v1287_v34  ;;  %1208 = vmax.xlane.f32.xlu2 %v1207_v35 }
 0x368   : > { %v1429_v36 = vpop.f32.mrf.mxu1 }
 0x369   : > { %v1434_v52 = vmul.f32 0.28867513, %v1429_v36 }
 0x36b   : > { %v1436_v54 = vsel %vm977_vm10, %v1434_v52, -1e+30 }
 0x36c   : > { %v1438_v56 = vsel %vm1203_vm11, %v1436_v54, -inf }
 0x36e   : > { %v1352_v37 = vpop.f32.mrf.mxu3 }
 0x36f   : > { %v1357_v38 = vmul.f32 0.28867513, %v1352_v37 }
 0x370   : > { %v1431_v39 = vpop.f32.mrf.mxu1 }
 0x371   : > { %v1435_v40 = vmul.f32 0.28867513, %v1431_v39  ;;  %v1359_v41 = vsel %vm977_vm10, %v1357_v38, -1e+30 }
 0x372   : > { %v1361_v42 = vsel %vm1203_vm11, %v1359_v41, -inf }
 0x373   : > { %1362 = vmax.xlane.f32.xlu1 %v1361_v42  ;;  %v1437_v43 = vsel %vm977_vm10, %v1435_v40, -1e+30  ;;  %v1206_v45 = vpop.xlane.xlu1 %1205 }
 0x374   : > { %v1441_v44 = vsel %vm1203_vm11, %v1437_v43, -inf  ;;  %v1210_v48 = vsub.f32 %v1201_v22, %v1206_v45 }
 0x375   : > { %1442 = vmax.xlane.f32.xlu2 %v1441_v44 }
 0x376   : > { %v1354_v46 = vpop.f32.mrf.mxu3  ;;  %v1212_v53 = vmul.f32 1.442695, %v1210_v48 }
 0x377   : > { %v1358_v47 = vmul.f32 0.28867513, %v1354_v46 }
 0x378   : > { %3291 = vpow2.f32 %v1212_v53 }
 0x379   : > { %v1360_v49 = vsel %vm977_vm10, %v1358_v47, -1e+30 }
 0x37a   : > { %v1364_v51 = vsel %vm1203_vm11, %v1360_v49, -inf }
 0x37b   : > { %1365 = vmax.xlane.f32.xlu0 %v1364_v51 }
 0x37e   : > { %v3292_v57 = vpop.eup %3291 }
 0x37f   : > { %v1216_v58 = vsel %vm1203_vm11, %v3292_v57, 0.0 }
 0x383   : > { %1439 = vmax.xlane.f32.xlu0 %v1438_v56 }
 0x38b   : > { %1217 = vadd.xlane.f32.xlu0 %v1216_v58 }
 0x3c9   : > { %v1286_v59 = vpop.xlane.xlu2 %1285 }
 0x3ca   : > { %v1290_v3 = vsub.f32 %v1282_v27, %v1286_v59 }
 0x3cc   : > { %v1292_v4 = vmul.f32 1.442695, %v1290_v3 }
 0x3d1   : > { %v1289_v60 = vpop.xlane.xlu0 %1288  ;;  %v1209_v61 = vpop.xlane.xlu2 %1208 }
 0x3d2   : > { %v1291_v62 = vsub.f32 %v1283_v33, %v1289_v60  ;;  %v1211_v0 = vsub.f32 %v1202_v32, %v1209_v61 }
 0x3d4   : > { %v1294_v1 = vmul.f32 1.442695, %v1291_v62  ;;  %v1214_v2 = vmul.f32 1.442695, %v1211_v0 }
 0x3d6   : > { %3293 = vpow2.f32 %v1294_v1 }
 0x3d7   : > { %3295 = vpow2.f32 %v1214_v2 }
 0x3d8   : > { %3297 = vpow2.f32 %v1292_v4 }
 0x3dc   : > { %v3294_v5 = vpop.eup %3293 }
 0x3dd   : > { %v3296_v6 = vpop.eup %3295  ;;  %v1299_v8 = vsel %vm1203_vm11, %v3294_v5, 0.0 }
 0x3de   : > { %1300 = vadd.xlane.f32.xlu1 %v1299_v8  ;;  %v1219_v9 = vsel %vm1203_vm11, %v3296_v6, 0.0  ;;  %v3298_v10 = vpop.eup %3297 }
 0x3df   : > { %1220 = vadd.xlane.f32.xlu2 %v1219_v9  ;;  %v1296_v11 = vsel %vm1203_vm11, %v3298_v10, 0.0 }
 0x3e6   : > { %v1363_v12 = vpop.xlane.xlu1 %1362 }
 0x3e7   : > { %1297 = vadd.xlane.f32.xlu2 %v1296_v11  ;;  %v1367_v13 = vsub.f32 %v1359_v41, %v1363_v12 }
 0x3e8   : > { %v1443_v15 = vpop.xlane.xlu2 %1442 }
 0x3e9   : > { %v1369_v14 = vmul.f32 1.442695, %v1367_v13  ;;  %v1445_v20 = vsub.f32 %v1437_v43, %v1443_v15 }
 0x3eb   : > { %3299 = vpow2.f32 %v1369_v14  ;;  %v1448_v23 = vmul.f32 1.442695, %v1445_v20 }
 0x3ee   : > { %v1366_v16 = vpop.xlane.xlu0 %1365 }
 0x3ef   : > { %v1368_v17 = vsub.f32 %v1360_v49, %v1366_v16 }
 0x3f1   : > { %v3300_v18 = vpop.eup %3299  ;;  %v1371_v21 = vmul.f32 1.442695, %v1368_v17 }
 0x3f2   : > { %v1373_v22 = vsel %vm1203_vm11, %v3300_v18, 0.0 }
 0x3f3   : > { %3301 = vpow2.f32 %v1371_v21  ;;  %1374 = vadd.xlane.f32.xlu0 %v1373_v22 }
 0x3f4   : > { %3303 = vpow2.f32 %v1448_v23 }
 0x3f6   : > { %v1440_v24 = vpop.xlane.xlu0 %1439 }
 0x3f7   : > { %1313 = vrot.lane.b32.xlu1 %v3775_v7, %s4216_s2  ;;  %v1444_v25 = vsub.f32 %v1436_v54, %v1440_v24 }
 0x3f9   : > { %v3302_v26 = vpop.eup %3301  ;;  %v1446_v27 = vmul.f32 1.442695, %v1444_v25 }
 0x3fa   : > { %v1376_v28 = vsel %vm1203_vm11, %v3302_v26, 0.0  ;;  %v3304_v29 = vpop.eup %3303 }
 0x3fb   : > { %3305 = vpow2.f32 %v1446_v27  ;;  %1377 = vadd.xlane.f32.xlu2 %v1376_v28  ;;  %v1453_v32 = vsel %vm1203_vm11, %v3304_v29, 0.0 }
 0x3fe   : > { %v1218_v33 = vpop.xlane.xlu0 %1217 }
 0x3ff   : > { %3307 = vrcp.f32 %v1218_v33  ;;  %v3156_v33 = vld [vmem:[%s4247_s9] sm:$0xff] }
 0x401   : > { %v3306_v30 = vpop.eup %3305 }
 0x402   : > { %v1450_v31 = vsel %vm1203_vm11, %v3306_v30, 0.0 }
 0x403   : > { %1451 = vadd.xlane.f32.xlu0 %v1450_v31  ;;  %1454 = vadd.xlane.f32.xlu2 %v1453_v32  ;;  %v3158_v31 = vld [vmem:[%s4247_s9 + $0x10] sm:$0xff]  ;;  %v3157_v32 = vld [vmem:[%s4247_s9 + $0x8] sm:$0xff] }
 0x404   : > { %1552 = vmatpush.bf16.msrb.mxu3 %v3158_v31 }
 0x405   : > { %v3308_v35 = vpop.eup %3307 }
 0x406   : > { %v1224_v37 = vmul.f32 %v3308_v35, %v3292_v57 }
 0x408   : > { %v1226_v39 = vpack.c.bf16 %v1224_v37, %v1224_v37  ;;  %1553 = vmatpush.bf16.msrb.mxu3 %v3157_v32  ;;  %v3272_v32 = vld [vmem:[%s4189_s12] ss:$0 sm:$0xff] }
 0x40a   : > { %v1230_v44 = vunpack.c.l.b16 %v1226_v39 }
 0x40c   : > { %1554 = vmatpush.bf16.msrb.mxu3 %v3156_v33 }
 0x417   : > { %1467 = vrot.lane.b32.xlu0 %v3775_v7, %s4214_s28  ;;  %s647_s28 = sand.u32 1, %s3435_s25  }
 0x41b   : > { %1390 = vrot.lane.b32.xlu2 %v3775_v7, %s3447_s0 }
 0x451   : > { %v1301_v36 = vpop.xlane.xlu1 %1300 }
 0x452   : > { %v1221_v34 = vpop.xlane.xlu2 %1220 }
 0x453   : > { %3309 = vrcp.f32 %v1221_v34 }
 0x454   : > { %3311 = vrcp.f32 %v1301_v36 }
 0x459   : > { %v3310_v38 = vpop.eup %3309 }
 0x45a   : > { %v1225_v40 = vmul.f32 %v3310_v38, %v3296_v6  ;;  %v1298_v41 = vpop.xlane.xlu2 %1297  ;;  %v3312_v43 = vpop.eup %3311 }
 0x45b   : > { %3313 = vrcp.f32 %v1298_v41  ;;  %v1305_v7 = vmul.f32 %v3312_v43, %v3294_v5 }
 0x45c   : > { %v1227_v42 = vpack.c.bf16 %v1225_v40, %v1225_v40 }
 0x45d   : > { %v1307_v51 = vpack.c.bf16 %v1305_v7, %v1305_v7 }
 0x45e   : > { %v1231_v45 = vunpack.c.l.b16 %v1227_v42 }
 0x45f   : > { %v1311_v53 = vunpack.c.l.b16 %v1307_v51 }
 0x460   : > { %v1232_v46 = vpack.c.b16 %v1231_v45, %v1230_v44 }
 0x461   : > { %v3314_v47 = vpop.eup %3313 }
 0x462   : > { %v1304_v48 = vmul.f32 %v3314_v47, %v3298_v10  ;;  %2894 = vmatmul.msk.bf16.vlgmr.msra.gmra.mxu0 %vm1203_vm11, %v1232_v46 }
 0x464   : > { %v1306_v49 = vpack.c.bf16 %v1304_v48, %v1304_v48 }
 0x466   : > { %v1310_v52 = vunpack.c.l.b16 %v1306_v49  ;;  %v1375_v56 = vpop.xlane.xlu0 %1374  ;;  %v3270_v49 = vld [vmem:[%s4187_s10] ss:$0 sm:$0xff] }
 0x467   : > { %3315 = vrcp.f32 %v1375_v56 }
 0x468   : > { %v1312_v57 = vpack.c.b16 %v1311_v53, %v1310_v52 }
 0x469   : > { %v1314_v54 = vpop.permute.xlu1 %1313 }
 0x46a   : > { %1326 = vmatpush.bf16.msra.mxu2 %v1314_v54 }
 0x46d   : > { %2896 = vmatmul.msk.bf16.vlgmr.msra.gmra.mxu2 %vm1203_vm11, %v1312_v57  ;;  %v3316_v59 = vpop.eup %3315 }
 0x46e   : > { %v1378_v58 = vpop.xlane.xlu2 %1377  ;;  %v1381_v61 = vmul.f32 %v3316_v59, %v3300_v18 }
 0x46f   : > { %3317 = vrcp.f32 %v1378_v58 }
 0x470   : > { %v1383_v3 = vpack.c.bf16 %v1381_v61, %v1381_v61 }
 0x472   : > { %v1387_v8 = vunpack.c.l.b16 %v1383_v3 }
 0x475   : > { %v3318_v60 = vpop.eup %3317 }
 0x476   : > { %v1382_v62 = vmul.f32 %v3318_v60, %v3302_v26  ;;  %v1452_v0 = vpop.xlane.xlu0 %1451  ;;  %v1455_v1 = vpop.xlane.xlu2 %1454 }
 0x477   : > { %3319 = vrcp.f32 %v1452_v0 }
 0x478   : > { %v1384_v2 = vpack.c.bf16 %v1382_v62, %v1382_v62  ;;  %3321 = vrcp.f32 %v1455_v1 }
 0x47a   : > { %v1388_v4 = vunpack.c.l.b16 %v1384_v2 }
 0x47c   : > { %v1389_v12 = vpack.c.b16 %v1388_v4, %v1387_v8  ;;  %v3160_v8 = vld [vmem:[%s4190_s13 + $0x8] sm:$0xff] }
 0x47d   : > { %v3320_v5 = vpop.eup %3319 }
 0x47e   : > { %v3322_v6 = vpop.eup %3321  ;;  %v1391_v9 = vpop.permute.xlu2 %1390  ;;  %v1458_v10 = vmul.f32 %v3320_v5, %v3306_v30  ;;  %v3161_v5 = vld [vmem:[%s4190_s13 + $0x10] sm:$0xff] }
 0x47f   : > { %v1459_v11 = vmul.f32 %v3322_v6, %v3304_v29  ;;  %1403 = vmatpush.bf16.msrb.mxu0 %v1391_v9 }
 0x480   : > { %v1460_v13 = vpack.c.bf16 %v1458_v10, %v1458_v10 }
 0x481   : > { %v1461_v14 = vpack.c.bf16 %v1459_v11, %v1459_v11  ;;  %v3159_v11 = vld [vmem:[%s4190_s13] sm:$0xff] }
 0x482   : > { %2898 = vmatmul.msk.bf16.vlgmr.msrb.gmra.mxu0 %vm1203_vm11, %v1389_v12  ;;  %v1464_v15 = vunpack.c.l.b16 %v1460_v13 }
 0x483   : > { %v1465_v16 = vunpack.c.l.b16 %v1461_v14  ;;  %1662 = vmatpush.bf16.msra.mxu0 %v3161_v5 }
 0x485   : > { %v1466_v18 = vpack.c.b16 %v1465_v16, %v1464_v15 }
 0x487   : > { %1663 = vmatpush.bf16.msra.mxu0 %v3160_v8  ;;  %v3274_v8 = vld [vmem:[%s4193_s16] ss:$0 sm:$0xff] }
 0x489   : > { %v1468_v17 = vpop.permute.xlu0 %1467 }
 0x48a   : > { %1480 = vmatpush.bf16.msrb.mxu2 %v1468_v17 }
 0x48b   : > { %1664 = vmatpush.bf16.msra.mxu0 %v3159_v11 }
 0x48d   : > { %2900 = vmatmul.msk.bf16.vlgmr.msrb.gmra.mxu2 %vm1203_vm11, %v1466_v18 }
 0x4df   : > { %v1251_v20 = vpop.f32.mrf.mxu0 }
 0x4e7   : > { %v1253_v22 = vpop.f32.mrf.mxu0 }
 0x4f0   : > { %v1328_v21 = vpop.f32.mrf.mxu2 }
 0x4f8   : > { %v1330_v23 = vpop.f32.mrf.mxu2 }
 0x4f9   : > { %v3238_v24 = vpack.i.bf16 %v1330_v23, %v1328_v21 }
 0x4fb   : > { %3239 = vrot.lane.b32.xlu1 %v3238_v24, %s4211_s22  ;;  %s4251_s22 = smov 24  }
 0x4ff   : > { %v1405_v25 = vpop.f32.mrf.mxu0 }
 0x507   : > { %v1407_v26 = vpop.f32.mrf.mxu0 }
 0x508   : > { %v3243_v27 = vpack.i.bf16 %v1407_v26, %v1405_v25 }
 0x50a   : > { %3244 = vrot.lane.b32.xlu1 %v3243_v27, %s4213_s23 }
 0x510   : > { %v1482_v28 = vpop.f32.mrf.mxu2 }
 0x518   : > { %v1484_v29 = vpop.f32.mrf.mxu2 }
 0x519   : > { %v3248_v30 = vpack.i.bf16 %v1484_v29, %v1482_v28  ;;  %v3271_v28 = vld [vmem:[%s4188_s11] ss:$0 sm:$0xff] }
 0x51b   : > { %3249 = vrot.lane.b32.xlu0 %v3248_v30, %s4212_s1  ;;  %s4253_s1 = sld [smem:[#allocation22_spill]] }
 0x56d   : > { %v3240_v34 = vpop.permute.xlu1 %3239 }
 0x56e   : > { %v3242_v36 = vunpack.i.h.bf16 %v3240_v34  ;;  %v3241_v37 = vunpack.i.l.bf16 %v3240_v34 }
 0x570   : > { %v1512_v41 = vsel %vm1176_vm9, %v1253_v22, %v3242_v36  ;;  %v1511_v42 = vsel %vm1176_vm9, %v1251_v20, %v3241_v37 }
 0x57c   : > { %v3245_v35 = vpop.permute.xlu1 %3244 }
 0x57d   : > { %v3247_v38 = vunpack.i.h.bf16 %v3245_v35  ;;  %v3246_v39 = vunpack.i.l.bf16 %v3245_v35 }
 0x57f   : > { %v1515_v45 = vsel %vm1513_vm12, %v1512_v41, %v3247_v38  ;;  %v1514_v46 = vsel %vm1513_vm12, %v1511_v42, %v3246_v39  ;;  %v3167_v39 = vld [vmem:[%s4192_s15 + $0x28] sm:$0xff]  ;;  %v3165_v41 = vld [vmem:[%s4192_s15 + $0x18] sm:$0xff]  ;;  %v3164_v42 = vld [vmem:[%s4192_s15 + $0x10] sm:$0xff] }
 0x580   : > { %1744 = vmatpush.bf16.msra.mxu1 %v3167_v39 }
 0x58d   : > { %v3250_v40 = vpop.permute.xlu0 %3249 }
 0x58e   : > { %v3252_v43 = vunpack.i.h.bf16 %v3250_v40  ;;  %v3251_v44 = vunpack.i.l.bf16 %v3250_v40  ;;  %v3166_v40 = vld [vmem:[%s4192_s15 + $0x20] sm:$0xff] }
 0x58f   : > { %1745 = vmatpush.bf16.msra.mxu1 %v3166_v40 }
 0x590   : > { %v1517_v47 = vsel %vm1516_vm13, %v1514_v46, %v3251_v44  ;;  %v1518_v7 = vsel %vm1516_vm13, %v1515_v45, %v3252_v43  ;;  %v3273_v43 = vld [vmem:[%s4191_s14] ss:$0 sm:$0xff]  ;;  %v3163_v44 = vld [vmem:[%s4192_s15 + $0x8] sm:$0xff] }
 0x591   : > { %v1519_v48 = vpack.c.bf16 %v1518_v7, %v1517_v47  ;;  %v3162_v47 = vld [vmem:[%s4192_s15] sm:$0xff] }
 0x593   : > { %2913 = vmatmul.msk.bf16.vlgmr.msrb.gmra.mxu3 %vm980_vm0, %v1519_v48  ;;  %1746 = vmatpush.bf16.msra.mxu1 %v3165_v41 }
 0x597   : > { %1747 = vmatpush.bf16.msra.mxu1 %v3164_v42 }
 0x59b   : > { %1748 = vmatpush.bf16.msra.mxu1 %v3163_v44 }
 0x59f   : > { %1749 = vmatpush.bf16.msra.mxu1 %v3162_v47 }
 0x616   : > { %v1556_v51 = vpop.f32.mrf.mxu3 }
 0x617   : > { %v1561_v52 = vadd.f32 %v1556_v51, %v3714_v50 }
 0x619   : > { %v3856_v53 = vadd.f32 %v3270_v49, %v1561_v52 }
 0x61b   : > { %v1571_v54 = vsel %vm980_vm0, %v3856_v53, 0.0 }
 0x61c   : > { %1572 = vadd.xlane.f32.xlu1 %v1571_v54 }
 0x61e   : > { %v1558_v56 = vpop.f32.mrf.mxu3 }
 0x61f   : > { %v1562_v57 = vadd.f32 %v1558_v56, %v3721_v55 }
 0x621   : > { %v3861_v58 = vadd.f32 %v3270_v49, %v1562_v57 }
 0x623   : > { %v1574_v59 = vsel %vm980_vm0, %v3861_v58, 0.0 }
 0x624   : > { %1575 = vadd.xlane.f32.xlu2 %v1574_v59 }
 0x68f   : > { %v1573_v60 = vpop.xlane.xlu1 %1572 }
 0x690   : > { %v1577_v61 = vmul.f32 %v1573_v60, %v3725_v63 }
 0x692   : > { %v1579_v50 = vsub.f32 %v3856_v53, %v1577_v61 }
 0x694   : > { %v1581_v62 = vmul.f32 %v1579_v50, %v1579_v50 }
 0x696   : > { %v1583_v0 = vsel %vm980_vm0, %v1581_v62, 0.0 }
 0x697   : > { %1584 = vadd.xlane.f32.xlu0 %v1583_v0  ;;  %v1576_v1 = vpop.xlane.xlu2 %1575 }
 0x698   : > { %v1578_v2 = vmul.f32 %v1576_v1, %v3725_v63 }
 0x69a   : > { %v1580_v55 = vsub.f32 %v3861_v58, %v1578_v2 }
 0x69c   : > { %v1582_v3 = vmul.f32 %v1580_v55, %v1580_v55 }
 0x69e   : > { %v1586_v4 = vsel %vm980_vm0, %v1582_v3, 0.0 }
 0x69f   : > { %1587 = vadd.xlane.f32.xlu1 %v1586_v4 }
 0x70a   : > { %v1585_v6 = vpop.xlane.xlu0 %1584 }
 0x70b   : > { %v1589_v9 = vmul.f32 %v1585_v6, %v3725_v63 }
 0x70d   : > { %v1591_v10 = vadd.f32 1e-05, %v1589_v9 }
 0x70f   : > { %3323 = vrsqrt.f32 %v1591_v10  ;;  %vm1599_vm15 = vweird.f32 %v1591_v10 }
 0x712   : > { %v1588_v12 = vpop.xlane.xlu1 %1587 }
 0x713   : > { %v1590_v13 = vmul.f32 %v1588_v12, %v3725_v63 }
 0x715   : > { %v3324_v14 = vpop.eup %3323  ;;  %v1592_v15 = vadd.f32 1e-05, %v1590_v13 }
 0x716   : > { %v1594_v16 = vmul.f32 %v3324_v14, %v1591_v10  ;;  %vm1600_vm14 = vweird.f32 %v3324_v14 }
 0x717   : > { %3325 = vrsqrt.f32 %v1592_v15  ;;  %vm1601_vm1 = vmor %vm1599_vm15, %vm1600_vm14  ;;  %vm1609_vm3 = vweird.f32 %v1592_v15 }
 0x718   : > { %v1595_v17 = vmul.f32 %v3324_v14, %v1594_v16 }
 0x71a   : > { %v1596_v18 = vmul.f32 0.5, %v1595_v17 }
 0x71c   : > { %v1597_v20 = vsub.f32 1.5, %v1596_v18 }
 0x71d   : > { %v3326_v21 = vpop.eup %3325 }
 0x71e   : > { %v1598_v22 = vmul.f32 %v3324_v14, %v1597_v20  ;;  %v1604_v23 = vmul.f32 %v3326_v21, %v1592_v15  ;;  %vm1610_vm2 = vweird.f32 %v3326_v21 }
 0x71f   : > { %vm1611_vm4 = vmor %vm1609_vm3, %vm1610_vm2 }
 0x720   : > { %v1605_v24 = vmul.f32 %v3326_v21, %v1604_v23  ;;  %v1602_v25 = vsel %vm1601_vm1, %v3324_v14, %v1598_v22 }
 0x721   : > { %v1613_v29 = vmul.f32 %v1602_v25, %v1579_v50 }
 0x722   : > { %v1606_v26 = vmul.f32 0.5, %v1605_v24 }
 0x723   : > { %v1618_v33 = vmul.f32 %v3271_v28, %v1613_v29 }
 0x724   : > { %v1607_v27 = vsub.f32 1.5, %v1606_v26  ;;  %v3170_v26 = vld [vmem:[%s4242_s6 + $0x28] sm:$0xff] }
 0x725   : > { %v1623_v36 = vadd.f32 %v3272_v32, %v1618_v33  ;;  %1856 = vmatpush.bf16.msra.mxu2 %v3170_v26 }
 0x726   : > { %v1608_v30 = vmul.f32 %v3326_v21, %v1607_v27  ;;  %v3173_v27 = vld [vmem:[%s4243_s7 + $0x28] sm:$0xff] }
 0x727   : > { %1895 = vmatpush.bf16.msra.mxu3 %v3173_v27 }
 0x728   : > { %v1612_v31 = vsel %vm1611_vm4, %v3326_v21, %v1608_v30  ;;  %v3169_v30 = vld [vmem:[%s4242_s6 + $0x20] sm:$0xff] }
 0x729   : > { %v1614_v34 = vmul.f32 %v1612_v31, %v1580_v55  ;;  %v3172_v31 = vld [vmem:[%s4243_s7 + $0x20] sm:$0xff]  ;;  %1857 = vmatpush.bf16.msra.mxu2 %v3169_v30 }
 0x72b   : > { %v1619_v35 = vmul.f32 %v3271_v28, %v1614_v34  ;;  %v3176_v28 = vld [vmem:[%s4244_s8 + $0x28] sm:$0xff]  ;;  %1896 = vmatpush.bf16.msra.mxu3 %v3172_v31 }
 0x72c   : > { %1934 = vmatpush.bf16.msrb.mxu0 %v3176_v28 }
 0x72d   : > { %v1624_v37 = vadd.f32 %v3272_v32, %v1619_v35  ;;  %v3175_v32 = vld [vmem:[%s4244_s8 + $0x20] sm:$0xff]  ;;  %v3168_v35 = vld [vmem:[%s4242_s6 + $0x18] sm:$0xff]  ;;  %s2653_s6 = scalar_lea.sflag [#allocation3], %s647_s28 }
 0x72e   : > { %1858 = vmatpush.bf16.msra.mxu2 %v3168_v35 }
 0x72f   : > { %v1625_v38 = vpack.c.bf16 %v1624_v37, %v1623_v36  ;;  %v3171_v36 = vld [vmem:[%s4243_s7 + $0x18] sm:$0xff] }
 0x730   : > { %1935 = vmatpush.bf16.msrb.mxu0 %v3175_v32  ;;  %v3174_v37 = vld [vmem:[%s4244_s8 + $0x18] sm:$0xff]  ;;  %1897 = vmatpush.bf16.msra.mxu3 %v3171_v36 }
 0x731   : > { %2926 = vmatmul.msk.bf16.vlgmr.msra.gmra.mxu0 %vm980_vm0, %v1625_v38 }
 0x734   : > { %1936 = vmatpush.bf16.msrb.mxu0 %v3174_v37 }
 0x7ae   : > { %v1666_v45 = vpop.f32.mrf.mxu0 }
 0x7af   : > { %v1667_v46 = vadd.f32 %v3273_v43, %v1666_v45 }
 0x7b1   : > { %v1671_v7 = vmul.f32 %v1667_v46, %v1667_v46 }
 0x7b3   : > { %v1673_v48 = vmul.f32 %v1671_v7, %v1667_v46 }
 0x7b5   : > { %v1675_v49 = vmul.f32 0.044715, %v1673_v48 }
 0x7b6   : > { %v1668_v51 = vpop.f32.mrf.mxu0 }
 0x7b7   : > { %v1677_v52 = vadd.f32 %v1675_v49, %v1667_v46  ;;  %v1669_v54 = vadd.f32 %v3273_v43, %v1668_v51 }
 0x7b9   : > { %v1679_v56 = vmul.f32 0.7978846, %v1677_v52  ;;  %v1672_v57 = vmul.f32 %v1669_v54, %v1669_v54 }
 0x7bb   : > { %v1674_v59 = vmul.f32 %v1672_v57, %v1669_v54  ;;  %3327 = vtanh.f32 %v1679_v56 }
 0x7bd   : > { %v1676_v60 = vmul.f32 0.044715, %v1674_v59 }
 0x7bf   : > { %v1678_v61 = vadd.f32 %v1676_v60, %v1669_v54  ;;  %v3276_v60 = vld [vmem:[%s4246_s21 + $0x1] ss:$0 sm:$0xff] }
 0x7c1   : > { %v1680_v50 = vmul.f32 0.7978846, %v1678_v61  ;;  %v3328_v62 = vpop.eup %3327 }
 0x7c2   : > { %v1683_v0 = vadd.f32 1.0, %v3328_v62 }
 0x7c3   : > { %3329 = vtanh.f32 %v1680_v50 }
 0x7c4   : > { %v1685_v2 = vmul.f32 0.5, %v1683_v0 }
 0x7c6   : > { %v1687_v4 = vmul.f32 %v1685_v2, %v1667_v46 }
 0x7c9   : > { %v3330_v1 = vpop.eup %3329 }
 0x7ca   : > { %v1684_v55 = vadd.f32 1.0, %v3330_v1 }
 0x7cc   : > { %v1686_v3 = vmul.f32 0.5, %v1684_v55 }
 0x7ce   : > { %v1688_v5 = vmul.f32 %v1686_v3, %v1669_v54  ;;  %v3275_v54 = vld [vmem:[%s4245_s30 + $0x1] ss:$0 sm:$0xff] }
 0x7d0   : > { %v1689_v6 = vpack.c.bf16 %v1688_v5, %v1687_v4 }
 0x7d2   : > { %2951 = vmatmul.msk.bf16.vlgmr.msra.gmra.mxu1 %vm1738_vm5, %v1689_v6 }
 0x84f   : > { %v1751_v9 = vpop.f32.mrf.mxu1 }
 0x850   : > { %v1756_v10 = vadd.f32 %v1751_v9, %v3856_v53 }
 0x852   : > { %v3915_v11 = vadd.f32 %v3274_v8, %v1756_v10 }
 0x854   : > { %v1768_v12 = vsel %vm980_vm0, %v3915_v11, 0.0 }
 0x855   : > { %1769 = vadd.xlane.f32.xlu2 %v1768_v12 }
 0x857   : > { %v1753_v13 = vpop.f32.mrf.mxu1 }
 0x858   : > { %v1757_v14 = vadd.f32 %v1753_v13, %v3861_v58 }
 0x85a   : > { %v3920_v15 = vadd.f32 %v3274_v8, %v1757_v14 }
 0x85c   : > { %v1771_v16 = vsel %vm980_vm0, %v3920_v15, 0.0 }
 0x85d   : > { %1772 = vadd.xlane.f32.xlu0 %v1771_v16 }
 0x8c8   : > { %v1770_v17 = vpop.xlane.xlu2 %1769 }
 0x8c9   : > { %v1774_v18 = vmul.f32 %v1770_v17, %v3725_v63 }
 0x8cb   : > { %v1776_v53 = vsub.f32 %v3915_v11, %v1774_v18 }
 0x8cd   : > { %v1778_v20 = vmul.f32 %v1776_v53, %v1776_v53 }
 0x8cf   : > { %v1780_v21 = vsel %vm980_vm0, %v1778_v20, 0.0 }
 0x8d0   : > { %1781 = vadd.xlane.f32.xlu1 %v1780_v21  ;;  %v1773_v22 = vpop.xlane.xlu0 %1772 }
 0x8d1   : > { %v1775_v23 = vmul.f32 %v1773_v22, %v3725_v63 }
 0x8d3   : > { %v1777_v58 = vsub.f32 %v3920_v15, %v1775_v23 }
 0x8d5   : > { %v1779_v24 = vmul.f32 %v1777_v58, %v1777_v58 }
 0x8d7   : > { %v1783_v25 = vsel %vm980_vm0, %v1779_v24, 0.0 }
 0x8d8   : > { %1784 = vadd.xlane.f32.xlu2 %v1783_v25 }
 0x943   : > { %v1782_v29 = vpop.xlane.xlu1 %1781 }
 0x944   : > { %v1786_v33 = vmul.f32 %v1782_v29, %v3725_v63 }
 0x946   : > { %v1788_v34 = vadd.f32 1e-05, %v1786_v33 }
 0x948   : > { %3331 = vrsqrt.f32 %v1788_v34  ;;  %vm1796_vm7 = vweird.f32 %v1788_v34 }
 0x94b   : > { %v1785_v38 = vpop.xlane.xlu2 %1784 }
 0x94c   : > { %v1787_v39 = vmul.f32 %v1785_v38, %v3725_v63 }
 0x94e   : > { %v3332_v40 = vpop.eup %3331  ;;  %v1789_v41 = vadd.f32 1e-05, %v1787_v39 }
 0x94f   : > { %v1791_v42 = vmul.f32 %v3332_v40, %v1788_v34  ;;  %vm1797_vm6 = vweird.f32 %v3332_v40 }
 0x950   : > { %3333 = vrsqrt.f32 %v1789_v41  ;;  %vm1798_vm8 = vmor %vm1796_vm7, %vm1797_vm6  ;;  %vm1806_vm15 = vweird.f32 %v1789_v41 }
 0x951   : > { %v1792_v43 = vmul.f32 %v3332_v40, %v1791_v42 }
 0x953   : > { %v1793_v44 = vmul.f32 0.5, %v1792_v43 }
 0x955   : > { %v1794_v45 = vsub.f32 1.5, %v1793_v44 }
 0x956   : > { %v3334_v46 = vpop.eup %3333 }
 0x957   : > { %v1795_v47 = vmul.f32 %v3332_v40, %v1794_v45  ;;  %v1801_v7 = vmul.f32 %v3334_v46, %v1789_v41  ;;  %vm1807_vm14 = vweird.f32 %v3334_v46 }
 0x958   : > { %vm1808_vm1 = vmor %vm1806_vm15, %vm1807_vm14  ;;  %vm2650_vm14 = vcmask 24576  }
 0x959   : > { %v1802_v48 = vmul.f32 %v3334_v46, %v1801_v7  ;;  %v1799_v49 = vsel %vm1798_vm8, %v3332_v40, %v1795_v47 }
 0x95a   : > { %v1810_v56 = vmul.f32 %v1799_v49, %v1776_v53 }
 0x95b   : > { %v1803_v51 = vmul.f32 0.5, %v1802_v48 }
 0x95c   : > { %v1815_v61 = vmul.f32 %v3275_v54, %v1810_v56 }
 0x95d   : > { %v1804_v52 = vsub.f32 1.5, %v1803_v51 }
 0x95e   : > { %v1820_v0 = vadd.f32 %v3276_v60, %v1815_v61 }
 0x95f   : > { %v1805_v57 = vmul.f32 %v3334_v46, %v1804_v52 }
 0x961   : > { %v1809_v59 = vsel %vm1808_vm1, %v3334_v46, %v1805_v57 }
 0x962   : > { %v1811_v50 = vmul.f32 %v1809_v59, %v1777_v58 }
 0x964   : > { %v1816_v62 = vmul.f32 %v3275_v54, %v1811_v50 }
 0x966   : > { %v1821_v1 = vadd.f32 %v3276_v60, %v1816_v62 }
 0x968   : > { %v1822_v2 = vpack.c.bf16 %v1821_v1, %v1820_v0 }
 0x96a   : > { %2972 = vmatmul.msk.bf16.vlgmr.msra.gmra.mxu2 %vm980_vm0, %v1822_v2  ;;  %2991 = vmatmul.msk.bf16.vlgmr.msra.gmra.mxu3 %vm980_vm0, %v1822_v2 }
 0x96b   : > { %3010 = vmatmul.msk.bf16.vlgmr.msrb.gmra.mxu0 %vm980_vm0, %v1822_v2 }
 0x9e8   : > { %v1938_v55 = vpop.f32.mrf.mxu0 }
 0x9e9   : > { %v1947_v5 = vpack.c.bf16 %v1938_v55, %v1938_v55 }
 0x9eb   : > { %v2014_v9 = vunpack.c.l.b16 %v1947_v5 }
 0x9ed   : > { %v1860_v3 = vpop.f32.mrf.mxu2  ;;  %v1899_v4 = vpop.f32.mrf.mxu3 }
 0x9ee   : > { %v1943_v12 = vpack.c.bf16 %v1860_v3, %v1860_v3  ;;  %v1945_v13 = vpack.c.bf16 %v1899_v4, %v1899_v4 }
 0x9f0   : > { %v1940_v6 = vpop.f32.mrf.mxu0  ;;  %v1951_v20 = vunpack.c.l.b16 %v1943_v12  ;;  %v1956_v21 = vunpack.c.l.b16 %v1945_v13 }
 0x9f1   : > { %v1948_v8 = vpack.c.bf16 %v1940_v6, %v1940_v6 }
 0x9f3   : > { %v2015_v10 = vunpack.c.l.b16 %v1948_v8 }
 0x9f5   : > { %v3968_v14 = vpack.c.b16 %v2015_v10, %v2014_v9  ;;  %v1862_v16 = vpop.f32.mrf.mxu2  ;;  %v1901_v17 = vpop.f32.mrf.mxu3 }
 0x9f6   : > { %v1944_v18 = vpack.c.bf16 %v1862_v16, %v1862_v16  ;;  %v1946_v53 = vpack.c.bf16 %v1901_v17, %v1901_v17 }
 0x9f7   : > { %2028 = vmatpush.bf16.msrb.mxu3 %v3968_v14 }
 0x9f8   : > { %v1952_v22 = vunpack.c.l.b16 %v1944_v18  ;;  %v1957_v23 = vunpack.c.l.b16 %v1946_v53 }
 0x9fa   : > { %v1953_v58 = vpack.c.b16 %v1952_v22, %v1951_v20  ;;  %v1958_v24 = vpack.c.b16 %v1957_v23, %v1956_v21 }
 0x9fc   : > { %2114 = vrot.lane.b32.xlu1 %v1958_v24, %s3447_s0  ;;  %2037 = vrot.lane.b32.xlu0 %v1958_v24, %s4248_s29  ;;  %v1963_v25 = vsel %vm1176_vm9, %v1958_v24, 0 }
 0x9fd   : > { %2035 = vrot.lane.b32.xlu2 %v1953_v58, %s4248_s29  ;;  %1972 = vmatpush.bf16.xpose.msrb.mxu2 %v1963_v25 }
 0xa04   : > { %2191 = vrot.lane.b32.xlu1 %v1958_v24, %s4249_s5  ;;  %2112 = vrot.lane.b32.xlu0 %v1953_v58, %s3447_s0 }
 0xa05   : > { %3011 = vmatmul.msk.bf16.vlgmr.msrb.gmra.mxu2 %vm1176_vm9, %v1953_v58 }
 0xa0c   : > { %2189 = vrot.lane.b32.xlu0 %v1953_v58, %s4249_s5 }
 0xa57   : > { %v2036_v30 = vpop.permute.xlu2 %2035 }
 0xa6e   : > { %v2115_v26 = vpop.permute.xlu1 %2114  ;;  %v2038_v27 = vpop.permute.xlu0 %2037 }
 0xa6f   : > { %v2120_v28 = vsel %vm1176_vm9, %v2115_v26, 0  ;;  %v2043_v29 = vsel %vm1176_vm9, %v2038_v27, 0 }
 0xa70   : > { %2052 = vmatpush.bf16.xpose.msrb.mxu1 %v2043_v29  ;;  %2129 = vmatpush.bf16.xpose.msra.mxu2 %v2120_v28 }
 0xa76   : > { %v2192_v31 = vpop.permute.xlu1 %2191  ;;  %v2113_v32 = vpop.permute.xlu0 %2112 }
 0xa77   : > { %v2197_v33 = vsel %vm1176_vm9, %v2192_v31, 0  ;;  %3013 = vmatmul.msk.bf16.vlgmr.msrb.gmra.mxu1 %vm1176_vm9, %v2036_v30  ;;  %3015 = vmatmul.msk.bf16.vlgmr.msra.gmra.mxu2 %vm1176_vm9, %v2113_v32 }
 0xa78   : > { %2206 = vmatpush.bf16.xpose.msra.mxu1 %v2197_v33 }
 0xa7e   : > { %v2190_v34 = vpop.permute.xlu0 %2189 }
 0xa87   : > { %3017 = vmatmul.msk.bf16.vlgmr.msra.gmra.mxu1 %vm1176_vm9, %v2190_v34 }
 0xa88   : > { %v1974_v35 = vpop.f32.mrf.mxu2 }
 0xa89   : > { %v1979_v36 = vmul.f32 0.28867513, %v1974_v35 }
 0xa8b   : > { %v1981_v37 = vsel %vm977_vm10, %v1979_v36, -1e+30 }
 0xa8c   : > { %v1983_v38 = vsel %vm1203_vm11, %v1981_v37, -inf }
 0xa8d   : > { %1984 = vmax.xlane.f32.xlu2 %v1983_v38 }
 0xa90   : > { %v1976_v39 = vpop.f32.mrf.mxu2 }
 0xa91   : > { %v1980_v40 = vmul.f32 0.28867513, %v1976_v39 }
 0xa93   : > { %v1982_v41 = vsel %vm977_vm10, %v1980_v40, -1e+30 }
 0xa94   : > { %v1986_v42 = vsel %vm1203_vm11, %v1982_v41, -inf }
 0xa95   : > { %1987 = vmax.xlane.f32.xlu1 %v1986_v42 }
 0xaf4   : > { %v2054_v43 = vpop.f32.mrf.mxu1 }
 0xaf5   : > { %v2059_v44 = vmul.f32 0.28867513, %v2054_v43 }
 0xaf7   : > { %v2061_v45 = vsel %vm977_vm10, %v2059_v44, -1e+30 }
 0xaf8   : > { %v2063_v46 = vsel %vm1203_vm11, %v2061_v45, -inf }
 0xaf9   : > { %2064 = vmax.xlane.f32.xlu0 %v2063_v46 }
 0xafa   : > { %v2131_v47 = vpop.f32.mrf.mxu2 }
 0xafb   : > { %v2136_v7 = vmul.f32 0.28867513, %v2131_v47 }
 0xafc   : > { %v2056_v48 = vpop.f32.mrf.mxu1 }
 0xafd   : > { %v2060_v49 = vmul.f32 0.28867513, %v2056_v48  ;;  %v2138_v51 = vsel %vm977_vm10, %v2136_v7, -1e+30 }
 0xafe   : > { %v2140_v52 = vsel %vm1203_vm11, %v2138_v51, -inf }
 0xaff   : > { %2141 = vmax.xlane.f32.xlu1 %v2140_v52  ;;  %v2062_v54 = vsel %vm977_vm10, %v2060_v49, -1e+30 }
 0xb00   : > { %v1985_v56 = vpop.xlane.xlu2 %1984  ;;  %v2066_v57 = vsel %vm1203_vm11, %v2062_v54, -inf }
 0xb01   : > { %v1989_v59 = vsub.f32 %v1981_v37, %v1985_v56  ;;  %2067 = vmax.xlane.f32.xlu2 %v2066_v57 }
 0xb02   : > { %v2133_v60 = vpop.f32.mrf.mxu2 }
 0xb03   : > { %v1991_v61 = vmul.f32 1.442695, %v1989_v59  ;;  %v2137_v50 = vmul.f32 0.28867513, %v2133_v60 }
 0xb04   : > { %v2208_v62 = vpop.f32.mrf.mxu1 }
 0xb05   : > { %3335 = vpow2.f32 %v1991_v61  ;;  %v2213_v0 = vmul.f32 0.28867513, %v2208_v62  ;;  %v2139_v1 = vsel %vm977_vm10, %v2137_v50, -1e+30 }
 0xb06   : > { %v2143_v2 = vsel %vm1203_vm11, %v2139_v1, -inf }
 0xb07   : > { %2144 = vmax.xlane.f32.xlu0 %v2143_v2  ;;  %v2215_v55 = vsel %vm977_vm10, %v2213_v0, -1e+30 }
 0xb08   : > { %v1988_v3 = vpop.xlane.xlu1 %1987  ;;  %v2217_v4 = vsel %vm1203_vm11, %v2215_v55, -inf }
 0xb09   : > { %v1990_v5 = vsub.f32 %v1982_v41, %v1988_v3  ;;  %2218 = vmax.xlane.f32.xlu2 %v2217_v4 }
 0xb0b   : > { %v3336_v6 = vpop.eup %3335  ;;  %v1993_v8 = vmul.f32 1.442695, %v1990_v5 }
 0xb0c   : > { %v2210_v9 = vpop.f32.mrf.mxu1  ;;  %v1995_v12 = vsel %vm1203_vm11, %v3336_v6, 0.0 }
 0xb0d   : > { %3337 = vpow2.f32 %v1993_v8  ;;  %v2214_v10 = vmul.f32 0.28867513, %v2210_v9 }
 0xb0f   : > { %1996 = vadd.xlane.f32.xlu0 %v1995_v12  ;;  %v2216_v13 = vsel %vm977_vm10, %v2214_v10, -1e+30 }
 0xb10   : > { %v2220_v16 = vsel %vm1203_vm11, %v2216_v13, -inf }
 0xb11   : > { %2221 = vmax.xlane.f32.xlu1 %v2220_v16 }
 0xb13   : > { %v3338_v17 = vpop.eup %3337 }
 0xb14   : > { %v1998_v18 = vsel %vm1203_vm11, %v3338_v17, 0.0 }
 0xb15   : > { %1999 = vadd.xlane.f32.xlu2 %v1998_v18 }
 0xb6c   : > { %v2065_v53 = vpop.xlane.xlu0 %2064 }
 0xb6d   : > { %v2069_v20 = vsub.f32 %v2061_v45, %v2065_v53 }
 0xb6f   : > { %v2071_v21 = vmul.f32 1.442695, %v2069_v20 }
 0xb71   : > { %3339 = vpow2.f32 %v2071_v21 }
 0xb72   : > { %v2142_v22 = vpop.xlane.xlu1 %2141 }
 0xb73   : > { %v2146_v23 = vsub.f32 %v2138_v51, %v2142_v22 }
 0xb74   : > { %v2068_v58 = vpop.xlane.xlu2 %2067 }
 0xb75   : > { %v2148_v24 = vmul.f32 1.442695, %v2146_v23  ;;  %v2070_v25 = vsub.f32 %v2062_v54, %v2068_v58 }
 0xb77   : > { %v4011_v26 = vpop.eup %3339  ;;  %3341 = vpow2.f32 %v2148_v24  ;;  %v2073_v19 = vmul.f32 1.442695, %v2070_v25 }
 0xb78   : > { %v2075_v27 = vsel %vm1203_vm11, %v4011_v26, 0.0 }
 0xb79   : > { %3343 = vpow2.f32 %v2073_v19  ;;  %2076 = vadd.xlane.f32.xlu1 %v2075_v27 }
 0xb7a   : > { %v2145_v28 = vpop.xlane.xlu0 %2144 }
 0xb7b   : > { %v2147_v29 = vsub.f32 %v2139_v1, %v2145_v28 }
 0xb7c   : > { %v2219_v30 = vpop.xlane.xlu2 %2218 }
 0xb7d   : > { %v3342_v31 = vpop.eup %3341  ;;  %v2150_v32 = vmul.f32 1.442695, %v2147_v29  ;;  %v2223_v33 = vsub.f32 %v2215_v55, %v2219_v30 }
 0xb7e   : > { %v2152_v34 = vsel %vm1203_vm11, %v3342_v31, 0.0 }
 0xb7f   : > { %v3344_v35 = vpop.eup %3343  ;;  %3345 = vpow2.f32 %v2150_v32  ;;  %v2225_v36 = vmul.f32 1.442695, %v2223_v33  ;;  %2153 = vadd.xlane.f32.xlu2 %v2152_v34 }
 0xb80   : > { %v2078_v37 = vsel %vm1203_vm11, %v3344_v35, 0.0 }
 0xb81   : > { %3347 = vpow2.f32 %v2225_v36  ;;  %2079 = vadd.xlane.f32.xlu0 %v2078_v37 }
 0xb82   : > { %v1997_v38 = vpop.xlane.xlu0 %1996 }
 0xb83   : > { %3349 = vrcp.f32 %v1997_v38 }
 0xb84   : > { %v2222_v39 = vpop.xlane.xlu1 %2221 }
 0xb85   : > { %v3346_v40 = vpop.eup %3345  ;;  %v2224_v41 = vsub.f32 %v2216_v13, %v2222_v39 }
 0xb86   : > { %v2155_v42 = vsel %vm1203_vm11, %v3346_v40, 0.0 }
 0xb87   : > { %v4018_v43 = vpop.eup %3347  ;;  %v2227_v44 = vmul.f32 1.442695, %v2224_v41  ;;  %2156 = vadd.xlane.f32.xlu1 %v2155_v42 }
 0xb88   : > { %v2000_v45 = vpop.xlane.xlu2 %1999  ;;  %v2229_v46 = vsel %vm1203_vm11, %v4018_v43, 0.0 }
 0xb89   : > { %3351 = vpow2.f32 %v2227_v44  ;;  %2230 = vadd.xlane.f32.xlu2 %v2229_v46  ;;  %v3350_v47 = vpop.eup %3349  ;;  %v3179_v44 = vld [vmem:[%s4247_s9 + $0x28] sm:$0xff]  ;;  %v3177_v46 = vld [vmem:[%s4247_s9 + $0x18] sm:$0xff] }
 0xb8a   : > { %3353 = vrcp.f32 %v2000_v45  ;;  %v2003_v7 = vmul.f32 %v3350_v47, %v3336_v6  ;;  %2330 = vmatpush.bf16.msrb.mxu2 %v3179_v44  ;;  %v3178_v45 = vld [vmem:[%s4247_s9 + $0x20] sm:$0xff] }
 0xb8b   : > { %v3279_v44 = vld [vmem:[%s4189_s12 + $0x1] ss:$0 sm:$0xff] }
 0xb8c   : > { %v2005_v52 = vpack.c.bf16 %v2003_v7, %v2003_v7 }
 0xb8e   : > { %v2009_v57 = vunpack.c.l.b16 %v2005_v52  ;;  %2331 = vmatpush.bf16.msrb.mxu2 %v3178_v45 }
 0xb8f   : > { %v3352_v48 = vpop.eup %3351 }
 0xb90   : > { %v3354_v49 = vpop.eup %3353  ;;  %v2232_v51 = vsel %vm1203_vm11, %v3352_v48, 0.0 }
 0xb91   : > { %v2004_v54 = vmul.f32 %v3354_v49, %v3338_v17  ;;  %2233 = vadd.xlane.f32.xlu1 %v2232_v51 }
 0xb92   : > { %2332 = vmatpush.bf16.msrb.mxu2 %v3177_v46 }
 0xb93   : > { %v2006_v56 = vpack.c.bf16 %v2004_v54, %v2004_v54 }
 0xb95   : > { %v2010_v59 = vunpack.c.l.b16 %v2006_v56  ;;  %2092 = vrot.lane.b32.xlu0 %v3968_v14, %s4248_s29 }
 0xb97   : > { %v2011_v60 = vpack.c.b16 %v2010_v59, %v2009_v57 }
 0xb99   : > { %3012 = vmatmul.msk.bf16.vlgmr.msrb.gmra.mxu3 %vm1203_vm11, %v2011_v60 }
 0xba1   : > { %2169 = vrot.lane.b32.xlu2 %v3968_v14, %s3447_s0  ;;  %s4250_s0 = smov 12  }
 0xbaa   : > { %2246 = vrot.lane.b32.xlu1 %v3968_v14, %s4249_s5  ;;  %s2661_s5 = scalar_lea.hbm %s4253_s1, %s3583_s3  ;;  %s3401_s3 = scalar_lea.hbm %s4253_s1, 2 }
 0xbec   : > { %v2077_v61 = vpop.xlane.xlu1 %2076 }
 0xbf2   : > { %v2154_v50 = vpop.xlane.xlu2 %2153 }
 0xbf3   : > { %3355 = vrcp.f32 %v2154_v50 }
 0xbf4   : > { %v2080_v62 = vpop.xlane.xlu0 %2079 }
 0xbf5   : > { %3357 = vrcp.f32 %v2080_v62 }
 0xbf6   : > { %3359 = vrcp.f32 %v2077_v61 }
 0xbf9   : > { %v3356_v0 = vpop.eup %3355 }
 0xbfa   : > { %v2157_v1 = vpop.xlane.xlu1 %2156  ;;  %v2160_v5 = vmul.f32 %v3356_v0, %v3342_v31 }
 0xbfb   : > { %v3358_v2 = vpop.eup %3357  ;;  %3361 = vrcp.f32 %v2157_v1 }
 0xbfc   : > { %v3360_v55 = vpop.eup %3359  ;;  %v2231_v3 = vpop.xlane.xlu2 %2230  ;;  %v2084_v4 = vmul.f32 %v3358_v2, %v3344_v35  ;;  %v2162_v10 = vpack.c.bf16 %v2160_v5, %v2160_v5  ;;  %v3277_v2 = vld [vmem:[%s4187_s10 + $0x1] ss:$0 sm:$0xff] }
 0xbfd   : > { %v2083_v6 = vmul.f32 %v3360_v55, %v4011_v26 }
 0xbfe   : > { %v2086_v9 = vpack.c.bf16 %v2084_v4, %v2084_v4  ;;  %v2166_v18 = vunpack.c.l.b16 %v2162_v10 }
 0xbff   : > { %v2085_v12 = vpack.c.bf16 %v2083_v6, %v2083_v6 }
 0xc00   : > { %v2090_v17 = vunpack.c.l.b16 %v2086_v9 }
 0xc01   : > { %v3362_v8 = vpop.eup %3361  ;;  %v2089_v21 = vunpack.c.l.b16 %v2085_v12 }
 0xc02   : > { %v2161_v14 = vmul.f32 %v3362_v8, %v3346_v40 }
 0xc03   : > { %v2091_v58 = vpack.c.b16 %v2090_v17, %v2089_v21  ;;  %v3182_v21 = vld [vmem:[%s4190_s13 + $0x28] sm:$0xff] }
 0xc04   : > { %v2163_v13 = vpack.c.bf16 %v2161_v14, %v2161_v14  ;;  %v2170_v16 = vpop.permute.xlu2 %2169  ;;  %v2234_v20 = vpop.xlane.xlu1 %2233 }
 0xc05   : > { %2182 = vmatpush.bf16.msra.mxu3 %v2170_v16  ;;  %3363 = vrcp.f32 %v2234_v20 }
 0xc06   : > { %v2167_v53 = vunpack.c.l.b16 %v2163_v13  ;;  %3365 = vrcp.f32 %v2231_v3 }
 0xc07   : > { %v2093_v22 = vpop.permute.xlu0 %2092 }
 0xc08   : > { %v2168_v23 = vpack.c.b16 %v2167_v53, %v2166_v18  ;;  %2105 = vmatpush.bf16.msra.mxu0 %v2093_v22 }
 0xc09   : > { %2445 = vmatpush.bf16.msrb.mxu3 %v3182_v21 }
 0xc0a   : > { %3016 = vmatmul.msk.bf16.vlgmr.msra.gmra.mxu3 %vm1203_vm11, %v2168_v23  ;;  %v3181_v23 = vld [vmem:[%s4190_s13 + $0x20] sm:$0xff] }
 0xc0b   : > { %3014 = vmatmul.msk.bf16.vlgmr.msra.gmra.mxu0 %vm1203_vm11, %v2091_v58  ;;  %v3364_v24 = vpop.eup %3363 }
 0xc0c   : > { %v3366_v25 = vpop.eup %3365  ;;  %v2238_v26 = vmul.f32 %v3364_v24, %v3352_v48 }
 0xc0d   : > { %v2237_v19 = vmul.f32 %v3366_v25, %v4018_v43  ;;  %2446 = vmatpush.bf16.msrb.mxu3 %v3181_v23  ;;  %v3180_v25 = vld [vmem:[%s4190_s13 + $0x18] sm:$0xff] }
 0xc0e   : > { %v2240_v27 = vpack.c.bf16 %v2238_v26, %v2238_v26 }
 0xc0f   : > { %v2239_v28 = vpack.c.bf16 %v2237_v19, %v2237_v19 }
 0xc10   : > { %v2244_v29 = vunpack.c.l.b16 %v2240_v27 }
 0xc11   : > { %v2243_v30 = vunpack.c.l.b16 %v2239_v28  ;;  %2447 = vmatpush.bf16.msrb.mxu3 %v3180_v25 }
 0xc13   : > { %v2245_v32 = vpack.c.b16 %v2244_v29, %v2243_v30 }
 0xc1c   : > { %v2247_v31 = vpop.permute.xlu1 %2246  ;;  %v2030_v33 = vpop.f32.mrf.mxu3 }
 0xc1d   : > { %2259 = vmatpush.bf16.msrb.mxu0 %v2247_v31 }
 0xc20   : > { %3018 = vmatmul.msk.bf16.vlgmr.msrb.gmra.mxu0 %vm1203_vm11, %v2245_v32 }
 0xc24   : > { %v2032_v34 = vpop.f32.mrf.mxu3 }
 0xc88   : > { %v2107_v35 = vpop.f32.mrf.mxu0 }
 0xc8d   : > { %v2184_v36 = vpop.f32.mrf.mxu3 }
 0xc90   : > { %v2109_v37 = vpop.f32.mrf.mxu0 }
 0xc91   : > { %v3253_v38 = vpack.i.bf16 %v2109_v37, %v2107_v35 }
 0xc93   : > { %3254 = vrot.lane.b32.xlu0 %v3253_v38, %s4250_s0  ;;  %s648_s0 = scalar_lea.vmem [#allocation2], %s647_s28 }
 0xc95   : > { %v2186_v39 = vpop.f32.mrf.mxu3 }
 0xc96   : > { %v3258_v40 = vpack.i.bf16 %v2186_v39, %v2184_v36 }
 0xc9b   : > { %3259 = vrot.lane.b32.xlu0 %v3258_v40, %s4251_s22  ;;  %v3278_v40 = vld [vmem:[%s4188_s11 + $0x1] ss:$0 sm:$0xff]  ;;  %s2663_s22 = sshll.u32 %s648_s0, 4  ;;  %s2664_s22 = int_to_ptr.vmem [resolvable:$true] %s2663_s22 }
 0xc9d   : > { %v2261_v41 = vpop.f32.mrf.mxu0 }
 0xca5   : > { %v2263_v42 = vpop.f32.mrf.mxu0 }
 0xca6   : > { %v3263_v43 = vpack.i.bf16 %v2263_v42, %v2261_v41 }
 0xca8   : > { %3264 = vrot.lane.b32.xlu2 %v3263_v43, %s4252_s4  ;;  %s2665_s4 = sshll.u32 %s2661_s5, 4  ;;  %s2666_s4 = int_to_ptr.hbm [resolvable:$true] %s2665_s4 }
 0xca9   : > { %s3395_s27 = sshra.s32 %s2666_s4, 4  ;;  %s3396_s27 = int_to_ptr.hbm [resolvable:$true] %s3395_s27 }
 0xcaa   : > { %s3397_s26 = scalar_lea.hbm %s3396_s27, 1  ;;  %p3402_p0 = scmp.lt.s32.totalorder %s3396_s27, %s4253_s1 }
 0xcab   : > { %p3398_p11 = scmp.ne.s32.totalorder %s3396_s27, %s3397_s26  ;;  %p3403_p1 = scmp.lt.s32.totalorder %s3401_s3, %s3397_s26 }
 0xcad   : > { %p3399_p12 = pnand %p3398_p11, %p3600_p5  ;;  %p3404_p2 = por %p3403_p1, %p3402_p0 }
 0xcaf   : > { %p3400_p13 = pneg %p3399_p12 }
 0xcb1   : > { %p3405_p3 = pnand %p3404_p2, %p3400_p13 }
 0xd02   : > { %v3265_v49 = vpop.permute.xlu2 %3264 }
 0xd03   : > { %v3267_v56 = vunpack.i.h.bf16 %v3265_v49  ;;  %v3266_v57 = vunpack.i.l.bf16 %v3265_v49 }
 0xd05   : > { %v3255_v47 = vpop.permute.xlu0 %3254 }
 0xd06   : > { %v3257_v7 = vunpack.i.h.bf16 %v3255_v47  ;;  %v3256_v48 = vunpack.i.l.bf16 %v3255_v47 }
 0xd08   : > { %v2291_v59 = vsel %vm1176_vm9, %v2032_v34, %v3257_v7  ;;  %v2290_v60 = vsel %vm1176_vm9, %v2030_v33, %v3256_v48 }
 0xd0d   : > { %v3260_v51 = vpop.permute.xlu0 %3259 }
 0xd0e   : > { %v3262_v52 = vunpack.i.h.bf16 %v3260_v51  ;;  %v3261_v54 = vunpack.i.l.bf16 %v3260_v51  ;;  %v3188_v51 = vld [vmem:[%s4192_s15 + $0x58] sm:$0xff] }
 0xd0f   : > { %2527 = vmatpush.bf16.msrb.mxu1 %v3188_v51 }
 0xd10   : > { %v2293_v61 = vsel %vm1513_vm12, %v2291_v59, %v3262_v52  ;;  %v2292_v50 = vsel %vm1513_vm12, %v2290_v60, %v3261_v54  ;;  %v3187_v52 = vld [vmem:[%s4192_s15 + $0x50] sm:$0xff]  ;;  %v3186_v54 = vld [vmem:[%s4192_s15 + $0x48] sm:$0xff]  ;;  %v3184_v59 = vld [vmem:[%s4192_s15 + $0x38] sm:$0xff] }
 0xd11   : > { %v2294_v62 = vsel %vm1516_vm13, %v2292_v50, %v3266_v57  ;;  %v2295_v0 = vsel %vm1516_vm13, %v2293_v61, %v3267_v56  ;;  %v3185_v56 = vld [vmem:[%s4192_s15 + $0x40] sm:$0xff]  ;;  %v3183_v50 = vld [vmem:[%s4192_s15 + $0x30] sm:$0xff] }
 0xd12   : > { %v2296_v1 = vpack.c.bf16 %v2295_v0, %v2294_v62  ;;  %v3280_v57 = vld [vmem:[%s4191_s14 + $0x1] ss:$0 sm:$0xff] }
 0xd13   : > { %2528 = vmatpush.bf16.msrb.mxu1 %v3187_v52 }
 0xd14   : > { %3037 = vmatmul.msk.bf16.vlgmr.msrb.gmra.mxu2 %vm980_vm0, %v2296_v1 }
 0xd17   : > { %2529 = vmatpush.bf16.msrb.mxu1 %v3186_v54 }
 0xd1b   : > { %2530 = vmatpush.bf16.msrb.mxu1 %v3185_v56 }
 0xd1f   : > { %2531 = vmatpush.bf16.msrb.mxu1 %v3184_v59 }
 0xd23   : > { %2532 = vmatpush.bf16.msrb.mxu1 %v3183_v50 }
 0xd97   : > { %v2334_v55 = vpop.f32.mrf.mxu2 }
 0xd98   : > { %v2339_v3 = vadd.f32 %v2334_v55, %v3915_v11 }
 0xd9a   : > { %v4058_v4 = vadd.f32 %v3277_v2, %v2339_v3 }
 0xd9c   : > { %v2352_v5 = vsel %vm980_vm0, %v4058_v4, 0.0 }
 0xd9d   : > { %2353 = vadd.xlane.f32.xlu0 %v2352_v5 }
 0xd9f   : > { %v2336_v6 = vpop.f32.mrf.mxu2 }
 0xda0   : > { %v2340_v8 = vadd.f32 %v2336_v6, %v3920_v15 }
 0xda2   : > { %v4063_v9 = vadd.f32 %v3277_v2, %v2340_v8 }
 0xda4   : > { %v2355_v10 = vsel %vm980_vm0, %v4063_v9, 0.0 }
 0xda5   : > { %2356 = vadd.xlane.f32.xlu1 %v2355_v10 }
 0xe10   : > { %v2354_v14 = vpop.xlane.xlu0 %2353 }
 0xe11   : > { %v2358_v12 = vmul.f32 %v2354_v14, %v3725_v63 }
 0xe13   : > { %v2360_v11 = vsub.f32 %v4058_v4, %v2358_v12 }
 0xe15   : > { %v2362_v13 = vmul.f32 %v2360_v11, %v2360_v11 }
 0xe17   : > { %v2364_v16 = vsel %vm980_vm0, %v2362_v13, 0.0 }
 0xe18   : > { %2365 = vadd.xlane.f32.xlu2 %v2364_v16  ;;  %v2357_v17 = vpop.xlane.xlu1 %2356 }
 0xe19   : > { %v2359_v18 = vmul.f32 %v2357_v17, %v3725_v63 }
 0xe1b   : > { %v2361_v15 = vsub.f32 %v4063_v9, %v2359_v18 }
 0xe1d   : > { %v2363_v53 = vmul.f32 %v2361_v15, %v2361_v15 }
 0xe1f   : > { %v2367_v20 = vsel %vm980_vm0, %v2363_v53, 0.0 }
 0xe20   : > { %2368 = vadd.xlane.f32.xlu0 %v2367_v20 }
 0xe8b   : > { %v2366_v22 = vpop.xlane.xlu2 %2365 }
 0xe8c   : > { %v2370_v58 = vmul.f32 %v2366_v22, %v3725_v63  ;;  %v3281_v22 = vld [vmem:[%s4193_s16 + $0x1] ss:$0 sm:$0xff] }
 0xe8e   : > { %v2372_v24 = vadd.f32 1e-05, %v2370_v58 }
 0xe90   : > { %3367 = vrsqrt.f32 %v2372_v24  ;;  %vm2380_vm10 = vweird.f32 %v2372_v24 }
 0xe93   : > { %v2369_v26 = vpop.xlane.xlu0 %2368 }
 0xe94   : > { %v2371_v19 = vmul.f32 %v2369_v26, %v3725_v63 }
 0xe96   : > { %v3368_v27 = vpop.eup %3367  ;;  %v2373_v28 = vadd.f32 1e-05, %v2371_v19 }
 0xe97   : > { %v2375_v29 = vmul.f32 %v3368_v27, %v2372_v24  ;;  %vm2381_vm9 = vweird.f32 %v3368_v27 }
 0xe98   : > { %3369 = vrsqrt.f32 %v2373_v28  ;;  %vm2382_vm11 = vmor %vm2380_vm10, %vm2381_vm9  ;;  %vm2390_vm13 = vweird.f32 %v2373_v28 }
 0xe99   : > { %v2376_v30 = vmul.f32 %v3368_v27, %v2375_v29 }
 0xe9b   : > { %v2377_v31 = vmul.f32 0.5, %v2376_v30 }
 0xe9d   : > { %v2378_v32 = vsub.f32 1.5, %v2377_v31 }
 0xe9e   : > { %v3370_v33 = vpop.eup %3369 }
 0xe9f   : > { %v2379_v34 = vmul.f32 %v3368_v27, %v2378_v32  ;;  %v2385_v35 = vmul.f32 %v3370_v33, %v2373_v28  ;;  %vm2391_vm12 = vweird.f32 %v3370_v33 }
 0xea0   : > { %vm2392_vm2 = vmor %vm2390_vm13, %vm2391_vm12 }
 0xea1   : > { %v2386_v36 = vmul.f32 %v3370_v33, %v2385_v35  ;;  %v2383_v37 = vsel %vm2382_vm11, %v3368_v27, %v2379_v34 }
 0xea2   : > { %v2394_v41 = vmul.f32 %v2383_v37, %v2360_v11 }
 0xea3   : > { %v2387_v38 = vmul.f32 0.5, %v2386_v36 }
 0xea4   : > { %v2399_v45 = vmul.f32 %v3278_v40, %v2394_v41 }
 0xea5   : > { %v2388_v39 = vsub.f32 1.5, %v2387_v38 }
 0xea6   : > { %v2404_v7 = vadd.f32 %v3279_v44, %v2399_v45 }
 0xea7   : > { %v2389_v42 = vmul.f32 %v3370_v33, %v2388_v39  ;;  %v3190_v39 = vld [vmem:[%s4196_s19 + $0x8] sm:$0xff] }
 0xea9   : > { %v2393_v43 = vsel %vm2392_vm2, %v3370_v33, %v2389_v42  ;;  %v3189_v42 = vld [vmem:[%s4196_s19] sm:$0xff] }
 0xeaa   : > { %v2395_v46 = vmul.f32 %v2393_v43, %v2361_v15 }
 0xeac   : > { %v2400_v47 = vmul.f32 %v3278_v40, %v2395_v46 }
 0xeae   : > { %v2405_v48 = vadd.f32 %v3279_v44, %v2400_v47 }
 0xeb0   : > { %v2406_v49 = vpack.c.bf16 %v2405_v48, %v2404_v7 }
 0xeb2   : > { %3060 = vmatmul.msk.bf16.vlgmr.msrb.gmra.mxu3 %vm980_vm0, %v2406_v49 }
 0xf35   : > { %v2449_v60 = vpop.f32.mrf.mxu3 }
 0xf36   : > { %v2450_v61 = vadd.f32 %v3280_v57, %v2449_v60 }
 0xf38   : > { %v2454_v62 = vmul.f32 %v2450_v61, %v2450_v61 }
 0xf3a   : > { %v2456_v0 = vmul.f32 %v2454_v62, %v2450_v61 }
 0xf3c   : > { %v2458_v1 = vmul.f32 0.044715, %v2456_v0  ;;  %v3283_v0 = vld [vmem:[%s4195_s18] ss:$0 sm:$0xff] }
 0xf3d   : > { %v2451_v2 = vpop.f32.mrf.mxu3 }
 0xf3e   : > { %v2460_v55 = vadd.f32 %v2458_v1, %v2450_v61  ;;  %v2452_v3 = vadd.f32 %v3280_v57, %v2451_v2 }
 0xf40   : > { %v2462_v5 = vmul.f32 0.7978846, %v2460_v55  ;;  %v2455_v6 = vmul.f32 %v2452_v3, %v2452_v3 }
 0xf42   : > { %v2457_v8 = vmul.f32 %v2455_v6, %v2452_v3  ;;  %3371 = vtanh.f32 %v2462_v5 }
 0xf44   : > { %v2459_v10 = vmul.f32 0.044715, %v2457_v8 }
 0xf46   : > { %v2461_v14 = vadd.f32 %v2459_v10, %v2452_v3  ;;  %v3284_v10 = vld [vmem:[%s4197_s20] ss:$0 sm:$0xff] }
 0xf48   : > { %v2463_v12 = vmul.f32 0.7978846, %v2461_v14  ;;  %v3372_v11 = vpop.eup %3371 }
 0xf49   : > { %v2466_v13 = vadd.f32 1.0, %v3372_v11 }
 0xf4a   : > { %3373 = vtanh.f32 %v2463_v12 }
 0xf4b   : > { %v2468_v17 = vmul.f32 0.5, %v2466_v13 }
 0xf4d   : > { %v2470_v53 = vmul.f32 %v2468_v17, %v2450_v61 }
 0xf50   : > { %v3374_v16 = vpop.eup %3373 }
 0xf51   : > { %v2467_v18 = vadd.f32 1.0, %v3374_v16 }
 0xf53   : > { %v2469_v15 = vmul.f32 0.5, %v2467_v18 }
 0xf55   : > { %v2471_v20 = vmul.f32 %v2469_v15, %v2452_v3 }
 0xf57   : > { %v2472_v21 = vpack.c.bf16 %v2471_v20, %v2470_v53 }
 0xf59   : > { %3097 = vmatmul.msk.bf16.vlgmr.msrb.gmra.mxu1 %vm1738_vm5, %v2472_v21 }
 0xfd6   : > { %v2534_v23 = vpop.f32.mrf.mxu1 }
 0xfd7   : > { %v2539_v58 = vadd.f32 %v2534_v23, %v4058_v4 }
 0xfd9   : > { %v2546_v24 = vadd.f32 %v3281_v22, %v2539_v58 }
 0xfdb   : > { %v2550_v25 = vsel %vm980_vm0, %v2546_v24, 0.0 }
 0xfdc   : > { %2551 = vadd.xlane.f32.xlu1 %v2550_v25 }
 0xfde   : > { %v2536_v26 = vpop.f32.mrf.mxu1 }
 0xfdf   : > { %v2540_v19 = vadd.f32 %v2536_v26, %v4063_v9  ;;  %v3191_v9 = vld [vmem:[%s4196_s19 + $0x10] sm:$0xff] }
 0xfe0   : > { %2641 = vmatpush.bf16.msra.mxu0 %v3191_v9 }
 0xfe1   : > { %v2547_v27 = vadd.f32 %v3281_v22, %v2540_v19 }
 0xfe3   : > { %v2553_v28 = vsel %vm980_vm0, %v2547_v27, 0.0 }
 0xfe4   : > { %2554 = vadd.xlane.f32.xlu2 %v2553_v28  ;;  %2642 = vmatpush.bf16.msra.mxu0 %v3190_v39 }
 0xfe8   : > { %2643 = vmatpush.bf16.msra.mxu0 %v3189_v42 }
0x104f   : > { %v2552_v29 = vpop.xlane.xlu1 %2551 }
0x1050   : > { %v2556_v30 = vmul.f32 %v2552_v29, %v3725_v63 }
0x1052   : > { %v2558_v31 = vsub.f32 %v2546_v24, %v2556_v30 }
0x1054   : > { %v2560_v32 = vmul.f32 %v2558_v31, %v2558_v31 }
0x1056   : > { %v2562_v33 = vsel %vm980_vm0, %v2560_v32, 0.0 }
0x1057   : > { %2563 = vadd.xlane.f32.xlu0 %v2562_v33  ;;  %v2555_v4 = vpop.xlane.xlu2 %2554 }
0x1058   : > { %v2557_v34 = vmul.f32 %v2555_v4, %v3725_v63 }
0x105a   : > { %v2559_v35 = vsub.f32 %v2547_v27, %v2557_v34 }
0x105c   : > { %v2561_v36 = vmul.f32 %v2559_v35, %v2559_v35 }
0x105e   : > { %v2565_v37 = vsel %vm980_vm0, %v2561_v36, 0.0 }
0x105f   : > { %2566 = vadd.xlane.f32.xlu1 %v2565_v37 }
0x10ca   : > { %v2564_v38 = vpop.xlane.xlu0 %2563 }
0x10cb   : > { %v2568_v40 = vmul.f32 %v2564_v38, %v3725_v63 }
0x10cd   : > { %v2570_v41 = vadd.f32 1e-05, %v2568_v40 }
0x10cf   : > { %3375 = vrsqrt.f32 %v2570_v41  ;;  %vm2578_vm4 = vweird.f32 %v2570_v41 }
0x10d2   : > { %v2567_v43 = vpop.xlane.xlu1 %2566 }
0x10d3   : > { %v2569_v44 = vmul.f32 %v2567_v43, %v3725_v63  ;;  %v3282_v63 = vld [vmem:[%s4194_s17] ss:$0 sm:$0xff] }
0x10d5   : > { %v3376_v45 = vpop.eup %3375  ;;  %v2571_v46 = vadd.f32 1e-05, %v2569_v44 }
0x10d6   : > { %v2573_v47 = vmul.f32 %v3376_v45, %v2570_v41  ;;  %vm2579_vm3 = vweird.f32 %v3376_v45 }
0x10d7   : > { %3377 = vrsqrt.f32 %v2571_v46  ;;  %vm2580_vm5 = vmor %vm2578_vm4, %vm2579_vm3  ;;  %vm2588_vm7 = vweird.f32 %v2571_v46 }
0x10d8   : > { %v2574_v7 = vmul.f32 %v3376_v45, %v2573_v47 }
0x10da   : > { %v2575_v48 = vmul.f32 0.5, %v2574_v7 }
0x10dc   : > { %v2576_v49 = vsub.f32 1.5, %v2575_v48 }
0x10dd   : > { %v3378_v51 = vpop.eup %3377 }
0x10de   : > { %v2577_v52 = vmul.f32 %v3376_v45, %v2576_v49  ;;  %v2583_v54 = vmul.f32 %v3378_v51, %v2571_v46  ;;  %vm2589_vm6 = vweird.f32 %v3378_v51 }
0x10df   : > { %vm2590_vm8 = vmor %vm2588_vm7, %vm2589_vm6 }
0x10e0   : > { %v2584_v56 = vmul.f32 %v3378_v51, %v2583_v54  ;;  %v2581_v57 = vsel %vm2580_vm5, %v3376_v45, %v2577_v52 }
0x10e1   : > { %v2592_v61 = vmul.f32 %v2581_v57, %v2558_v31 }
0x10e2   : > { %v2585_v59 = vmul.f32 0.5, %v2584_v56 }
0x10e3   : > { %v2597_v1 = vmul.f32 %v3282_v63, %v2592_v61 }
0x10e4   : > { %v2586_v60 = vsub.f32 1.5, %v2585_v59 }
0x10e5   : > { %v2602_v3 = vadd.f32 %v3283_v0, %v2597_v1 }
0x10e6   : > { %v2587_v50 = vmul.f32 %v3378_v51, %v2586_v60 }
0x10e8   : > { %v2591_v62 = vsel %vm2590_vm8, %v3378_v51, %v2587_v50 }
0x10e9   : > { %v2593_v2 = vmul.f32 %v2591_v62, %v2559_v35 }
0x10eb   : > { %v2598_v55 = vmul.f32 %v3282_v63, %v2593_v2 }
0x10ed   : > { %v2603_v5 = vadd.f32 %v3283_v0, %v2598_v55 }
0x10ef   : > { %v2604_v6 = vpack.c.bf16 %v2603_v5, %v2602_v3 }
0x10f1   : > { %3111 = vmatmul.msk.bf16.vlgmr.msra.gmra.mxu0 %vm980_vm0, %v2604_v6 }
0x116e   : > { %v2645_v8 = vpop.f32.mrf.mxu0 }
0x1176   : > { %v2646_v14 = vpop.f32.mrf.mxu0 }
0x1177   : > { %v2647_v12 = vadd.f32 %v3284_v10, %v2646_v14 }
0x1179   : > { %3379 = vtanh.f32 %v2647_v12 }
0x117f   : > { %v3380_v11 = vpop.eup %3379 }
0x1180   : > { %2651 = vst.msk [vmem:[%s648_s0] sm:$0x1] %vm2650_vm14, %v3380_v11 }
0x1181   : > { %3408 = shalt.err (!%p3405_p3)
}
0x1182   : > { %3192 = dma.vmem_to_hbm [thread:$0]  (%p3600_p5), %s2664_s22, 16, %s2666_s4, %s2653_s6  }
0x1183 PF: > { %s4255_s28 = sld [smem:[#allocation7_spill]] }
0x1184   : > { %s4256_s5 = sld [smem:[#allocation5_spill]] }
0x1189   : > { %p3198_p4 = scmp.ge.s32.totalorder %s4255_s28, 2 }
0x118a   : > { %s2677_s9 = sand.u32 1, %s4256_s5  }
0x118b   : > { %p3195_p7 = pnand %p3198_p4, %p3604_p6  ;;  %s2678_s2 = scalar_lea.sflag [#allocation3], %s2677_s9 }
0x118d   : > { %p3196_p8 = pneg %p3195_p7 }
0x118f   : > { %3426 = dma.done.wait (%p3196_p8), %s2678_s2, 16  }
0x1190   : > { %3428 = vsyncadd (%p3196_p8), %s2678_s2, 4294967280  ;;  %s4258_s27 = sld [smem:[#allocation8_spill]]  ;;  %s4261_s2 = smov %s3435_s25 }
0x1191   : > { %s4259_s7 = sld [smem:[#allocation6_spill]] }
0x1192   : > { %s4260_s26 = sld [smem:[#allocation9_spill]] }
0x1196   : > { %p31_p9 = scmp.ge.s32.totalorder %s4258_s27, 4  }
0x1197   : > { %s4262_s25 = smov %s4259_s7 }
0x1198   :  { %33 = sbr.rel (!%p31_p9) target bundleno = 15 (0xf), region = 152 }
0x119d   :  { %2683 = vsyncpa [#allocation3], 1 }
0x119e   :  { %2685 = vsyncpa [#allocation3 + $0x1], 1 }

</bundles_post_ra>
